<compile_context>
chip_gen: v7x
topology: tpu7x:2x2x1
jax: 0.10.0
libtpu: 0.0.40
codegen_flags: <defaults>
</compile_context>

<pallas_src>
import functools
import math

import jax
import jax.numpy as jnp
from jax import lax
from jax.experimental import pallas as pl
from jax.experimental.pallas import tpu as pltpu

# ----------------------------------------------------------------------------
# Small test configuration (two 16x transposed-conv upsamplings of the mel
# frames -> audio length T = 256 * T_MEL).
# ----------------------------------------------------------------------------
B = 2
CHANNELS = 8
DEPTH = 4
MOD = 2
MEL_BANDS = 8
T_MEL = 2
T = 256 * T_MEL                     # 512
MAXPAD = 128                        # lane-aligned halo for the +-dilation taps (max dil = 2)
PADK = 8                            # stage-1 contraction padded to 8 lanes


# ----------------------------------------------------------------------------
# The fused Pallas kernel (one grid step == one batch element)
# ----------------------------------------------------------------------------
def generator_kernel(x_ref, emb_ref, mel_ref,
                     w1t_ref, b1r_ref, w2t_ref, b2r_ref, wfc_ref, bfc_ref,
                     g1_ref, g2_ref, bmel_ref, ul_ref,
                     win_ref, bin_ref, wcat_ref, bgate_ref, ws_ref, bsp_ref,
                     wf1_ref, bf1_ref, wf2_ref, bf2_ref,
                     out_ref, s_ref,
                     *, C, MEL, T, depth, mod, maxpad):
    f32 = jnp.float32

    # ---------------- time MLP (timeFc1 -> SiLU -> timeFc2 -> SiLU)
    ht = jnp.dot(emb_ref[0], w1t_ref[...], preferred_element_type=f32) + b1r_ref[...]
    ht = ht * jax.nn.sigmoid(ht)
    ht = jnp.dot(ht, w2t_ref[...], preferred_element_type=f32) + b2r_ref[...]
    ht = ht * jax.nn.sigmoid(ht)                                   # (1, 512)

    # ---------------- ALL per-layer timeFcs hoisted out of the loop:
    # one broadcast-multiply + lane reduction -> (D*C, 1) column of timeNow values
    tn_all = jnp.sum(wfc_ref[...] * ht, axis=1, keepdims=True) + bfc_ref[...]

    # ---------------- mel upsampling: 2 x ConvTranspose2d([3,32]/16) as matmuls
    up = ul_ref[0]                                                 # (MEL, MEL) row-shift +1
    dn = ul_ref[1]                                                 # (MEL, MEL) row-shift -1

    def conv_t(m, g_ref, bias):
        # width scatter via band matrices G_kh, height 3-tap conv via up/dn matmuls
        a0 = jnp.dot(m, g_ref[0], preferred_element_type=f32)
        a1 = jnp.dot(m, g_ref[1], preferred_element_type=f32)
        a2 = jnp.dot(m, g_ref[2], preferred_element_type=f32)
        y = (jnp.dot(up, a0, preferred_element_type=f32) + a1
             + jnp.dot(dn, a2, preferred_element_type=f32) + bias)
        return jnp.maximum(y, 0.4 * y)                             # LeakyReLU(0.4)

    m = conv_t(mel_ref[0], g1_ref, bmel_ref[:, 0:1])               # (MEL, 16*T_MEL)
    m = conv_t(m, g2_ref, bmel_ref[:, 1:2])                        # (MEL, T)

    # Stacked matmul operand lives in scratch: rows [0:C]=x_{t-d}, [C:2C]=x_t,
    # [2C:3C]=x_{t+d}, [3C:]=mel.  Only the x_t row block is read with a +-d
    # lane offset, so only its halo margins need zeroing (once per grid step).
    s_ref[3 * C:3 * C + MEL, maxpad:maxpad + T] = m
    s_ref[C:2 * C, 0:maxpad] = jnp.zeros((C, maxpad), f32)
    s_ref[C:2 * C, maxpad + T:maxpad + T + maxpad] = jnp.zeros((C, maxpad), f32)

    # ---------------- convIn (1x1) + ReLU
    h = jnp.maximum(win_ref[...] * x_ref[0] + bin_ref[...], 0.0)   # (C, T)

    skip = jnp.zeros((C, T), f32)
    inv_sqrt2 = 1.0 / math.sqrt(2.0)
    for l in range(depth):                                         # unrolled: d is static
        d = 2 ** (l % mod)
        tn = tn_all[l * C:(l + 1) * C]                             # (C, 1) timeNow column
        res = h
        xt = h + tn
        # fill the stacked operand; shifted taps read back through the halo
        s_ref[C:2 * C, maxpad:maxpad + T] = xt
        s_ref[0:C, maxpad:maxpad + T] = s_ref[C:2 * C, maxpad - d:maxpad - d + T]
        s_ref[2 * C:3 * C, maxpad:maxpad + T] = s_ref[C:2 * C, maxpad + d:maxpad + d + T]
        # dilated conv (3 taps) + mel 1x1 conv + both conv biases in ONE MXU matmul
        y = jnp.dot(wcat_ref[l], s_ref[:, maxpad:maxpad + T],
                    preferred_element_type=f32) + bgate_ref[l]     # (2C, T)
        z = jax.nn.sigmoid(y[:C]) * jnp.tanh(y[C:])                # gated activation
        sp = jnp.dot(ws_ref[l], z, preferred_element_type=f32) + bsp_ref[l]
        h = (res + sp[:C]) * inv_sqrt2                             # residual out
        skip = skip + sp[C:]                                       # skip accumulation

    s = skip * (1.0 / math.sqrt(depth))
    s = jnp.maximum(jnp.dot(wf1_ref[...], s, preferred_element_type=f32)
                    + bf1_ref[...], 0.0)                           # convFinal1 + ReLU
    out_ref[0] = jnp.dot(wf2_ref[...], s, preferred_element_type=f32) + bf2_ref[...]


# ----------------------------------------------------------------------------
# Host-side glue: time-embedding table and parameter repacking
# ----------------------------------------------------------------------------
def time_embedding(t):
    # Matches GeneratorDiffWaveForTesting.timeEmbedding for t of shape (B,)
    t = t.reshape(-1, 1).astype(jnp.float32)
    pos = jnp.arange(64, dtype=jnp.float32)[None, :]
    table = 100.0 * t * (10.0 ** (pos * 4.0 / 63.0))
    return jnp.concatenate([jnp.sin(table), jnp.cos(table)], axis=1)     # (B, 128)


def band_matrices(w, win, stride=16, pad=8):
    # ConvTranspose width scatter as matmul: out[., wo] += x[., wi] * w[kh, wo+pad-stride*wi]
    kh_, kw_ = w.shape
    wout = stride * win
    wi = jnp.arange(win)[:, None]
    wo = jnp.arange(wout)[None, :]
    kw = wo + pad - stride * wi
    valid = (kw >= 0) & (kw < kw_)
    kwc = jnp.clip(kw, 0, kw_ - 1)
    return jnp.where(valid[None, :, :], w[:, kwc], 0.0)            # (3, win, wout)


def generator_forward_pallas(x, mel, time, p):
    C, D, MEL = CHANNELS, DEPTH, MEL_BANDS
    Bb = x.shape[0]
    emb = time_embedding(time)[:, None, :]                         # (B, 1, 128)

    # time MLP weights (row layout for fc1/fc2; timeFcs flattened for one fused reduction)
    w1t = p['fc1_w'].T
    b1r = p['fc1_b'].reshape(1, -1)
    w2t = p['fc2_w'].T
    b2r = p['fc2_b'].reshape(1, -1)
    wfc = p['fcs_w'].reshape(D * C, 512)                           # (D*C, 512)
    bfc = p['fcs_b'].reshape(D * C, 1)

    # transposed-conv band matrices (stage-1 contraction padded to PADK lanes)
    g1 = jnp.pad(band_matrices(p['mel1_w'], T_MEL),
                 ((0, 0), (0, PADK - T_MEL), (0, 0)))              # (3, PADK, 16*T_MEL)
    g2 = band_matrices(p['mel2_w'], 16 * T_MEL)                    # (3, 32, T)
    mel_p = jnp.pad(mel, ((0, 0), (0, 0), (0, PADK - T_MEL)))      # (B, MEL, PADK)
    bmel = jnp.stack([p['mel1_b'], p['mel2_b']], axis=1)           # (1, 2)
    ul = jnp.stack([jnp.eye(MEL, k=1, dtype=jnp.float32),
                    jnp.eye(MEL, k=-1, dtype=jnp.float32)])        # (2, MEL, MEL)

    w_in = p['in_w'].reshape(C, 1)
    b_in = p['in_b'].reshape(C, 1)
    # fused dilated-conv taps + mel 1x1 weights: (D, 2C, 3C + MEL)
    dw = p['dil_w']                                                # (D, 2C, C, 3)
    wcat = jnp.concatenate([dw[..., 0], dw[..., 1], dw[..., 2], p['melc_w']], axis=2)
    bgate = (p['dil_b'] + p['melc_b']).reshape(D, 2 * C, 1)
    wsplit = p['split_w']                                          # (D, 2C, C)
    bsplit = p['split_b'].reshape(D, 2 * C, 1)
    wf1 = p['f1_w']
    bf1 = p['f1_b'].reshape(C, 1)
    wf2 = p['f2_w']
    bf2 = p['f2_b'].reshape(1, 1)

    weights = (w1t, b1r, w2t, b2r, wfc, bfc, g1, g2, bmel, ul,
               w_in, b_in, wcat, bgate, wsplit, bsplit, wf1, bf1, wf2, bf2)

    def full(a):
        nd = a.ndim
        return pl.BlockSpec(a.shape, lambda i: (0,) * nd)

    def per_batch(a):
        nd = a.ndim
        return pl.BlockSpec((1,) + a.shape[1:], lambda i: (i,) + (0,) * (nd - 1))

    kern = functools.partial(generator_kernel, C=C, MEL=MEL, T=T,
                             depth=D, mod=MOD, maxpad=MAXPAD)
    return pl.pallas_call(
        kern,
        grid=(Bb,),
        in_specs=[per_batch(x), per_batch(emb), per_batch(mel_p)]
                 + [full(w) for w in weights],
        out_specs=pl.BlockSpec((1, 1, T), lambda i: (i, 0, 0)),
        out_shape=jax.ShapeDtypeStruct((Bb, 1, T), jnp.float32),
        scratch_shapes=[pltpu.VMEM((3 * C + MEL, T + 2 * MAXPAD), jnp.float32)],
        compiler_params=pltpu.CompilerParams(dimension_semantics=("parallel",)),
    )(x, emb, mel_p, *weights)


# ----------------------------------------------------------------------------
# Pure-JAX reference (mirrors the PyTorch forward) for validation
# ----------------------------------------------------------------------------
def _leaky(x):
    return jnp.where(x >= 0.0, x, 0.4 * x)


def _silu(x):
    return x * jax.nn.sigmoid(x)


def _conv_transpose_mel_ref(x3, w, b):
    x4 = x3[:, None]
    wf = jnp.flip(w, (0, 1))[None, None]
    y = lax.conv_general_dilated(
        x4, wf, window_strides=(1, 1), padding=((1, 1), (23, 23)),
        lhs_dilation=(1, 16), rhs_dilation=(1, 1),
        dimension_numbers=('NCHW', 'OIHW', 'NCHW'))
    return y[:, 0] + b


def _dilated_conv_ref(x, w, bias, d):
    y = lax.conv_general_dilated(
        x[:, :, None, :], w[:, :, None, :], window_strides=(1, 1),
        padding=((0, 0), (d, d)), rhs_dilation=(1, d),
        dimension_numbers=('NCHW', 'OIHW', 'NCHW'))[:, :, 0, :]
    return y + bias[None, :, None]


def generator_forward_ref(x, mel, time, p):
    C = CHANNELS
    emb = time_embedding(time)
    t = _silu(emb @ p['fc1_w'].T + p['fc1_b'])
    t = _silu(t @ p['fc2_w'].T + p['fc2_b'])
    m = _leaky(_conv_transpose_mel_ref(mel, p['mel1_w'], p['mel1_b']))
    m = _leaky(_conv_transpose_mel_ref(m, p['mel2_w'], p['mel2_b']))
    h = jnp.maximum(p['in_w'][None, :, None] * x + p['in_b'][None, :, None], 0.0)
    skips = []
    for i in range(DEPTH):
        d = 2 ** (i % MOD)
        tn = t @ p['fcs_w'][i].T + p['fcs_b'][i]
        mn = jnp.einsum('om,bmt->bot', p['melc_w'][i], m) + p['melc_b'][i][None, :, None]
        res = h
        y = _dilated_conv_ref(h + tn[:, :, None], p['dil_w'][i], p['dil_b'][i], d) + mn
        z = jax.nn.sigmoid(y[:, :C]) * jnp.tanh(y[:, C:])
        sp = jnp.einsum('oc,bct->bot', p['split_w'][i], z) + p['split_b'][i][None, :, None]
        h = (res + sp[:, :C]) / jnp.sqrt(2.0)
        skips.append(sp[:, C:])
    s = sum(skips) / jnp.sqrt(float(DEPTH))
    s = jnp.maximum(jnp.einsum('oc,bct->bot', p['f1_w'], s) + p['f1_b'][None, :, None], 0.0)
    return jnp.einsum('oc,bct->bot', p['f2_w'], s) + p['f2_b'][None, :, None]


# ----------------------------------------------------------------------------
# Deterministic parameter initialization (torch-layout shapes)
# ----------------------------------------------------------------------------
def init_params(key):
    ks = jax.random.split(key, 22)
    C, D, M = CHANNELS, DEPTH, MEL_BANDS

    def n(k, shape, scale):
        return scale * jax.random.normal(k, shape, jnp.float32)

    return dict(
        fc1_w=n(ks[0], (512, 128), 128 ** -0.5), fc1_b=n(ks[1], (512,), 0.05),
        fc2_w=n(ks[2], (512, 512), 512 ** -0.5), fc2_b=n(ks[3], (512,), 0.05),
        fcs_w=n(ks[4], (D, C, 512), 512 ** -0.5), fcs_b=n(ks[5], (D, C), 0.05),
        mel1_w=n(ks[6], (3, 32), 0.25), mel1_b=n(ks[7], (1,), 0.05),
        mel2_w=n(ks[8], (3, 32), 0.25), mel2_b=n(ks[9], (1,), 0.05),
        in_w=n(ks[10], (C,), 1.0), in_b=n(ks[11], (C,), 0.05),
        dil_w=n(ks[12], (D, 2 * C, C, 3), (3 * C) ** -0.5), dil_b=n(ks[13], (D, 2 * C), 0.05),
        melc_w=n(ks[14], (D, 2 * C, M), M ** -0.5), melc_b=n(ks[15], (D, 2 * C), 0.05),
        split_w=n(ks[16], (D, 2 * C, C), C ** -0.5), split_b=n(ks[17], (D, 2 * C), 0.05),
        f1_w=n(ks[18], (C, C), C ** -0.5), f1_b=n(ks[19], (C,), 0.05),
        f2_w=n(ks[20], (1, C), C ** -0.5), f2_b=n(ks[21], (1,), 0.05),
    )


if __name__ == "__main__":
    key = jax.random.PRNGKey(0)
    kp, kx, km, kt = jax.random.split(key, 4)
    params = init_params(kp)

    x = jax.random.normal(kx, (B, 1, T), jnp.float32)
    mel = jax.random.normal(km, (B, MEL_BANDS, T_MEL), jnp.float32)
    time = jax.random.uniform(kt, (B,), jnp.float32)

    out = jax.block_until_ready(generator_forward_pallas(x, mel, time, params))
    assert out.shape == (B, 1, T) and out.dtype == jnp.float32

    ref = jax.block_until_ready(generator_forward_ref(x, mel, time, params))
    err = float(jnp.max(jnp.abs(out - ref)))
    tol = 5e-2 * (1.0 + float(jnp.max(jnp.abs(ref))))
    assert err <= tol, f"kernel/reference mismatch: max abs err {err} > tol {tol}"

    print("KERNEL_OK")
</pallas_src>

<mosaic_0001>
module attributes {stable_mosaic.version = 11 : i64} {
  func.func @generator_kernel(%arg0: i32, %arg1: memref<1x1x512xf32, #tpu.memory_space<vmem>>, %arg2: memref<1x1x128xf32, #tpu.memory_space<vmem>>, %arg3: memref<1x8x8xf32, #tpu.memory_space<vmem>>, %arg4: memref<128x512xf32, #tpu.memory_space<vmem>>, %arg5: memref<1x512xf32, #tpu.memory_space<vmem>>, %arg6: memref<512x512xf32, #tpu.memory_space<vmem>>, %arg7: memref<1x512xf32, #tpu.memory_space<vmem>>, %arg8: memref<32x512xf32, #tpu.memory_space<vmem>>, %arg9: memref<32x1xf32, #tpu.memory_space<vmem>>, %arg10: memref<3x8x32xf32, #tpu.memory_space<vmem>>, %arg11: memref<3x32x512xf32, #tpu.memory_space<vmem>>, %arg12: memref<1x2xf32, #tpu.memory_space<vmem>>, %arg13: memref<2x8x8xf32, #tpu.memory_space<vmem>>, %arg14: memref<8x1xf32, #tpu.memory_space<vmem>>, %arg15: memref<8x1xf32, #tpu.memory_space<vmem>>, %arg16: memref<4x16x32xf32, #tpu.memory_space<vmem>>, %arg17: memref<4x16x1xf32, #tpu.memory_space<vmem>>, %arg18: memref<4x16x8xf32, #tpu.memory_space<vmem>>, %arg19: memref<4x16x1xf32, #tpu.memory_space<vmem>>, %arg20: memref<8x8xf32, #tpu.memory_space<vmem>>, %arg21: memref<8x1xf32, #tpu.memory_space<vmem>>, %arg22: memref<1x8xf32, #tpu.memory_space<vmem>>, %arg23: memref<1x1xf32, #tpu.memory_space<vmem>>, %arg24: memref<1x1x512xf32, #tpu.memory_space<vmem>>, %arg25: memref<32x768xf32, #tpu.memory_space<vmem>>) attributes {dimension_semantics = [#tpu.dimension_semantics<parallel>], iteration_bounds = array<i64: 2>, scalar_prefetch = 0 : i64, scratch_operands = 1 : i64, tpu.core_type = #tpu.core_type<tc>, window_params = [{transform_indices = @transform_0, window_bounds = array<i64: 1, 1, 512>}, {transform_indices = @transform_1, window_bounds = array<i64: 1, 1, 128>}, {transform_indices = @transform_2, window_bounds = array<i64: 1, 8, 8>}, {pipeline_mode = #tpu.pipeline_mode<synchronous>, transform_indices = @transform_3, window_bounds = array<i64: 128, 512>}, {pipeline_mode = #tpu.pipeline_mode<synchronous>, transform_indices = @transform_4, window_bounds = array<i64: 1, 512>}, {pipeline_mode = #tpu.pipeline_mode<synchronous>, transform_indices = @transform_5, window_bounds = array<i64: 512, 512>}, {pipeline_mode = #tpu.pipeline_mode<synchronous>, transform_indices = @transform_6, window_bounds = array<i64: 1, 512>}, {pipeline_mode = #tpu.pipeline_mode<synchronous>, transform_indices = @transform_7, window_bounds = array<i64: 32, 512>}, {pipeline_mode = #tpu.pipeline_mode<synchronous>, transform_indices = @transform_8, window_bounds = array<i64: 32, 1>}, {pipeline_mode = #tpu.pipeline_mode<synchronous>, transform_indices = @transform_9, window_bounds = array<i64: 3, 8, 32>}, {pipeline_mode = #tpu.pipeline_mode<synchronous>, transform_indices = @transform_10, window_bounds = array<i64: 3, 32, 512>}, {pipeline_mode = #tpu.pipeline_mode<synchronous>, transform_indices = @transform_11, window_bounds = array<i64: 1, 2>}, {pipeline_mode = #tpu.pipeline_mode<synchronous>, transform_indices = @transform_12, window_bounds = array<i64: 2, 8, 8>}, {pipeline_mode = #tpu.pipeline_mode<synchronous>, transform_indices = @transform_13, window_bounds = array<i64: 8, 1>}, {pipeline_mode = #tpu.pipeline_mode<synchronous>, transform_indices = @transform_14, window_bounds = array<i64: 8, 1>}, {pipeline_mode = #tpu.pipeline_mode<synchronous>, transform_indices = @transform_15, window_bounds = array<i64: 4, 16, 32>}, {pipeline_mode = #tpu.pipeline_mode<synchronous>, transform_indices = @transform_16, window_bounds = array<i64: 4, 16, 1>}, {pipeline_mode = #tpu.pipeline_mode<synchronous>, transform_indices = @transform_17, window_bounds = array<i64: 4, 16, 8>}, {pipeline_mode = #tpu.pipeline_mode<synchronous>, transform_indices = @transform_18, window_bounds = array<i64: 4, 16, 1>}, {pipeline_mode = #tpu.pipeline_mode<synchronous>, transform_indices = @transform_19, window_bounds = array<i64: 8, 8>}, {pipeline_mode = #tpu.pipeline_mode<synchronous>, transform_indices = @transform_20, window_bounds = array<i64: 8, 1>}, {pipeline_mode = #tpu.pipeline_mode<synchronous>, transform_indices = @transform_21, window_bounds = array<i64: 1, 8>}, {pipeline_mode = #tpu.pipeline_mode<synchronous>, transform_indices = @transform_22, window_bounds = array<i64: 1, 1>}, {transform_indices = @transform_23, window_bounds = array<i64: 1, 1, 512>}]} {
    %c0 = arith.constant 0 : index
    %c0_0 = arith.constant 0 : index
    %c0_1 = arith.constant 0 : index
    %0 = vector.load %arg2[%c0, %c0_0, %c0_1] : memref<1x1x128xf32, #tpu.memory_space<vmem>>, vector<1x1x128xf32>
    %1 = vector.shape_cast %0 : vector<1x1x128xf32> to vector<1x128xf32>
    %c0_2 = arith.constant 0 : index
    %c0_3 = arith.constant 0 : index
    %2 = vector.load %arg4[%c0_2, %c0_3] : memref<128x512xf32, #tpu.memory_space<vmem>>, vector<128x512xf32>
    %cst = arith.constant dense<0.000000e+00> : vector<1x512xf32>
    %3 = tpu.matmul %1, %2, %cst {dimension_numbers = #tpu.dot_dimension_numbers<[1], [0], [0], [1], [0, 0, 1, 1], [], []>} : vector<1x128xf32>, vector<128x512xf32>, vector<1x512xf32> -> vector<1x512xf32>
    %c0_4 = arith.constant 0 : index
    %c0_5 = arith.constant 0 : index
    %4 = vector.load %arg5[%c0_4, %c0_5] : memref<1x512xf32, #tpu.memory_space<vmem>>, vector<1x512xf32>
    %5 = arith.addf %3, %4 : vector<1x512xf32>
    %6 = arith.negf %5 : vector<1x512xf32>
    %7 = math.exp %6 : vector<1x512xf32>
    %cst_6 = arith.constant 1.000000e+00 : f32
    %8 = vector.broadcast %cst_6 : f32 to vector<1x512xf32>
    %9 = arith.addf %8, %7 : vector<1x512xf32>
    %10 = arith.divf %8, %9 : vector<1x512xf32>
    %11 = arith.mulf %5, %10 : vector<1x512xf32>
    %c0_7 = arith.constant 0 : index
    %c0_8 = arith.constant 0 : index
    %12 = vector.load %arg6[%c0_7, %c0_8] : memref<512x512xf32, #tpu.memory_space<vmem>>, vector<512x512xf32>
    %cst_9 = arith.constant dense<0.000000e+00> : vector<1x512xf32>
    %13 = tpu.matmul %11, %12, %cst_9 {dimension_numbers = #tpu.dot_dimension_numbers<[1], [0], [0], [1], [0, 0, 1, 1], [], []>} : vector<1x512xf32>, vector<512x512xf32>, vector<1x512xf32> -> vector<1x512xf32>
    %c0_10 = arith.constant 0 : index
    %c0_11 = arith.constant 0 : index
    %14 = vector.load %arg7[%c0_10, %c0_11] : memref<1x512xf32, #tpu.memory_space<vmem>>, vector<1x512xf32>
    %15 = arith.addf %13, %14 : vector<1x512xf32>
    %16 = arith.negf %15 : vector<1x512xf32>
    %17 = math.exp %16 : vector<1x512xf32>
    %cst_12 = arith.constant 1.000000e+00 : f32
    %18 = vector.broadcast %cst_12 : f32 to vector<1x512xf32>
    %19 = arith.addf %18, %17 : vector<1x512xf32>
    %20 = arith.divf %18, %19 : vector<1x512xf32>
    %21 = arith.mulf %15, %20 : vector<1x512xf32>
    %c0_13 = arith.constant 0 : index
    %c0_14 = arith.constant 0 : index
    %22 = vector.load %arg8[%c0_13, %c0_14] : memref<32x512xf32, #tpu.memory_space<vmem>>, vector<32x512xf32>
    %23 = vector.broadcast %21 : vector<1x512xf32> to vector<32x512xf32>
    %24 = arith.mulf %22, %23 : vector<32x512xf32>
    %cst_15 = arith.constant dense<0.000000e+00> : vector<32xf32>
    %25 = vector.multi_reduction <add>, %24, %cst_15 [1] : vector<32x512xf32> to vector<32xf32>
    %26 = vector.shape_cast %25 : vector<32xf32> to vector<32x1xf32>
    %c0_16 = arith.constant 0 : index
    %c0_17 = arith.constant 0 : index
    %27 = vector.load %arg9[%c0_16, %c0_17] : memref<32x1xf32, #tpu.memory_space<vmem>>, vector<32x1xf32>
    %28 = arith.addf %26, %27 : vector<32x1xf32>
    %c0_18 = arith.constant 0 : index
    %c0_19 = arith.constant 0 : index
    %c0_20 = arith.constant 0 : index
    %29 = vector.load %arg13[%c0_18, %c0_19, %c0_20] : memref<2x8x8xf32, #tpu.memory_space<vmem>>, vector<1x8x8xf32>
    %30 = vector.shape_cast %29 : vector<1x8x8xf32> to vector<8x8xf32>
    %c1 = arith.constant 1 : index
    %c0_21 = arith.constant 0 : index
    %c0_22 = arith.constant 0 : index
    %31 = vector.load %arg13[%c1, %c0_21, %c0_22] : memref<2x8x8xf32, #tpu.memory_space<vmem>>, vector<1x8x8xf32>
    %32 = vector.shape_cast %31 : vector<1x8x8xf32> to vector<8x8xf32>
    %c0_23 = arith.constant 0 : index
    %c0_24 = arith.constant 0 : index
    %c0_25 = arith.constant 0 : index
    %33 = vector.load %arg3[%c0_23, %c0_24, %c0_25] : memref<1x8x8xf32, #tpu.memory_space<vmem>>, vector<1x8x8xf32>
    %34 = vector.shape_cast %33 : vector<1x8x8xf32> to vector<8x8xf32>
    %c0_26 = arith.constant 0 : index
    %c0_27 = arith.constant 0 : index
    %35 = vector.load %arg12[%c0_26, %c0_27] : memref<1x2xf32, #tpu.memory_space<vmem>>, vector<1x1xf32>
    %c0_28 = arith.constant 0 : index
    %c0_29 = arith.constant 0 : index
    %c0_30 = arith.constant 0 : index
    %36 = vector.load %arg10[%c0_28, %c0_29, %c0_30] : memref<3x8x32xf32, #tpu.memory_space<vmem>>, vector<1x8x32xf32>
    %37 = vector.shape_cast %36 : vector<1x8x32xf32> to vector<8x32xf32>
    %cst_31 = arith.constant dense<0.000000e+00> : vector<8x32xf32>
    %38 = tpu.matmul %34, %37, %cst_31 {dimension_numbers = #tpu.dot_dimension_numbers<[1], [0], [0], [1], [0, 0, 1, 1], [], []>} : vector<8x8xf32>, vector<8x32xf32>, vector<8x32xf32> -> vector<8x32xf32>
    %c1_32 = arith.constant 1 : index
    %c0_33 = arith.constant 0 : index
    %c0_34 = arith.constant 0 : index
    %39 = vector.load %arg10[%c1_32, %c0_33, %c0_34] : memref<3x8x32xf32, #tpu.memory_space<vmem>>, vector<1x8x32xf32>
    %40 = vector.shape_cast %39 : vector<1x8x32xf32> to vector<8x32xf32>
    %cst_35 = arith.constant dense<0.000000e+00> : vector<8x32xf32>
    %41 = tpu.matmul %34, %40, %cst_35 {dimension_numbers = #tpu.dot_dimension_numbers<[1], [0], [0], [1], [0, 0, 1, 1], [], []>} : vector<8x8xf32>, vector<8x32xf32>, vector<8x32xf32> -> vector<8x32xf32>
    %c2 = arith.constant 2 : index
    %c0_36 = arith.constant 0 : index
    %c0_37 = arith.constant 0 : index
    %42 = vector.load %arg10[%c2, %c0_36, %c0_37] : memref<3x8x32xf32, #tpu.memory_space<vmem>>, vector<1x8x32xf32>
    %43 = vector.shape_cast %42 : vector<1x8x32xf32> to vector<8x32xf32>
    %cst_38 = arith.constant dense<0.000000e+00> : vector<8x32xf32>
    %44 = tpu.matmul %34, %43, %cst_38 {dimension_numbers = #tpu.dot_dimension_numbers<[1], [0], [0], [1], [0, 0, 1, 1], [], []>} : vector<8x8xf32>, vector<8x32xf32>, vector<8x32xf32> -> vector<8x32xf32>
    %cst_39 = arith.constant dense<0.000000e+00> : vector<8x32xf32>
    %45 = tpu.matmul %30, %38, %cst_39 {dimension_numbers = #tpu.dot_dimension_numbers<[1], [0], [0], [1], [0, 0, 1, 1], [], []>} : vector<8x8xf32>, vector<8x32xf32>, vector<8x32xf32> -> vector<8x32xf32>
    %46 = arith.addf %45, %41 : vector<8x32xf32>
    %cst_40 = arith.constant dense<0.000000e+00> : vector<8x32xf32>
    %47 = tpu.matmul %32, %44, %cst_40 {dimension_numbers = #tpu.dot_dimension_numbers<[1], [0], [0], [1], [0, 0, 1, 1], [], []>} : vector<8x8xf32>, vector<8x32xf32>, vector<8x32xf32> -> vector<8x32xf32>
    %48 = arith.addf %46, %47 : vector<8x32xf32>
    %49 = vector.broadcast %35 : vector<1x1xf32> to vector<8x32xf32>
    %50 = arith.addf %48, %49 : vector<8x32xf32>
    %cst_41 = arith.constant 4.000000e-01 : f32
    %51 = vector.broadcast %cst_41 : f32 to vector<8x32xf32>
    %52 = arith.mulf %51, %50 : vector<8x32xf32>
    %53 = arith.maximumf %50, %52 : vector<8x32xf32>
    %c0_42 = arith.constant 0 : index
    %c1_43 = arith.constant 1 : index
    %54 = vector.load %arg12[%c0_42, %c1_43] : memref<1x2xf32, #tpu.memory_space<vmem>>, vector<1x1xf32>
    %c0_44 = arith.constant 0 : index
    %c0_45 = arith.constant 0 : index
    %c0_46 = arith.constant 0 : index
    %55 = vector.load %arg11[%c0_44, %c0_45, %c0_46] : memref<3x32x512xf32, #tpu.memory_space<vmem>>, vector<1x32x512xf32>
    %56 = vector.shape_cast %55 : vector<1x32x512xf32> to vector<32x512xf32>
    %cst_47 = arith.constant dense<0.000000e+00> : vector<8x512xf32>
    %57 = tpu.matmul %53, %56, %cst_47 {dimension_numbers = #tpu.dot_dimension_numbers<[1], [0], [0], [1], [0, 0, 1, 1], [], []>} : vector<8x32xf32>, vector<32x512xf32>, vector<8x512xf32> -> vector<8x512xf32>
    %c1_48 = arith.constant 1 : index
    %c0_49 = arith.constant 0 : index
    %c0_50 = arith.constant 0 : index
    %58 = vector.load %arg11[%c1_48, %c0_49, %c0_50] : memref<3x32x512xf32, #tpu.memory_space<vmem>>, vector<1x32x512xf32>
    %59 = vector.shape_cast %58 : vector<1x32x512xf32> to vector<32x512xf32>
    %cst_51 = arith.constant dense<0.000000e+00> : vector<8x512xf32>
    %60 = tpu.matmul %53, %59, %cst_51 {dimension_numbers = #tpu.dot_dimension_numbers<[1], [0], [0], [1], [0, 0, 1, 1], [], []>} : vector<8x32xf32>, vector<32x512xf32>, vector<8x512xf32> -> vector<8x512xf32>
    %c2_52 = arith.constant 2 : index
    %c0_53 = arith.constant 0 : index
    %c0_54 = arith.constant 0 : index
    %61 = vector.load %arg11[%c2_52, %c0_53, %c0_54] : memref<3x32x512xf32, #tpu.memory_space<vmem>>, vector<1x32x512xf32>
    %62 = vector.shape_cast %61 : vector<1x32x512xf32> to vector<32x512xf32>
    %cst_55 = arith.constant dense<0.000000e+00> : vector<8x512xf32>
    %63 = tpu.matmul %53, %62, %cst_55 {dimension_numbers = #tpu.dot_dimension_numbers<[1], [0], [0], [1], [0, 0, 1, 1], [], []>} : vector<8x32xf32>, vector<32x512xf32>, vector<8x512xf32> -> vector<8x512xf32>
    %cst_56 = arith.constant dense<0.000000e+00> : vector<8x512xf32>
    %64 = tpu.matmul %30, %57, %cst_56 {dimension_numbers = #tpu.dot_dimension_numbers<[1], [0], [0], [1], [0, 0, 1, 1], [], []>} : vector<8x8xf32>, vector<8x512xf32>, vector<8x512xf32> -> vector<8x512xf32>
    %65 = arith.addf %64, %60 : vector<8x512xf32>
    %cst_57 = arith.constant dense<0.000000e+00> : vector<8x512xf32>
    %66 = tpu.matmul %32, %63, %cst_57 {dimension_numbers = #tpu.dot_dimension_numbers<[1], [0], [0], [1], [0, 0, 1, 1], [], []>} : vector<8x8xf32>, vector<8x512xf32>, vector<8x512xf32> -> vector<8x512xf32>
    %67 = arith.addf %65, %66 : vector<8x512xf32>
    %68 = vector.broadcast %54 : vector<1x1xf32> to vector<8x512xf32>
    %69 = arith.addf %67, %68 : vector<8x512xf32>
    %cst_58 = arith.constant 4.000000e-01 : f32
    %70 = vector.broadcast %cst_58 : f32 to vector<8x512xf32>
    %71 = arith.mulf %70, %69 : vector<8x512xf32>
    %72 = arith.maximumf %69, %71 : vector<8x512xf32>
    %c24 = arith.constant 24 : index
    %c128 = arith.constant 128 : index
    %73 = vector.load %arg25[%c24, %c128] : memref<32x768xf32, #tpu.memory_space<vmem>>, vector<8x512xf32>
    tpu.vector_store %arg25[%c24, %c128], %72 {strides = array<i32>} : memref<32x768xf32, #tpu.memory_space<vmem>>, vector<8x512xf32>,
    %cst_59 = arith.constant 0.000000e+00 : f32
    %74 = vector.broadcast %cst_59 : f32 to vector<8x128xf32>
    %c8 = arith.constant 8 : index
    %c0_60 = arith.constant 0 : index
    %75 = vector.load %arg25[%c8, %c0_60] : memref<32x768xf32, #tpu.memory_space<vmem>>, vector<8x128xf32>
    tpu.vector_store %arg25[%c8, %c0_60], %74 {strides = array<i32>} : memref<32x768xf32, #tpu.memory_space<vmem>>, vector<8x128xf32>,
    %cst_61 = arith.constant 0.000000e+00 : f32
    %76 = vector.broadcast %cst_61 : f32 to vector<8x128xf32>
    %c8_62 = arith.constant 8 : index
    %c640 = arith.constant 640 : index
    %77 = vector.load %arg25[%c8_62, %c640] : memref<32x768xf32, #tpu.memory_space<vmem>>, vector<8x128xf32>
    tpu.vector_store %arg25[%c8_62, %c640], %76 {strides = array<i32>} : memref<32x768xf32, #tpu.memory_space<vmem>>, vector<8x128xf32>,
    %c0_63 = arith.constant 0 : index
    %c0_64 = arith.constant 0 : index
    %78 = vector.load %arg14[%c0_63, %c0_64] : memref<8x1xf32, #tpu.memory_space<vmem>>, vector<8x1xf32>
    %c0_65 = arith.constant 0 : index
    %c0_66 = arith.constant 0 : index
    %c0_67 = arith.constant 0 : index
    %79 = vector.load %arg1[%c0_65, %c0_66, %c0_67] : memref<1x1x512xf32, #tpu.memory_space<vmem>>, vector<1x1x512xf32>
    %80 = vector.shape_cast %79 : vector<1x1x512xf32> to vector<1x512xf32>
    %81 = vector.broadcast %78 : vector<8x1xf32> to vector<8x512xf32>
    %82 = vector.broadcast %80 : vector<1x512xf32> to vector<8x512xf32>
    %83 = arith.mulf %81, %82 : vector<8x512xf32>
    %c0_68 = arith.constant 0 : index
    %c0_69 = arith.constant 0 : index
    %84 = vector.load %arg15[%c0_68, %c0_69] : memref<8x1xf32, #tpu.memory_space<vmem>>, vector<8x1xf32>
    %85 = vector.broadcast %84 : vector<8x1xf32> to vector<8x512xf32>
    %86 = arith.addf %83, %85 : vector<8x512xf32>
    %cst_70 = arith.constant 0.000000e+00 : f32
    %87 = vector.broadcast %cst_70 : f32 to vector<8x512xf32>
    %88 = arith.maximumf %86, %87 : vector<8x512xf32>
    %cst_71 = arith.constant 0.000000e+00 : f32
    %89 = vector.broadcast %cst_71 : f32 to vector<8x512xf32>
    %90 = vector.extract_strided_slice %28 {offsets = [0, 0], sizes = [8, 1], strides = [1, 1]} : vector<32x1xf32> to vector<8x1xf32>
    %91 = vector.broadcast %90 : vector<8x1xf32> to vector<8x512xf32>
    %92 = arith.addf %88, %91 : vector<8x512xf32>
    %c8_72 = arith.constant 8 : index
    %c128_73 = arith.constant 128 : index
    %93 = vector.load %arg25[%c8_72, %c128_73] : memref<32x768xf32, #tpu.memory_space<vmem>>, vector<8x512xf32>
    tpu.vector_store %arg25[%c8_72, %c128_73], %92 {strides = array<i32>} : memref<32x768xf32, #tpu.memory_space<vmem>>, vector<8x512xf32>,
    %c8_74 = arith.constant 8 : index
    %c127 = arith.constant 127 : index
    %94 = vector.load %arg25[%c8_74, %c127] : memref<32x768xf32, #tpu.memory_space<vmem>>, vector<8x512xf32>
    %c0_75 = arith.constant 0 : index
    %c128_76 = arith.constant 128 : index
    %95 = vector.load %arg25[%c0_75, %c128_76] : memref<32x768xf32, #tpu.memory_space<vmem>>, vector<8x512xf32>
    tpu.vector_store %arg25[%c0_75, %c128_76], %94 {strides = array<i32>} : memref<32x768xf32, #tpu.memory_space<vmem>>, vector<8x512xf32>,
    %c8_77 = arith.constant 8 : index
    %c129 = arith.constant 129 : index
    %96 = vector.load %arg25[%c8_77, %c129] : memref<32x768xf32, #tpu.memory_space<vmem>>, vector<8x512xf32>
    %c16 = arith.constant 16 : index
    %c128_78 = arith.constant 128 : index
    %97 = vector.load %arg25[%c16, %c128_78] : memref<32x768xf32, #tpu.memory_space<vmem>>, vector<8x512xf32>
    tpu.vector_store %arg25[%c16, %c128_78], %96 {strides = array<i32>} : memref<32x768xf32, #tpu.memory_space<vmem>>, vector<8x512xf32>,
    %c0_79 = arith.constant 0 : index
    %c0_80 = arith.constant 0 : index
    %c0_81 = arith.constant 0 : index
    %98 = vector.load %arg16[%c0_79, %c0_80, %c0_81] : memref<4x16x32xf32, #tpu.memory_space<vmem>>, vector<1x16x32xf32>
    %99 = vector.shape_cast %98 : vector<1x16x32xf32> to vector<16x32xf32>
    %c0_82 = arith.constant 0 : index
    %c128_83 = arith.constant 128 : index
    %100 = vector.load %arg25[%c0_82, %c128_83] : memref<32x768xf32, #tpu.memory_space<vmem>>, vector<32x512xf32>
    %cst_84 = arith.constant dense<0.000000e+00> : vector<16x512xf32>
    %101 = tpu.matmul %99, %100, %cst_84 {dimension_numbers = #tpu.dot_dimension_numbers<[1], [0], [0], [1], [0, 0, 1, 1], [], []>} : vector<16x32xf32>, vector<32x512xf32>, vector<16x512xf32> -> vector<16x512xf32>
    %c0_85 = arith.constant 0 : index
    %c0_86 = arith.constant 0 : index
    %c0_87 = arith.constant 0 : index
    %102 = vector.load %arg17[%c0_85, %c0_86, %c0_87] : memref<4x16x1xf32, #tpu.memory_space<vmem>>, vector<1x16x1xf32>
    %103 = vector.shape_cast %102 : vector<1x16x1xf32> to vector<16x1xf32>
    %104 = vector.broadcast %103 : vector<16x1xf32> to vector<16x512xf32>
    %105 = arith.addf %101, %104 : vector<16x512xf32>
    %106 = vector.extract_strided_slice %105 {offsets = [0, 0], sizes = [8, 512], strides = [1, 1]} : vector<16x512xf32> to vector<8x512xf32>
    %107 = arith.negf %106 : vector<8x512xf32>
    %108 = math.exp %107 : vector<8x512xf32>
    %cst_88 = arith.constant 1.000000e+00 : f32
    %109 = vector.broadcast %cst_88 : f32 to vector<8x512xf32>
    %110 = arith.addf %109, %108 : vector<8x512xf32>
    %111 = arith.divf %109, %110 : vector<8x512xf32>
    %112 = vector.extract_strided_slice %105 {offsets = [8, 0], sizes = [8, 512], strides = [1, 1]} : vector<16x512xf32> to vector<8x512xf32>
    %113 = math.tanh %112 : vector<8x512xf32>
    %114 = arith.mulf %111, %113 : vector<8x512xf32>
    %c0_89 = arith.constant 0 : index
    %c0_90 = arith.constant 0 : index
    %c0_91 = arith.constant 0 : index
    %115 = vector.load %arg18[%c0_89, %c0_90, %c0_91] : memref<4x16x8xf32, #tpu.memory_space<vmem>>, vector<1x16x8xf32>
    %116 = vector.shape_cast %115 : vector<1x16x8xf32> to vector<16x8xf32>
    %cst_92 = arith.constant dense<0.000000e+00> : vector<16x512xf32>
    %117 = tpu.matmul %116, %114, %cst_92 {dimension_numbers = #tpu.dot_dimension_numbers<[1], [0], [0], [1], [0, 0, 1, 1], [], []>} : vector<16x8xf32>, vector<8x512xf32>, vector<16x512xf32> -> vector<16x512xf32>
    %c0_93 = arith.constant 0 : index
    %c0_94 = arith.constant 0 : index
    %c0_95 = arith.constant 0 : index
    %118 = vector.load %arg19[%c0_93, %c0_94, %c0_95] : memref<4x16x1xf32, #tpu.memory_space<vmem>>, vector<1x16x1xf32>
    %119 = vector.shape_cast %118 : vector<1x16x1xf32> to vector<16x1xf32>
    %120 = vector.broadcast %119 : vector<16x1xf32> to vector<16x512xf32>
    %121 = arith.addf %117, %120 : vector<16x512xf32>
    %122 = vector.extract_strided_slice %121 {offsets = [0, 0], sizes = [8, 512], strides = [1, 1]} : vector<16x512xf32> to vector<8x512xf32>
    %123 = arith.addf %88, %122 : vector<8x512xf32>
    %cst_96 = arith.constant 0.707106769 : f32
    %124 = vector.broadcast %cst_96 : f32 to vector<8x512xf32>
    %125 = arith.mulf %123, %124 : vector<8x512xf32>
    %126 = vector.extract_strided_slice %121 {offsets = [8, 0], sizes = [8, 512], strides = [1, 1]} : vector<16x512xf32> to vector<8x512xf32>
    %127 = arith.addf %89, %126 : vector<8x512xf32>
    %128 = vector.extract_strided_slice %28 {offsets = [8, 0], sizes = [8, 1], strides = [1, 1]} : vector<32x1xf32> to vector<8x1xf32>
    %129 = vector.broadcast %128 : vector<8x1xf32> to vector<8x512xf32>
    %130 = arith.addf %125, %129 : vector<8x512xf32>
    %c8_97 = arith.constant 8 : index
    %c128_98 = arith.constant 128 : index
    %131 = vector.load %arg25[%c8_97, %c128_98] : memref<32x768xf32, #tpu.memory_space<vmem>>, vector<8x512xf32>
    tpu.vector_store %arg25[%c8_97, %c128_98], %130 {strides = array<i32>} : memref<32x768xf32, #tpu.memory_space<vmem>>, vector<8x512xf32>,
    %c8_99 = arith.constant 8 : index
    %c126 = arith.constant 126 : index
    %132 = vector.load %arg25[%c8_99, %c126] : memref<32x768xf32, #tpu.memory_space<vmem>>, vector<8x512xf32>
    %c0_100 = arith.constant 0 : index
    %c128_101 = arith.constant 128 : index
    %133 = vector.load %arg25[%c0_100, %c128_101] : memref<32x768xf32, #tpu.memory_space<vmem>>, vector<8x512xf32>
    tpu.vector_store %arg25[%c0_100, %c128_101], %132 {strides = array<i32>} : memref<32x768xf32, #tpu.memory_space<vmem>>, vector<8x512xf32>,
    %c8_102 = arith.constant 8 : index
    %c130 = arith.constant 130 : index
    %134 = vector.load %arg25[%c8_102, %c130] : memref<32x768xf32, #tpu.memory_space<vmem>>, vector<8x512xf32>
    %c16_103 = arith.constant 16 : index
    %c128_104 = arith.constant 128 : index
    %135 = vector.load %arg25[%c16_103, %c128_104] : memref<32x768xf32, #tpu.memory_space<vmem>>, vector<8x512xf32>
    tpu.vector_store %arg25[%c16_103, %c128_104], %134 {strides = array<i32>} : memref<32x768xf32, #tpu.memory_space<vmem>>, vector<8x512xf32>,
    %c1_105 = arith.constant 1 : index
    %c0_106 = arith.constant 0 : index
    %c0_107 = arith.constant 0 : index
    %136 = vector.load %arg16[%c1_105, %c0_106, %c0_107] : memref<4x16x32xf32, #tpu.memory_space<vmem>>, vector<1x16x32xf32>
    %137 = vector.shape_cast %136 : vector<1x16x32xf32> to vector<16x32xf32>
    %c0_108 = arith.constant 0 : index
    %c128_109 = arith.constant 128 : index
    %138 = vector.load %arg25[%c0_108, %c128_109] : memref<32x768xf32, #tpu.memory_space<vmem>>, vector<32x512xf32>
    %cst_110 = arith.constant dense<0.000000e+00> : vector<16x512xf32>
    %139 = tpu.matmul %137, %138, %cst_110 {dimension_numbers = #tpu.dot_dimension_numbers<[1], [0], [0], [1], [0, 0, 1, 1], [], []>} : vector<16x32xf32>, vector<32x512xf32>, vector<16x512xf32> -> vector<16x512xf32>
    %c1_111 = arith.constant 1 : index
    %c0_112 = arith.constant 0 : index
    %c0_113 = arith.constant 0 : index
    %140 = vector.load %arg17[%c1_111, %c0_112, %c0_113] : memref<4x16x1xf32, #tpu.memory_space<vmem>>, vector<1x16x1xf32>
    %141 = vector.shape_cast %140 : vector<1x16x1xf32> to vector<16x1xf32>
    %142 = vector.broadcast %141 : vector<16x1xf32> to vector<16x512xf32>
    %143 = arith.addf %139, %142 : vector<16x512xf32>
    %144 = vector.extract_strided_slice %143 {offsets = [0, 0], sizes = [8, 512], strides = [1, 1]} : vector<16x512xf32> to vector<8x512xf32>
    %145 = arith.negf %144 : vector<8x512xf32>
    %146 = math.exp %145 : vector<8x512xf32>
    %cst_114 = arith.constant 1.000000e+00 : f32
    %147 = vector.broadcast %cst_114 : f32 to vector<8x512xf32>
    %148 = arith.addf %147, %146 : vector<8x512xf32>
    %149 = arith.divf %147, %148 : vector<8x512xf32>
    %150 = vector.extract_strided_slice %143 {offsets = [8, 0], sizes = [8, 512], strides = [1, 1]} : vector<16x512xf32> to vector<8x512xf32>
    %151 = math.tanh %150 : vector<8x512xf32>
    %152 = arith.mulf %149, %151 : vector<8x512xf32>
    %c1_115 = arith.constant 1 : index
    %c0_116 = arith.constant 0 : index
    %c0_117 = arith.constant 0 : index
    %153 = vector.load %arg18[%c1_115, %c0_116, %c0_117] : memref<4x16x8xf32, #tpu.memory_space<vmem>>, vector<1x16x8xf32>
    %154 = vector.shape_cast %153 : vector<1x16x8xf32> to vector<16x8xf32>
    %cst_118 = arith.constant dense<0.000000e+00> : vector<16x512xf32>
    %155 = tpu.matmul %154, %152, %cst_118 {dimension_numbers = #tpu.dot_dimension_numbers<[1], [0], [0], [1], [0, 0, 1, 1], [], []>} : vector<16x8xf32>, vector<8x512xf32>, vector<16x512xf32> -> vector<16x512xf32>
    %c1_119 = arith.constant 1 : index
    %c0_120 = arith.constant 0 : index
    %c0_121 = arith.constant 0 : index
    %156 = vector.load %arg19[%c1_119, %c0_120, %c0_121] : memref<4x16x1xf32, #tpu.memory_space<vmem>>, vector<1x16x1xf32>
    %157 = vector.shape_cast %156 : vector<1x16x1xf32> to vector<16x1xf32>
    %158 = vector.broadcast %157 : vector<16x1xf32> to vector<16x512xf32>
    %159 = arith.addf %155, %158 : vector<16x512xf32>
    %160 = vector.extract_strided_slice %159 {offsets = [0, 0], sizes = [8, 512], strides = [1, 1]} : vector<16x512xf32> to vector<8x512xf32>
    %161 = arith.addf %125, %160 : vector<8x512xf32>
    %cst_122 = arith.constant 0.707106769 : f32
    %162 = vector.broadcast %cst_122 : f32 to vector<8x512xf32>
    %163 = arith.mulf %161, %162 : vector<8x512xf32>
    %164 = vector.extract_strided_slice %159 {offsets = [8, 0], sizes = [8, 512], strides = [1, 1]} : vector<16x512xf32> to vector<8x512xf32>
    %165 = arith.addf %127, %164 : vector<8x512xf32>
    %166 = vector.extract_strided_slice %28 {offsets = [16, 0], sizes = [8, 1], strides = [1, 1]} : vector<32x1xf32> to vector<8x1xf32>
    %167 = vector.broadcast %166 : vector<8x1xf32> to vector<8x512xf32>
    %168 = arith.addf %163, %167 : vector<8x512xf32>
    %c8_123 = arith.constant 8 : index
    %c128_124 = arith.constant 128 : index
    %169 = vector.load %arg25[%c8_123, %c128_124] : memref<32x768xf32, #tpu.memory_space<vmem>>, vector<8x512xf32>
    tpu.vector_store %arg25[%c8_123, %c128_124], %168 {strides = array<i32>} : memref<32x768xf32, #tpu.memory_space<vmem>>, vector<8x512xf32>,
    %c8_125 = arith.constant 8 : index
    %c127_126 = arith.constant 127 : index
    %170 = vector.load %arg25[%c8_125, %c127_126] : memref<32x768xf32, #tpu.memory_space<vmem>>, vector<8x512xf32>
    %c0_127 = arith.constant 0 : index
    %c128_128 = arith.constant 128 : index
    %171 = vector.load %arg25[%c0_127, %c128_128] : memref<32x768xf32, #tpu.memory_space<vmem>>, vector<8x512xf32>
    tpu.vector_store %arg25[%c0_127, %c128_128], %170 {strides = array<i32>} : memref<32x768xf32, #tpu.memory_space<vmem>>, vector<8x512xf32>,
    %c8_129 = arith.constant 8 : index
    %c129_130 = arith.constant 129 : index
    %172 = vector.load %arg25[%c8_129, %c129_130] : memref<32x768xf32, #tpu.memory_space<vmem>>, vector<8x512xf32>
    %c16_131 = arith.constant 16 : index
    %c128_132 = arith.constant 128 : index
    %173 = vector.load %arg25[%c16_131, %c128_132] : memref<32x768xf32, #tpu.memory_space<vmem>>, vector<8x512xf32>
    tpu.vector_store %arg25[%c16_131, %c128_132], %172 {strides = array<i32>} : memref<32x768xf32, #tpu.memory_space<vmem>>, vector<8x512xf32>,
    %c2_133 = arith.constant 2 : index
    %c0_134 = arith.constant 0 : index
    %c0_135 = arith.constant 0 : index
    %174 = vector.load %arg16[%c2_133, %c0_134, %c0_135] : memref<4x16x32xf32, #tpu.memory_space<vmem>>, vector<1x16x32xf32>
    %175 = vector.shape_cast %174 : vector<1x16x32xf32> to vector<16x32xf32>
    %c0_136 = arith.constant 0 : index
    %c128_137 = arith.constant 128 : index
    %176 = vector.load %arg25[%c0_136, %c128_137] : memref<32x768xf32, #tpu.memory_space<vmem>>, vector<32x512xf32>
    %cst_138 = arith.constant dense<0.000000e+00> : vector<16x512xf32>
    %177 = tpu.matmul %175, %176, %cst_138 {dimension_numbers = #tpu.dot_dimension_numbers<[1], [0], [0], [1], [0, 0, 1, 1], [], []>} : vector<16x32xf32>, vector<32x512xf32>, vector<16x512xf32> -> vector<16x512xf32>
    %c2_139 = arith.constant 2 : index
    %c0_140 = arith.constant 0 : index
    %c0_141 = arith.constant 0 : index
    %178 = vector.load %arg17[%c2_139, %c0_140, %c0_141] : memref<4x16x1xf32, #tpu.memory_space<vmem>>, vector<1x16x1xf32>
    %179 = vector.shape_cast %178 : vector<1x16x1xf32> to vector<16x1xf32>
    %180 = vector.broadcast %179 : vector<16x1xf32> to vector<16x512xf32>
    %181 = arith.addf %177, %180 : vector<16x512xf32>
    %182 = vector.extract_strided_slice %181 {offsets = [0, 0], sizes = [8, 512], strides = [1, 1]} : vector<16x512xf32> to vector<8x512xf32>
    %183 = arith.negf %182 : vector<8x512xf32>
    %184 = math.exp %183 : vector<8x512xf32>
    %cst_142 = arith.constant 1.000000e+00 : f32
    %185 = vector.broadcast %cst_142 : f32 to vector<8x512xf32>
    %186 = arith.addf %185, %184 : vector<8x512xf32>
    %187 = arith.divf %185, %186 : vector<8x512xf32>
    %188 = vector.extract_strided_slice %181 {offsets = [8, 0], sizes = [8, 512], strides = [1, 1]} : vector<16x512xf32> to vector<8x512xf32>
    %189 = math.tanh %188 : vector<8x512xf32>
    %190 = arith.mulf %187, %189 : vector<8x512xf32>
    %c2_143 = arith.constant 2 : index
    %c0_144 = arith.constant 0 : index
    %c0_145 = arith.constant 0 : index
    %191 = vector.load %arg18[%c2_143, %c0_144, %c0_145] : memref<4x16x8xf32, #tpu.memory_space<vmem>>, vector<1x16x8xf32>
    %192 = vector.shape_cast %191 : vector<1x16x8xf32> to vector<16x8xf32>
    %cst_146 = arith.constant dense<0.000000e+00> : vector<16x512xf32>
    %193 = tpu.matmul %192, %190, %cst_146 {dimension_numbers = #tpu.dot_dimension_numbers<[1], [0], [0], [1], [0, 0, 1, 1], [], []>} : vector<16x8xf32>, vector<8x512xf32>, vector<16x512xf32> -> vector<16x512xf32>
    %c2_147 = arith.constant 2 : index
    %c0_148 = arith.constant 0 : index
    %c0_149 = arith.constant 0 : index
    %194 = vector.load %arg19[%c2_147, %c0_148, %c0_149] : memref<4x16x1xf32, #tpu.memory_space<vmem>>, vector<1x16x1xf32>
    %195 = vector.shape_cast %194 : vector<1x16x1xf32> to vector<16x1xf32>
    %196 = vector.broadcast %195 : vector<16x1xf32> to vector<16x512xf32>
    %197 = arith.addf %193, %196 : vector<16x512xf32>
    %198 = vector.extract_strided_slice %197 {offsets = [0, 0], sizes = [8, 512], strides = [1, 1]} : vector<16x512xf32> to vector<8x512xf32>
    %199 = arith.addf %163, %198 : vector<8x512xf32>
    %cst_150 = arith.constant 0.707106769 : f32
    %200 = vector.broadcast %cst_150 : f32 to vector<8x512xf32>
    %201 = arith.mulf %199, %200 : vector<8x512xf32>
    %202 = vector.extract_strided_slice %197 {offsets = [8, 0], sizes = [8, 512], strides = [1, 1]} : vector<16x512xf32> to vector<8x512xf32>
    %203 = arith.addf %165, %202 : vector<8x512xf32>
    %204 = vector.extract_strided_slice %28 {offsets = [24, 0], sizes = [8, 1], strides = [1, 1]} : vector<32x1xf32> to vector<8x1xf32>
    %205 = vector.broadcast %204 : vector<8x1xf32> to vector<8x512xf32>
    %206 = arith.addf %201, %205 : vector<8x512xf32>
    %c8_151 = arith.constant 8 : index
    %c128_152 = arith.constant 128 : index
    %207 = vector.load %arg25[%c8_151, %c128_152] : memref<32x768xf32, #tpu.memory_space<vmem>>, vector<8x512xf32>
    tpu.vector_store %arg25[%c8_151, %c128_152], %206 {strides = array<i32>} : memref<32x768xf32, #tpu.memory_space<vmem>>, vector<8x512xf32>,
    %c8_153 = arith.constant 8 : index
    %c126_154 = arith.constant 126 : index
    %208 = vector.load %arg25[%c8_153, %c126_154] : memref<32x768xf32, #tpu.memory_space<vmem>>, vector<8x512xf32>
    %c0_155 = arith.constant 0 : index
    %c128_156 = arith.constant 128 : index
    %209 = vector.load %arg25[%c0_155, %c128_156] : memref<32x768xf32, #tpu.memory_space<vmem>>, vector<8x512xf32>
    tpu.vector_store %arg25[%c0_155, %c128_156], %208 {strides = array<i32>} : memref<32x768xf32, #tpu.memory_space<vmem>>, vector<8x512xf32>,
    %c8_157 = arith.constant 8 : index
    %c130_158 = arith.constant 130 : index
    %210 = vector.load %arg25[%c8_157, %c130_158] : memref<32x768xf32, #tpu.memory_space<vmem>>, vector<8x512xf32>
    %c16_159 = arith.constant 16 : index
    %c128_160 = arith.constant 128 : index
    %211 = vector.load %arg25[%c16_159, %c128_160] : memref<32x768xf32, #tpu.memory_space<vmem>>, vector<8x512xf32>
    tpu.vector_store %arg25[%c16_159, %c128_160], %210 {strides = array<i32>} : memref<32x768xf32, #tpu.memory_space<vmem>>, vector<8x512xf32>,
    %c3 = arith.constant 3 : index
    %c0_161 = arith.constant 0 : index
    %c0_162 = arith.constant 0 : index
    %212 = vector.load %arg16[%c3, %c0_161, %c0_162] : memref<4x16x32xf32, #tpu.memory_space<vmem>>, vector<1x16x32xf32>
    %213 = vector.shape_cast %212 : vector<1x16x32xf32> to vector<16x32xf32>
    %c0_163 = arith.constant 0 : index
    %c128_164 = arith.constant 128 : index
    %214 = vector.load %arg25[%c0_163, %c128_164] : memref<32x768xf32, #tpu.memory_space<vmem>>, vector<32x512xf32>
    %cst_165 = arith.constant dense<0.000000e+00> : vector<16x512xf32>
    %215 = tpu.matmul %213, %214, %cst_165 {dimension_numbers = #tpu.dot_dimension_numbers<[1], [0], [0], [1], [0, 0, 1, 1], [], []>} : vector<16x32xf32>, vector<32x512xf32>, vector<16x512xf32> -> vector<16x512xf32>
    %c3_166 = arith.constant 3 : index
    %c0_167 = arith.constant 0 : index
    %c0_168 = arith.constant 0 : index
    %216 = vector.load %arg17[%c3_166, %c0_167, %c0_168] : memref<4x16x1xf32, #tpu.memory_space<vmem>>, vector<1x16x1xf32>
    %217 = vector.shape_cast %216 : vector<1x16x1xf32> to vector<16x1xf32>
    %218 = vector.broadcast %217 : vector<16x1xf32> to vector<16x512xf32>
    %219 = arith.addf %215, %218 : vector<16x512xf32>
    %220 = vector.extract_strided_slice %219 {offsets = [0, 0], sizes = [8, 512], strides = [1, 1]} : vector<16x512xf32> to vector<8x512xf32>
    %221 = arith.negf %220 : vector<8x512xf32>
    %222 = math.exp %221 : vector<8x512xf32>
    %cst_169 = arith.constant 1.000000e+00 : f32
    %223 = vector.broadcast %cst_169 : f32 to vector<8x512xf32>
    %224 = arith.addf %223, %222 : vector<8x512xf32>
    %225 = arith.divf %223, %224 : vector<8x512xf32>
    %226 = vector.extract_strided_slice %219 {offsets = [8, 0], sizes = [8, 512], strides = [1, 1]} : vector<16x512xf32> to vector<8x512xf32>
    %227 = math.tanh %226 : vector<8x512xf32>
    %228 = arith.mulf %225, %227 : vector<8x512xf32>
    %c3_170 = arith.constant 3 : index
    %c0_171 = arith.constant 0 : index
    %c0_172 = arith.constant 0 : index
    %229 = vector.load %arg18[%c3_170, %c0_171, %c0_172] : memref<4x16x8xf32, #tpu.memory_space<vmem>>, vector<1x16x8xf32>
    %230 = vector.shape_cast %229 : vector<1x16x8xf32> to vector<16x8xf32>
    %cst_173 = arith.constant dense<0.000000e+00> : vector<16x512xf32>
    %231 = tpu.matmul %230, %228, %cst_173 {dimension_numbers = #tpu.dot_dimension_numbers<[1], [0], [0], [1], [0, 0, 1, 1], [], []>} : vector<16x8xf32>, vector<8x512xf32>, vector<16x512xf32> -> vector<16x512xf32>
    %c3_174 = arith.constant 3 : index
    %c0_175 = arith.constant 0 : index
    %c0_176 = arith.constant 0 : index
    %232 = vector.load %arg19[%c3_174, %c0_175, %c0_176] : memref<4x16x1xf32, #tpu.memory_space<vmem>>, vector<1x16x1xf32>
    %233 = vector.shape_cast %232 : vector<1x16x1xf32> to vector<16x1xf32>
    %234 = vector.broadcast %233 : vector<16x1xf32> to vector<16x512xf32>
    %235 = arith.addf %231, %234 : vector<16x512xf32>
    %236 = vector.extract_strided_slice %235 {offsets = [8, 0], sizes = [8, 512], strides = [1, 1]} : vector<16x512xf32> to vector<8x512xf32>
    %237 = arith.addf %203, %236 : vector<8x512xf32>
    %cst_177 = arith.constant 5.000000e-01 : f32
    %238 = vector.broadcast %cst_177 : f32 to vector<8x512xf32>
    %239 = arith.mulf %237, %238 : vector<8x512xf32>
    %c0_178 = arith.constant 0 : index
    %c0_179 = arith.constant 0 : index
    %240 = vector.load %arg20[%c0_178, %c0_179] : memref<8x8xf32, #tpu.memory_space<vmem>>, vector<8x8xf32>
    %cst_180 = arith.constant dense<0.000000e+00> : vector<8x512xf32>
    %241 = tpu.matmul %240, %239, %cst_180 {dimension_numbers = #tpu.dot_dimension_numbers<[1], [0], [0], [1], [0, 0, 1, 1], [], []>} : vector<8x8xf32>, vector<8x512xf32>, vector<8x512xf32> -> vector<8x512xf32>
    %c0_181 = arith.constant 0 : index
    %c0_182 = arith.constant 0 : index
    %242 = vector.load %arg21[%c0_181, %c0_182] : memref<8x1xf32, #tpu.memory_space<vmem>>, vector<8x1xf32>
    %243 = vector.broadcast %242 : vector<8x1xf32> to vector<8x512xf32>
    %244 = arith.addf %241, %243 : vector<8x512xf32>
    %cst_183 = arith.constant 0.000000e+00 : f32
    %245 = vector.broadcast %cst_183 : f32 to vector<8x512xf32>
    %246 = arith.maximumf %244, %245 : vector<8x512xf32>
    %c0_184 = arith.constant 0 : index
    %c0_185 = arith.constant 0 : index
    %247 = vector.load %arg22[%c0_184, %c0_185] : memref<1x8xf32, #tpu.memory_space<vmem>>, vector<1x8xf32>
    %cst_186 = arith.constant dense<0.000000e+00> : vector<1x512xf32>
    %248 = tpu.matmul %247, %246, %cst_186 {dimension_numbers = #tpu.dot_dimension_numbers<[1], [0], [0], [1], [0, 0, 1, 1], [], []>} : vector<1x8xf32>, vector<8x512xf32>, vector<1x512xf32> -> vector<1x512xf32>
    %c0_187 = arith.constant 0 : index
    %c0_188 = arith.constant 0 : index
    %249 = vector.load %arg23[%c0_187, %c0_188] : memref<1x1xf32, #tpu.memory_space<vmem>>, vector<1x1xf32>
    %250 = vector.broadcast %249 : vector<1x1xf32> to vector<1x512xf32>
    %251 = arith.addf %248, %250 : vector<1x512xf32>
    %c0_189 = arith.constant 0 : index
    %c0_190 = arith.constant 0 : index
    %c0_191 = arith.constant 0 : index
    %252 = vector.load %arg24[%c0_189, %c0_190, %c0_191] : memref<1x1x512xf32, #tpu.memory_space<vmem>>, vector<1x1x512xf32>
    %253 = vector.shape_cast %252 : vector<1x1x512xf32> to vector<1x512xf32>
    %254 = vector.shape_cast %251 : vector<1x512xf32> to vector<1x1x512xf32>
    tpu.vector_store %arg24[%c0_189, %c0_190, %c0_191], %254 {strides = array<i32>} : memref<1x1x512xf32, #tpu.memory_space<vmem>>, vector<1x1x512xf32>,
    return
  }
  func.func @transform_0(%arg0: i32) -> (i32, i32, i32) {
    %c0_i32 = arith.constant 0 : i32
    %c0_i32_0 = arith.constant 0 : i32
    %c0_i32_1 = arith.constant 0 : i32
    return %arg0, %c0_i32, %c0_i32_0 : i32, i32, i32
  }
  func.func @transform_1(%arg0: i32) -> (i32, i32, i32) {
    %c0_i32 = arith.constant 0 : i32
    %c0_i32_0 = arith.constant 0 : i32
    %c0_i32_1 = arith.constant 0 : i32
    return %arg0, %c0_i32, %c0_i32_0 : i32, i32, i32
  }
  func.func @transform_2(%arg0: i32) -> (i32, i32, i32) {
    %c0_i32 = arith.constant 0 : i32
    %c0_i32_0 = arith.constant 0 : i32
    %c0_i32_1 = arith.constant 0 : i32
    return %arg0, %c0_i32, %c0_i32_0 : i32, i32, i32
  }
  func.func @transform_3(%arg0: i32) -> (i32, i32) {
    %c0_i32 = arith.constant 0 : i32
    %c0_i32_0 = arith.constant 0 : i32
    %c0_i32_1 = arith.constant 0 : i32
    return %c0_i32, %c0_i32_0 : i32, i32
  }
  func.func @transform_4(%arg0: i32) -> (i32, i32) {
    %c0_i32 = arith.constant 0 : i32
    %c0_i32_0 = arith.constant 0 : i32
    %c0_i32_1 = arith.constant 0 : i32
    return %c0_i32, %c0_i32_0 : i32, i32
  }
  func.func @transform_5(%arg0: i32) -> (i32, i32) {
    %c0_i32 = arith.constant 0 : i32
    %c0_i32_0 = arith.constant 0 : i32
    %c0_i32_1 = arith.constant 0 : i32
    return %c0_i32, %c0_i32_0 : i32, i32
  }
  func.func @transform_6(%arg0: i32) -> (i32, i32) {
    %c0_i32 = arith.constant 0 : i32
    %c0_i32_0 = arith.constant 0 : i32
    %c0_i32_1 = arith.constant 0 : i32
    return %c0_i32, %c0_i32_0 : i32, i32
  }
  func.func @transform_7(%arg0: i32) -> (i32, i32) {
    %c0_i32 = arith.constant 0 : i32
    %c0_i32_0 = arith.constant 0 : i32
    %c0_i32_1 = arith.constant 0 : i32
    return %c0_i32, %c0_i32_0 : i32, i32
  }
  func.func @transform_8(%arg0: i32) -> (i32, i32) {
    %c0_i32 = arith.constant 0 : i32
    %c0_i32_0 = arith.constant 0 : i32
    %c0_i32_1 = arith.constant 0 : i32
    return %c0_i32, %c0_i32_0 : i32, i32
  }
  func.func @transform_9(%arg0: i32) -> (i32, i32, i32) {
    %c0_i32 = arith.constant 0 : i32
    %c0_i32_0 = arith.constant 0 : i32
    %c0_i32_1 = arith.constant 0 : i32
    %c0_i32_2 = arith.constant 0 : i32
    return %c0_i32, %c0_i32_0, %c0_i32_1 : i32, i32, i32
  }
  func.func @transform_10(%arg0: i32) -> (i32, i32, i32) {
    %c0_i32 = arith.constant 0 : i32
    %c0_i32_0 = arith.constant 0 : i32
    %c0_i32_1 = arith.constant 0 : i32
    %c0_i32_2 = arith.constant 0 : i32
    return %c0_i32, %c0_i32_0, %c0_i32_1 : i32, i32, i32
  }
  func.func @transform_11(%arg0: i32) -> (i32, i32) {
    %c0_i32 = arith.constant 0 : i32
    %c0_i32_0 = arith.constant 0 : i32
    %c0_i32_1 = arith.constant 0 : i32
    return %c0_i32, %c0_i32_0 : i32, i32
  }
  func.func @transform_12(%arg0: i32) -> (i32, i32, i32) {
    %c0_i32 = arith.constant 0 : i32
    %c0_i32_0 = arith.constant 0 : i32
    %c0_i32_1 = arith.constant 0 : i32
    %c0_i32_2 = arith.constant 0 : i32
    return %c0_i32, %c0_i32_0, %c0_i32_1 : i32, i32, i32
  }
  func.func @transform_13(%arg0: i32) -> (i32, i32) {
    %c0_i32 = arith.constant 0 : i32
    %c0_i32_0 = arith.constant 0 : i32
    %c0_i32_1 = arith.constant 0 : i32
    return %c0_i32, %c0_i32_0 : i32, i32
  }
  func.func @transform_14(%arg0: i32) -> (i32, i32) {
    %c0_i32 = arith.constant 0 : i32
    %c0_i32_0 = arith.constant 0 : i32
    %c0_i32_1 = arith.constant 0 : i32
    return %c0_i32, %c0_i32_0 : i32, i32
  }
  func.func @transform_15(%arg0: i32) -> (i32, i32, i32) {
    %c0_i32 = arith.constant 0 : i32
    %c0_i32_0 = arith.constant 0 : i32
    %c0_i32_1 = arith.constant 0 : i32
    %c0_i32_2 = arith.constant 0 : i32
    return %c0_i32, %c0_i32_0, %c0_i32_1 : i32, i32, i32
  }
  func.func @transform_16(%arg0: i32) -> (i32, i32, i32) {
    %c0_i32 = arith.constant 0 : i32
    %c0_i32_0 = arith.constant 0 : i32
    %c0_i32_1 = arith.constant 0 : i32
    %c0_i32_2 = arith.constant 0 : i32
    return %c0_i32, %c0_i32_0, %c0_i32_1 : i32, i32, i32
  }
  func.func @transform_17(%arg0: i32) -> (i32, i32, i32) {
    %c0_i32 = arith.constant 0 : i32
    %c0_i32_0 = arith.constant 0 : i32
    %c0_i32_1 = arith.constant 0 : i32
    %c0_i32_2 = arith.constant 0 : i32
    return %c0_i32, %c0_i32_0, %c0_i32_1 : i32, i32, i32
  }
  func.func @transform_18(%arg0: i32) -> (i32, i32, i32) {
    %c0_i32 = arith.constant 0 : i32
    %c0_i32_0 = arith.constant 0 : i32
    %c0_i32_1 = arith.constant 0 : i32
    %c0_i32_2 = arith.constant 0 : i32
    return %c0_i32, %c0_i32_0, %c0_i32_1 : i32, i32, i32
  }
  func.func @transform_19(%arg0: i32) -> (i32, i32) {
    %c0_i32 = arith.constant 0 : i32
    %c0_i32_0 = arith.constant 0 : i32
    %c0_i32_1 = arith.constant 0 : i32
    return %c0_i32, %c0_i32_0 : i32, i32
  }
  func.func @transform_20(%arg0: i32) -> (i32, i32) {
    %c0_i32 = arith.constant 0 : i32
    %c0_i32_0 = arith.constant 0 : i32
    %c0_i32_1 = arith.constant 0 : i32
    return %c0_i32, %c0_i32_0 : i32, i32
  }
  func.func @transform_21(%arg0: i32) -> (i32, i32) {
    %c0_i32 = arith.constant 0 : i32
    %c0_i32_0 = arith.constant 0 : i32
    %c0_i32_1 = arith.constant 0 : i32
    return %c0_i32, %c0_i32_0 : i32, i32
  }
  func.func @transform_22(%arg0: i32) -> (i32, i32) {
    %c0_i32 = arith.constant 0 : i32
    %c0_i32_0 = arith.constant 0 : i32
    %c0_i32_1 = arith.constant 0 : i32
    return %c0_i32, %c0_i32_0 : i32, i32
  }
  func.func @transform_23(%arg0: i32) -> (i32, i32, i32) {
    %c0_i32 = arith.constant 0 : i32
    %c0_i32_0 = arith.constant 0 : i32
    %c0_i32_1 = arith.constant 0 : i32
    return %arg0, %c0_i32, %c0_i32_0 : i32, i32, i32
  }
}

</mosaic_0001>

<bundles_post_ra>
// kernel: tpu_custom_call.1
= control target key start
LH: loop header
LB: loop body
LE: loop exit
PB: predicated region body
PF: predicated region fallthrough
CT: control target
= control target key end

     0   :  { %s7364_s0 = inlined_call_operand.vmem [shape: f32[2,1,512], index: 0, kind: input, shape index: {}]   ;;  %s7365_s1 = inlined_call_operand.vmem [shape: f32[2,1,128], index: 1, kind: input, shape index: {}]   ;;  %s7366_s2 = inlined_call_operand.vmem [shape: f32[2,8,8], index: 2, kind: input, shape index: {}]   ;;  %s7367_s3 = inlined_call_operand.hbm [shape: f32[128,512], index: 3, kind: input, shape index: {}]   ;;  %s7368_s4 = inlined_call_operand.vmem [shape: f32[1,512], index: 4, kind: input, shape index: {}]   ;;  %s7369_s5 = inlined_call_operand.hbm [shape: f32[512,512], index: 5, kind: input, shape index: {}]   ;;  %s7370_s6 = inlined_call_operand.vmem [shape: f32[1,512], index: 6, kind: input, shape index: {}]   ;;  %s7371_s7 = inlined_call_operand.vmem [shape: f32[32,512], index: 7, kind: input, shape index: {}]   ;;  %s7372_s8 = inlined_call_operand.vmem [shape: f32[32,1], index: 8, kind: input, shape index: {}]   ;;  %s7373_s9 = inlined_call_operand.vmem [shape: f32[3,8,32], index: 9, kind: input, shape index: {}]   ;;  %s7374_s10 = inlined_call_operand.hbm [shape: f32[3,32,512], index: 10, kind: input, shape index: {}]   ;;  %s7375_s11 = inlined_call_operand.vmem [shape: f32[1,2], index: 11, kind: input, shape index: {}]   ;;  %s7376_s12 = inlined_call_operand.vmem [shape: f32[2,8,8], index: 12, kind: input, shape index: {}]   ;;  %s7377_s13 = inlined_call_operand.vmem [shape: f32[8,1], index: 13, kind: input, shape index: {}]   ;;  %s7378_s14 = inlined_call_operand.vmem [shape: f32[8,1], index: 14, kind: input, shape index: {}]   ;;  %s7379_s15 = inlined_call_operand.vmem [shape: f32[4,16,32], index: 15, kind: input, shape index: {}]   ;;  %s7380_s16 = inlined_call_operand.vmem [shape: f32[4,16,1], index: 16, kind: input, shape index: {}]   ;;  %s7381_s17 = inlined_call_operand.vmem [shape: f32[4,16,8], index: 17, kind: input, shape index: {}]   ;;  %s7382_s18 = inlined_call_operand.vmem [shape: f32[4,16,1], index: 18, kind: input, shape index: {}]   ;;  %s7383_s19 = inlined_call_operand.vmem [shape: f32[8,8], index: 19, kind: input, shape index: {}]   ;;  %s7384_s20 = inlined_call_operand.vmem [shape: f32[8,1], index: 20, kind: input, shape index: {}]   ;;  %s7385_s21 = inlined_call_operand.vmem [shape: f32[1,8], index: 21, kind: input, shape index: {}]   ;;  %s7386_s22 = inlined_call_operand.<no memory space> [shape: f32[1,1], index: 22, kind: input, shape index: {}]   ;;  %s7387_s23 = inlined_call_operand.hbm [shape: f32[2,1,512], index: 23, kind: output, shape index: {}]  }
   0x1   :  { %7404 = sst [smem:[#allocation22_spill]] %s7364_s0  ;;  %v28_v0 = vstv %s7386_s22 }
   0x2   :  { %7405 = sst [smem:[#allocation23_spill]] %s7365_s1  ;;  %29 = vst [vmem:[#allocation3] sm:$0x1] %v28_v0 }
   0x3   :  { %7406 = sst [smem:[#allocation24_spill]] %s7366_s2 }
   0x4   :  { %7407 = sst [smem:[#allocation25_spill]] %s7367_s3 }
   0x5   :  { %7408 = sst [smem:[#allocation26_spill]] %s7368_s4 }
   0x6   :  { %7409 = sst [smem:[#allocation27_spill]] %s7369_s5 }
   0x7   :  { %7410 = sst [smem:[#allocation28_spill]] %s7370_s6 }
   0x8   :  { %7411 = sst [smem:[#allocation29_spill]] %s7371_s7 }
   0x9   :  { %7412 = sst [smem:[#allocation30_spill]] %s7383_s19 }
   0xa   :  { %7413 = sst [smem:[#allocation31_spill]] %s7384_s20 }
   0xb   :  { %7414 = sst [smem:[#allocation32_spill]] %s7385_s21 }
   0xc   :  { %7415 = sst [smem:[#allocation33_spill]] %s7387_s23 }
   0xd   :  { %30 = vsyncpa [#allocation5], 0 }
   0xe   :  { %31 = vsyncpa [#allocation8], 0 }
   0xf   :  { %32 = vsyncpa [#allocation6], 0 }
  0x10   :  { %34 = vsyncpa [#allocation6 + $0x1], 0  ;;  %s6564_s24 = smov 0   ;;  %s6566_s25 = smov 0  }
  0x11   :  { %s6568_s5 = smov 0   ;;  %s6570_s1 = smov 0  }
  0x12 LB: > { %7416 = sst [smem:[#allocation14_spill]] %s6412_s24  ;;  %s6585_s22 = sadd.s32 4294967295, %s6424_s1   ;;  %s6424_s1 = sphi %s6570_s1, %s7453_s1   ;;  %s6420_s5 = sphi %s6568_s5, %s7456_s5   ;;  %s6416_s25 = sphi %s6566_s25, %s7455_s25   ;;  %s6412_s24 = sphi %s6564_s24, %s7454_s24  }
  0x13   : > { %7417 = sst [smem:[#allocation15_spill]] %s6416_s25  ;;  %s5344_s26 = sadd.s32 4294967294, %s6424_s1  }
  0x14   : > { %7418 = sst [smem:[#allocation16_spill]] %s6420_s5  ;;  %s6589_s2 = sadd.s32 1, %s6424_s1  }
  0x15   : > { %7419 = sst [smem:[#allocation17_spill]] %s6424_s1  ;;  %s545_s6 = sadd.s32 1, %s6420_s5 }
  0x16   : > { %7420 = sst [smem:[#allocation18_spill]] %s6589_s2  ;;  %s542_s27 = ssub.s32 %s6424_s1, %s6589_s2 }
  0x17   : > { %p555_p0 = scmp.ne.s32.totalorder %s6420_s5, %s6416_s25  ;;  %p543_p1 = scmp.eq.s32.totalorder %s542_s27, 0 }
  0x18   : > { %p556_p2 = scmp.eq.s32.totalorder %s6585_s22, 1  ;;  %p561_p3 = scmp.ne.s32.totalorder %s6416_s25, %s6412_s24 }
  0x19   : > { %p562_p4 = scmp.eq.s32.totalorder %s5344_s26, 1  ;;  %p5345_p7 = scmp.ge.s32.totalorder %s6424_s1, 1 }
  0x1a   : > { %s6600_s7 = scalar_select %p543_p1, %s6420_s5, %s545_s6  }
  0x1b   : > { %p6602_p5 = por %p556_p2, %p555_p0  ;;  %p6606_p6 = por %p562_p4, %p561_p3 }
  0x1c   : > { %7421 = sst [smem:[#allocation19_spill]] %s6600_s7  ;;  %p569_p8 = scmp.lt.s32.totalorder %s6424_s1, 3 }
  0x1d   : > { %s7422_s28 = scalar_select %p6602_p5, 1, 0 }
  0x1e   : > { %s7424_s29 = scalar_select %p6606_p6, 1, 0 }
  0x1f   : > { %7423 = sst [smem:[#allocation20_spill]] %s7422_s28  ;;  %p7398_p9 = scmp.eq.s32.totalorder %s6585_s22, 0 }
  0x20   : > { %7425 = sst [smem:[#allocation21_spill]] %s7424_s29  ;;  %p6613_p10 = pnand %p5345_p7, %p569_p8 }
  0x21   : > { %s6426_s0 = smov [#allocation7]   ;;  %s6427_s26 = smov [#allocation4]  }
  0x22   : > { %s7426_s3 = scalar_select %p6613_p10, 1, 0 }
  0x23   : > { %p5991_p11 = pneg %p6613_p10  ;;  %s597_s4 = sshll.u32 %s6426_s0, 4  ;;  %s6619_s4 = int_to_ptr.vmem [resolvable:$true] %s597_s4 }
  0x24   : > { %s581_s6 = sshll.u32 %s6427_s26, 4  ;;  %s6428_s27 = smov [#allocation9]   ;;  %s6627_s6 = int_to_ptr.vmem [resolvable:$true] %s581_s6 }
  0x25   : > { %p6623_p12 = pnand %p7398_p9, %p5991_p11  ;;  %s6629_s7 = sshll.u32 %s6428_s27, 4  ;;  %s623_s7 = int_to_ptr.vmem [resolvable:$true] %s6629_s7 }
  0x26   : > { %s7428_s29 = sld [smem:[#allocation27_spill]] }
  0x27   : > { %p6639_p0 = pneg %p6623_p12 }
  0x2c   : > { %s6270_s24 = scalar_lea.hbm %s7428_s29, 32768 }
  0x2d   : > { %p6271_p13 = scmp.ne.s32.totalorder %s7428_s29, %s6270_s24  ;;  %p6277_p3 = scmp.lt.u32.totalorder %s6270_s24, %s7428_s29 }
  0x2f   : > { %p6273_p1 = pnand %p6639_p0, %p6271_p13 }
  0x31   : > { %p6274_p2 = pneg %p6273_p1 }
  0x33   : > { %p6279_p4 = pnand %p6277_p3, %p6274_p2 }
  0x35   : > { %6282 = shalt.err (!%p6279_p4)
}
  0x36   : > { %s6283_s5 = scalar_lea.vmem %s6619_s4, 32768  ;;  %p6291_p9 = scmp.lt.s32.totalorder %s6619_s4, %s6619_s4 }
  0x37   : > { %p6284_p7 = scmp.ne.s32.totalorder %s6619_s4, %s6283_s5  ;;  %p6292_p6 = scmp.lt.s32.totalorder %s6283_s5, %s6283_s5 }
  0x39   : > { %p6286_p8 = pnand %p6284_p7, %p6639_p0  ;;  %p6293_p13 = por %p6292_p6, %p6291_p9 }
  0x3b   : > { %p6287_p11 = pneg %p6286_p8 }
  0x3d   : > { %p6294_p1 = pnand %p6293_p13, %p6287_p11 }
  0x3f   : > { %6297 = shalt.err (!%p6294_p1)
}
  0x40   : > { %s6429_s1 = smov 512   ;;  %s6430_s24 = smov 32  }
  0x41   : > { %5997 = dma.hbm_to_vmem [thread:$0]  (!%p6623_p12), %s7428_s29, 32768, %s6619_s4, [#allocation8], %s6429_s1, %s6429_s1, %s6430_s24  }
  0x42   : > { %s7430_s28 = sld [smem:[#allocation25_spill]] }
  0x48   : > { %s6298_s5 = scalar_lea.hbm %s7430_s28, 8192 }
  0x49   : > { %p6299_p6 = scmp.ne.s32.totalorder %s7430_s28, %s6298_s5  ;;  %p6305_p3 = scmp.lt.u32.totalorder %s6298_s5, %s7430_s28 }
  0x4b   : > { %p6301_p9 = pnand %p6299_p6, %p6639_p0 }
  0x4d   : > { %p6302_p2 = pneg %p6301_p9 }
  0x4f   : > { %p6307_p4 = pnand %p6305_p3, %p6302_p2 }
  0x51   : > { %6310 = shalt.err (!%p6307_p4)
}
  0x52   : > { %s6311_s4 = scalar_lea.vmem %s6627_s6, 8192  ;;  %p6319_p13 = scmp.lt.s32.totalorder %s6627_s6, %s6627_s6 }
  0x53   : > { %p6312_p7 = scmp.ne.s32.totalorder %s6627_s6, %s6311_s4  ;;  %p6320_p1 = scmp.lt.s32.totalorder %s6311_s4, %s6311_s4 }
  0x55   : > { %p6314_p8 = pnand %p6312_p7, %p6639_p0  ;;  %p6321_p6 = por %p6320_p1, %p6319_p13 }
  0x57   : > { %p6315_p11 = pneg %p6314_p8 }
  0x59   : > { %p6322_p9 = pnand %p6321_p6, %p6315_p11 }
  0x5b   : > { %6325 = shalt.err (!%p6322_p9)
}
  0x5c   : > { %5994 = dma.hbm_to_vmem [thread:$0]  (!%p6623_p12), %s7430_s28, 8192, %s6627_s6, [#allocation5], %s6429_s1, %s6429_s1, %s6430_s24  }
  0x5d   : > { %s6326_s2 = scalar_lea.hbm %s7374_s10, 6144 }
  0x5e   : > { %p6327_p2 = scmp.ne.s32.totalorder %s7374_s10, %s6326_s2  ;;  %p6333_p7 = scmp.lt.u32.totalorder %s6326_s2, %s7374_s10 }
  0x60   : > { %p6329_p3 = pnand %p6327_p2, %p6639_p0 }
  0x62   : > { %p6330_p4 = pneg %p6329_p3 }
  0x64   : > { %p6335_p8 = pnand %p6333_p7, %p6330_p4 }
  0x66   : > { %6338 = shalt.err (!%p6335_p8)
}
  0x67   : > { %s6339_s4 = scalar_lea.vmem %s623_s7, 6144  ;;  %p6347_p6 = scmp.lt.s32.totalorder %s623_s7, %s623_s7 }
  0x68   : > { %p6340_p11 = scmp.ne.s32.totalorder %s623_s7, %s6339_s4  ;;  %p6348_p9 = scmp.lt.s32.totalorder %s6339_s4, %s6339_s4 }
  0x6a   : > { %p6342_p13 = pnand %p6340_p11, %p6639_p0  ;;  %p6349_p5 = por %p6348_p9, %p6347_p6 }
  0x6c   : > { %p6343_p1 = pneg %p6342_p13 }
  0x6e   : > { %p6350_p10 = pnand %p6349_p5, %p6343_p1 }
  0x70   : > { %6353 = shalt.err (!%p6350_p10)
}
  0x71   : > { %6000 = dma.hbm_to_vmem [thread:$0]  (!%p6623_p12), %s7374_s10, 6144, %s623_s7, [#allocation8], %s6429_s1, %s6429_s1, %s6430_s24  }
  0x72   : > { %p7431_p2 = scmp.ne.s32.totalorder %s7426_s3, 0 }
  0x73   : > { %p7432_p0 = scmp.eq.s32.totalorder (!%p7431_p2), %s6585_s22, 0 }
  0x74   : > { %694 = sbr.rel (%p7431_p2) target bundleno = 4097 (0x1001), region = 112 }
  0x7b   : > { %6399 = dma.done.wait (%p7432_p0), [#allocation5], 8192   ;;  %p7433_p3 = pmov %p7432_p0 }
  0x7c   : > { %p7434_p5 = pmov %p7432_p0 }
  0x7d   : > { %6401 = vsyncadd (%p7433_p3), [#allocation5], 4294959104 }
  0x7e   : > { %6403 = dma.done.wait (%p7434_p5), [#allocation8], 38912   ;;  %p7435_p10 = pmov %p7432_p0 }
  0x7f   : > { %v6431_v1 = vmov 0.0   ;;  %v785_v2 = vld [vmem:[#allocation4 + $0x8] sm:$0xff]  ;;  %v784_v4 = vld [vmem:[#allocation4] sm:$0xff]  ;;  %v787_v29 = vld [vmem:[#allocation4 + $0x18] sm:$0xff]  ;;  %p772_p12 = scmp.lt.s32.totalorder %s6585_s22, 1  ;;  %s7436_s30 = sld [smem:[#allocation23_spill]] }
  0x80   : > { %6405 = vsyncadd (%p7435_p10), [#allocation8], 4294928384  ;;  %934 = vmatprep.mubr.f32.mxu0 %v6431_v1  ;;  %1005 = vmatprep.mubr.f32.mxu1 %v6431_v1  ;;  %v789_v3 = vld [vmem:[#allocation4 + $0x28] sm:$0xff]  ;;  %v788_v6 = vld [vmem:[#allocation4 + $0x20] sm:$0xff]  ;;  %s7437_s21 = sld [smem:[#allocation26_spill]]  ;;  %s7438_s5 = sld [smem:[#allocation24_spill]] }
  0x81   : > { %v5501_v5 = vpack.c.bf16 %v789_v3, %v785_v2  ;;  %v793_v7 = vld [vmem:[#allocation4 + $0x48] sm:$0xff]  ;;  %v5503_v9 = vpack.c.bf16 %v788_v6, %v784_v4  ;;  %v792_v11 = vld [vmem:[#allocation4 + $0x40] sm:$0xff]  ;;  %v791_v30 = vld [vmem:[#allocation4 + $0x38] sm:$0xff]  ;;  %s6727_s23 = scalar_select %p772_p12, %s6585_s22, 1  ;;  %vm6432_vm0 = vmmov 0   ;;  %vm1712_vm1 = vcmask 64512  }
  0x82   : > { %v797_v8 = vld [vmem:[#allocation4 + $0x68] sm:$0xff]  ;;  %v796_v12 = vld [vmem:[#allocation4 + $0x60] sm:$0xff]  ;;  %v786_v31 = vld [vmem:[#allocation4 + $0x10] sm:$0xff]  ;;  %v5533_v33 = vpack.c.bf16 %v791_v30, %v787_v29  ;;  %s7439_s26 = sld [smem:[#allocation28_spill]]  ;;  %s7440_s3 = sld [smem:[#allocation29_spill]]  ;;  %vm2105_vm2 = vcmask 261120  }
  0x83   : > { %v5505_v10 = vpack.c.bf16 %v797_v8, %v793_v7  ;;  %v801_v13 = vld [vmem:[#allocation4 + $0x88] sm:$0xff]  ;;  %5502 = vmatprep.subr.bf16.mxu0 %v5501_v5  ;;  %v5507_v15 = vpack.c.bf16 %v796_v12, %v792_v11  ;;  %v800_v17 = vld [vmem:[#allocation4 + $0x80] sm:$0xff]  ;;  %v790_v34 = vld [vmem:[#allocation4 + $0x30] sm:$0xff]  ;;  %s5356_s25 = sshll.u32 %s6727_s23, 3  ;;  %s6435_s24 = smov 1   ;;  %vm2991_vm3 = vcmask 1039360  }
  0x84   : > { %v805_v14 = vld [vmem:[#allocation4 + $0xa8] sm:$0xff]  ;;  %5504 = vmatpush1.bf16.msra.mxu0 %v5503_v9  ;;  %v804_v18 = vld [vmem:[#allocation4 + $0xa0] sm:$0xff]  ;;  %v795_v35 = vld [vmem:[#allocation4 + $0x58] sm:$0xff]  ;;  %v5535_v38 = vpack.c.bf16 %v790_v34, %v786_v31  ;;  %5534 = vmatprep.subr.bf16.mxu1 %v5533_v33  ;;  %s5355_s20 = sshll.u32 %s6727_s23, 2  ;;  %s7441_s2 = sld [smem:[#allocation22_spill]]  ;;  %vm2958_vm4 = vcmask 7168  }
  0x85   : > { %5506 = vmatprep.subr.bf16.mxu0 %v5505_v10  ;;  %v5509_v16 = vpack.c.bf16 %v805_v14, %v801_v13  ;;  %v809_v19 = vld [vmem:[#allocation4 + $0xc8] sm:$0xff]  ;;  %v5511_v21 = vpack.c.bf16 %v804_v18, %v800_v17  ;;  %v808_v23 = vld [vmem:[#allocation4 + $0xc0] sm:$0xff]  ;;  %v799_v36 = vld [vmem:[#allocation4 + $0x78] sm:$0xff]  ;;  %s778_s1 = scalar_lea.vmem %s7436_s30, %s6727_s23  ;;  %s6436_s23 = smov 127   ;;  %vm3445_vm5 = vcmask 15360   ;;  %vm3478_vm6 = vcmask 1031168  }
  0x86   : > { %v813_v20 = vld [vmem:[#allocation4 + $0xe8] sm:$0xff]  ;;  %v812_v24 = vld [vmem:[#allocation4 + $0xe0] sm:$0xff]  ;;  %v5537_v39 = vpack.c.bf16 %v799_v36, %v795_v35  ;;  %v794_v40 = vld [vmem:[#allocation4 + $0x50] sm:$0xff]  ;;  %5536 = vmatpush1.bf16.msra.mxu1 %v5535_v38  ;;  %s782_s4 = scalar_lea.vmem %s7438_s5, %s5356_s25  ;;  %s7443_s6 = sld [smem:[#allocation30_spill]] }
  0x87   : > { %v5513_v22 = vpack.c.bf16 %v813_v20, %v809_v19  ;;  %v817_v25 = vld [vmem:[#allocation4 + $0x108] sm:$0xff]  ;;  %v816_v27 = vld [vmem:[#allocation4 + $0x100] sm:$0xff]  ;;  %v5515_v32 = vpack.c.bf16 %v812_v24, %v808_v23  ;;  %v798_v41 = vld [vmem:[#allocation4 + $0x70] sm:$0xff]  ;;  %s7444_s19 = sld [smem:[#allocation15_spill]]  ;;  %s5465_s25 = sshll.u32 %s6585_s22, 6 }
  0x88   : > { %5508 = vmatpush1.bf16.msra.mxu0 %v5507_v15  ;;  %v821_v26 = vld [vmem:[#allocation4 + $0x128] sm:$0xff]  ;;  %v820_v28 = vld [vmem:[#allocation4 + $0x120] sm:$0xff]  ;;  %v803_v42 = vld [vmem:[#allocation4 + $0x98] sm:$0xff]  ;;  %v5539_v46 = vpack.c.bf16 %v798_v41, %v794_v40  ;;  %5538 = vmatprep.subr.bf16.mxu1 %v5537_v39  ;;  %s7447_s27 = sld [smem:[#allocation33_spill]]  ;;  %s6440_s22 = smov [#allocation10]  }
  0x89   : > { %5510 = vmatprep.subr.bf16.mxu0 %v5509_v16  ;;  %v5517_v37 = vpack.c.bf16 %v821_v26, %v817_v25  ;;  %v825_v43 = vld [vmem:[#allocation4 + $0x148] sm:$0xff]  ;;  %v807_v45 = vld [vmem:[#allocation4 + $0xb8] sm:$0xff]  ;;  %v5519_v47 = vpack.c.bf16 %v820_v28, %v816_v27  ;;  %v824_v48 = vld [vmem:[#allocation4 + $0x140] sm:$0xff] }
  0x8a   : > { %v829_v44 = vld [vmem:[#allocation4 + $0x168] sm:$0xff]  ;;  %v5541_v49 = vpack.c.bf16 %v807_v45, %v803_v42  ;;  %v802_v50 = vld [vmem:[#allocation4 + $0x90] sm:$0xff]  ;;  %v828_v53 = vld [vmem:[#allocation4 + $0x160] sm:$0xff]  ;;  %5540 = vmatpush1.bf16.msra.mxu1 %v5539_v46  ;;  %s775_s0 = scalar_lea.vmem %s7441_s2, %s5355_s20 }
  0x8b   : > { %v806_v51 = vld [vmem:[#allocation4 + $0xb0] sm:$0xff]  ;;  %v5521_v52 = vpack.c.bf16 %v829_v44, %v825_v43  ;;  %v811_v54 = vld [vmem:[#allocation4 + $0xd8] sm:$0xff]  ;;  %v833_v56 = vld [vmem:[#allocation4 + $0x188] sm:$0xff]  ;;  %v5523_v59 = vpack.c.bf16 %v828_v53, %v824_v48 }
  0x8c   : > { %5512 = vmatpush1.bf16.msra.mxu0 %v5511_v21  ;;  %v815_v55 = vld [vmem:[#allocation4 + $0xf8] sm:$0xff]  ;;  %v837_v57 = vld [vmem:[#allocation4 + $0x1a8] sm:$0xff]  ;;  %v5543_v58 = vpack.c.bf16 %v806_v51, %v802_v50  ;;  %v832_v60 = vld [vmem:[#allocation4 + $0x180] sm:$0xff]  ;;  %5542 = vmatprep.subr.bf16.mxu1 %v5541_v49 }
  0x8d   : > { %5514 = vmatprep.subr.bf16.mxu0 %v5513_v22  ;;  %v5545_v61 = vpack.c.bf16 %v815_v55, %v811_v54  ;;  %v810_v62 = vld [vmem:[#allocation4 + $0xd0] sm:$0xff]  ;;  %v5525_v0 = vpack.c.bf16 %v837_v57, %v833_v56  ;;  %v836_v2 = vld [vmem:[#allocation4 + $0x1a0] sm:$0xff]  ;;  %v819_v3 = vld [vmem:[#allocation4 + $0x118] sm:$0xff] }
  0x8e   : > { %v814_v63 = vld [vmem:[#allocation4 + $0xf0] sm:$0xff]  ;;  %v823_v4 = vld [vmem:[#allocation4 + $0x138] sm:$0xff]  ;;  %v841_v5 = vld [vmem:[#allocation4 + $0x1c8] sm:$0xff]  ;;  %5544 = vmatpush1.bf16.msra.mxu1 %v5543_v58  ;;  %v5527_v8 = vpack.c.bf16 %v836_v2, %v832_v60 }
  0x8f   : > { %v845_v6 = vld [vmem:[#allocation4 + $0x1e8] sm:$0xff]  ;;  %v5547_v7 = vpack.c.bf16 %v814_v63, %v810_v62  ;;  %v840_v9 = vld [vmem:[#allocation4 + $0x1c0] sm:$0xff]  ;;  %5546 = vmatprep.subr.bf16.mxu1 %v5545_v61  ;;  %v5549_v10 = vpack.c.bf16 %v823_v4, %v819_v3  ;;  %v818_v11 = vld [vmem:[#allocation4 + $0x110] sm:$0xff] }
  0x90   : > { %5516 = vmatpush1.bf16.msra.mxu0 %v5515_v32  ;;  %v822_v12 = vld [vmem:[#allocation4 + $0x130] sm:$0xff]  ;;  %v5529_v13 = vpack.c.bf16 %v845_v6, %v841_v5  ;;  %v844_v14 = vld [vmem:[#allocation4 + $0x1e0] sm:$0xff]  ;;  %v827_v15 = vld [vmem:[#allocation4 + $0x158] sm:$0xff] }
  0x91   : > { %5518 = vmatprep.subr.bf16.mxu0 %v5517_v37  ;;  %v831_v16 = vld [vmem:[#allocation4 + $0x178] sm:$0xff]  ;;  %v1041_v17 = vld [vmem:[#allocation7 + $0x8] sm:$0xff]  ;;  %v5551_v19 = vpack.c.bf16 %v822_v12, %v818_v11  ;;  %v5531_v20 = vpack.c.bf16 %v844_v14, %v840_v9  ;;  %v826_v22 = vld [vmem:[#allocation4 + $0x150] sm:$0xff] }
  0x92   : > { %v1045_v18 = vld [vmem:[#allocation7 + $0x28] sm:$0xff]  ;;  %5548 = vmatpush1.bf16.msra.mxu1 %v5547_v7  ;;  %v5553_v21 = vpack.c.bf16 %v831_v16, %v827_v15  ;;  %v830_v23 = vld [vmem:[#allocation4 + $0x170] sm:$0xff]  ;;  %v835_v24 = vld [vmem:[#allocation4 + $0x198] sm:$0xff] }
  0x93   : > { %5550 = vmatprep.subr.bf16.mxu1 %v5549_v10  ;;  %v839_v25 = vld [vmem:[#allocation4 + $0x1b8] sm:$0xff]  ;;  %v5565_v26 = vpack.c.bf16 %v1045_v18, %v1041_v17  ;;  %v1040_v27 = vld [vmem:[#allocation7] sm:$0xff]  ;;  %v1049_v29 = vld [vmem:[#allocation7 + $0x48] sm:$0xff]  ;;  %v5555_v32 = vpack.c.bf16 %v830_v23, %v826_v22 }
  0x94   : > { %5520 = vmatpush1.bf16.msra.mxu0 %v5519_v47  ;;  %v1044_v28 = vld [vmem:[#allocation7 + $0x20] sm:$0xff]  ;;  %v1053_v30 = vld [vmem:[#allocation7 + $0x68] sm:$0xff]  ;;  %v6733_v31 = vld [vmem:[%s778_s1] sm:$0x1]  ;;  %v5557_v33 = vpack.c.bf16 %v839_v25, %v835_v24  ;;  %s769_s1 = sand.u32 1, %s7444_s19   ;;  %s6358_s19 = sshll.u32 %s6440_s22, 4  ;;  %s6359_s19 = int_to_ptr.vmem [resolvable:$false] %s6358_s19 }
  0x95   : > { %5522 = vmatprep.subr.bf16.mxu0 %v5521_v52  ;;  %v834_v34 = vld [vmem:[#allocation4 + $0x190] sm:$0xff]  ;;  %v843_v36 = vld [vmem:[#allocation4 + $0x1d8] sm:$0xff]  ;;  %v5567_v37 = vpack.c.bf16 %v1044_v28, %v1040_v27  ;;  %v5569_v39 = vpack.c.bf16 %v1053_v30, %v1049_v29  ;;  %v1048_v40 = vld [vmem:[#allocation7 + $0x40] sm:$0xff]  ;;  %s5354_s20 = sshll.u32 %s769_s1, 2  ;;  %s5219_s5 = scalar_lea.sflag [#allocation6], %s769_s1 }
  0x96   : > { %5552 = vmatpush1.bf16.msra.mxu1 %v5551_v19  ;;  %v838_v35 = vld [vmem:[#allocation4 + $0x1b0] sm:$0xff]  ;;  %v847_v38 = vld [vmem:[#allocation4 + $0x1f8] sm:$0xff]  ;;  %v1052_v41 = vld [vmem:[#allocation7 + $0x60] sm:$0xff]  ;;  %s771_s2 = scalar_lea.vmem [#allocation10], %s5354_s20  ;;  %s6360_s7 = scalar_lea.vmem %s6359_s19, 128 }
  0x97   : > { %5554 = vmatprep.subr.bf16.mxu1 %v5553_v21  ;;  %v1057_v42 = vld [vmem:[#allocation7 + $0x88] sm:$0xff]  ;;  %v5559_v44 = vpack.c.bf16 %v838_v35, %v834_v34  ;;  %v5561_v45 = vpack.c.bf16 %v847_v38, %v843_v36  ;;  %v842_v46 = vld [vmem:[#allocation4 + $0x1d0] sm:$0xff]  ;;  %v1043_v48 = vld [vmem:[#allocation7 + $0x18] sm:$0xff]  ;;  %v5571_v49 = vpack.c.bf16 %v1052_v41, %v1048_v40 }
  0x98   : > { %5524 = vmatpush1.bf16.msra.mxu0 %v5523_v59  ;;  %v1061_v43 = vld [vmem:[#allocation7 + $0xa8] sm:$0xff]  ;;  %v846_v47 = vld [vmem:[#allocation4 + $0x1f0] sm:$0xff]  ;;  %v1047_v50 = vld [vmem:[#allocation7 + $0x38] sm:$0xff] }
  0x99   : > { %5526 = vmatprep.subr.bf16.mxu0 %v5525_v0  ;;  %v5573_v51 = vpack.c.bf16 %v1061_v43, %v1057_v42  ;;  %v1056_v52 = vld [vmem:[#allocation7 + $0x80] sm:$0xff]  ;;  %v1065_v54 = vld [vmem:[#allocation7 + $0xc8] sm:$0xff]  ;;  %v5563_v56 = vpack.c.bf16 %v846_v47, %v842_v46  ;;  %v5693_v57 = vpack.c.bf16 %v1047_v50, %v1043_v48  ;;  %v1042_v58 = vld [vmem:[#allocation7 + $0x10] sm:$0xff] }
  0x9a   : > { %5556 = vmatpush1.bf16.msra.mxu1 %v5555_v32  ;;  %v1060_v53 = vld [vmem:[#allocation7 + $0xa0] sm:$0xff]  ;;  %v1069_v55 = vld [vmem:[#allocation7 + $0xe8] sm:$0xff]  ;;  %v1046_v59 = vld [vmem:[#allocation7 + $0x30] sm:$0xff] }
  0x9b   : > { %5558 = vmatprep.subr.bf16.mxu1 %v5557_v33  ;;  %v1051_v60 = vld [vmem:[#allocation7 + $0x58] sm:$0xff]  ;;  %v5575_v61 = vpack.c.bf16 %v1060_v53, %v1056_v52  ;;  %v5577_v63 = vpack.c.bf16 %v1069_v55, %v1065_v54  ;;  %v1064_v0 = vld [vmem:[#allocation7 + $0xc0] sm:$0xff]  ;;  %v1073_v3 = vld [vmem:[#allocation7 + $0x108] sm:$0xff]  ;;  %v5695_v5 = vpack.c.bf16 %v1046_v59, %v1042_v58 }
  0x9c   : > { %5528 = vmatpush1.bf16.msra.mxu0 %v5527_v8  ;;  %v1055_v62 = vld [vmem:[#allocation7 + $0x78] sm:$0xff]  ;;  %v1068_v2 = vld [vmem:[#allocation7 + $0xe0] sm:$0xff]  ;;  %v1077_v4 = vld [vmem:[#allocation7 + $0x128] sm:$0xff] }
  0x9d   : > { %5530 = vmatprep.subr.bf16.mxu0 %v5529_v13  ;;  %v5697_v6 = vpack.c.bf16 %v1055_v62, %v1051_v60  ;;  %v1050_v7 = vld [vmem:[#allocation7 + $0x50] sm:$0xff]  ;;  %v1059_v9 = vld [vmem:[#allocation7 + $0x98] sm:$0xff]  ;;  %v5579_v10 = vpack.c.bf16 %v1068_v2, %v1064_v0  ;;  %v5581_v12 = vpack.c.bf16 %v1077_v4, %v1073_v3  ;;  %v1072_v13 = vld [vmem:[#allocation7 + $0x100] sm:$0xff] }
  0x9e   : > { %5560 = vmatpush1.bf16.msra.mxu1 %v5559_v44  ;;  %v1054_v8 = vld [vmem:[#allocation7 + $0x70] sm:$0xff]  ;;  %v1063_v11 = vld [vmem:[#allocation7 + $0xb8] sm:$0xff]  ;;  %v1076_v14 = vld [vmem:[#allocation7 + $0x120] sm:$0xff] }
  0x9f   : > { %5562 = vmatprep.subr.bf16.mxu1 %v5561_v45  ;;  %v1081_v15 = vld [vmem:[#allocation7 + $0x148] sm:$0xff]  ;;  %v5699_v17 = vpack.c.bf16 %v1054_v8, %v1050_v7  ;;  %v5701_v18 = vpack.c.bf16 %v1063_v11, %v1059_v9  ;;  %v1058_v19 = vld [vmem:[#allocation7 + $0x90] sm:$0xff]  ;;  %v1067_v21 = vld [vmem:[#allocation7 + $0xd8] sm:$0xff]  ;;  %v5583_v22 = vpack.c.bf16 %v1076_v14, %v1072_v13 }
  0xa0   : > { %5532 = vmatpush1.bf16.msra.mxu0 %v5531_v20  ;;  %v1085_v16 = vld [vmem:[#allocation7 + $0x168] sm:$0xff]  ;;  %v1062_v20 = vld [vmem:[#allocation7 + $0xb0] sm:$0xff]  ;;  %v1071_v23 = vld [vmem:[#allocation7 + $0xf8] sm:$0xff] }
  0xa1   : > { %5566 = vmatprep.subr.bf16.mxu0 %v5565_v26  ;;  %v5585_v24 = vpack.c.bf16 %v1085_v16, %v1081_v15  ;;  %v1080_v25 = vld [vmem:[#allocation7 + $0x140] sm:$0xff]  ;;  %v1089_v27 = vld [vmem:[#allocation7 + $0x188] sm:$0xff]  ;;  %v5703_v29 = vpack.c.bf16 %v1062_v20, %v1058_v19  ;;  %v5705_v30 = vpack.c.bf16 %v1071_v23, %v1067_v21  ;;  %v1070_v32 = vld [vmem:[#allocation7 + $0xf0] sm:$0xff] }
  0xa2   : > { %5564 = vmatpush1.bf16.msra.mxu1 %v5563_v56  ;;  %v1084_v26 = vld [vmem:[#allocation7 + $0x160] sm:$0xff]  ;;  %v1093_v28 = vld [vmem:[#allocation7 + $0x1a8] sm:$0xff]  ;;  %v1075_v33 = vld [vmem:[#allocation7 + $0x118] sm:$0xff] }
  0xa3   : > { %935 = vmatmul.mubr.f32.vlgmr.msra.gmra.mrb[0].mxu0 %v6733_v31  ;;  %5694 = vmatprep.subr.bf16.mxu1 %v5693_v57  ;;  %v5587_v34 = vpack.c.bf16 %v1084_v26, %v1080_v25  ;;  %v1079_v35 = vld [vmem:[#allocation7 + $0x138] sm:$0xff]  ;;  %v5589_v36 = vpack.c.bf16 %v1093_v28, %v1089_v27  ;;  %v1092_v38 = vld [vmem:[#allocation7 + $0x1a0] sm:$0xff]  ;;  %v1101_v40 = vld [vmem:[#allocation7 + $0x1e8] sm:$0xff] }
  0xa4   : > { %5568 = vmatpush1.bf16.msra.mxu0 %v5567_v37  ;;  %v1088_v37 = vld [vmem:[#allocation7 + $0x180] sm:$0xff]  ;;  %v5709_v42 = vpack.c.bf16 %v1079_v35, %v1075_v33  ;;  %v1074_v43 = vld [vmem:[#allocation7 + $0x110] sm:$0xff]  ;;  %v1083_v45 = vld [vmem:[#allocation7 + $0x158] sm:$0xff] }
  0xa5   : > { %5570 = vmatprep.subr.bf16.mxu0 %v5569_v39  ;;  %1006 = vmatmul.mubr.f32.vlgmr.msra.gmra.mrb[0].mxu1 %v6733_v31  ;;  %v1066_v31 = vld [vmem:[#allocation7 + $0xd0] sm:$0xff]  ;;  %v1097_v39 = vld [vmem:[#allocation7 + $0x1c8] sm:$0xff]  ;;  %v5591_v46 = vpack.c.bf16 %v1092_v38, %v1088_v37  ;;  %v1087_v47 = vld [vmem:[#allocation7 + $0x178] sm:$0xff] }
  0xa6   : > { %5696 = vmatpush1.bf16.msra.mxu1 %v5695_v5  ;;  %v5707_v41 = vpack.c.bf16 %v1070_v32, %v1066_v31  ;;  %v1078_v44 = vld [vmem:[#allocation7 + $0x130] sm:$0xff]  ;;  %v5593_v48 = vpack.c.bf16 %v1101_v40, %v1097_v39  ;;  %v1100_v50 = vld [vmem:[#allocation7 + $0x1e0] sm:$0xff]  ;;  %v5713_v52 = vpack.c.bf16 %v1087_v47, %v1083_v45  ;;  %v1091_v56 = vld [vmem:[#allocation7 + $0x198] sm:$0xff] }
  0xa7   : > { %5698 = vmatprep.subr.bf16.mxu1 %v5697_v6  ;;  %v1082_v53 = vld [vmem:[#allocation7 + $0x150] sm:$0xff]  ;;  %v1095_v57 = vld [vmem:[#allocation7 + $0x1b8] sm:$0xff]  ;;  %v1105_v6 = vld [vmem:[#allocation7 + $0x208] sm:$0xff] }
  0xa8   : > { %5572 = vmatpush1.bf16.msra.mxu0 %v5571_v49  ;;  %v1096_v49 = vld [vmem:[#allocation7 + $0x1c0] sm:$0xff]  ;;  %v1086_v54 = vld [vmem:[#allocation7 + $0x170] sm:$0xff]  ;;  %v5717_v59 = vpack.c.bf16 %v1095_v57, %v1091_v56  ;;  %v1099_v62 = vld [vmem:[#allocation7 + $0x1d8] sm:$0xff] }
  0xa9   : > { %5574 = vmatprep.subr.bf16.mxu0 %v5573_v51  ;;  %v5711_v51 = vpack.c.bf16 %v1078_v44, %v1074_v43  ;;  %v5595_v55 = vpack.c.bf16 %v1100_v50, %v1096_v49  ;;  %v5715_v58 = vpack.c.bf16 %v1086_v54, %v1082_v53  ;;  %v1090_v60 = vld [vmem:[#allocation7 + $0x190] sm:$0xff]  ;;  %v1109_v7 = vld [vmem:[#allocation7 + $0x228] sm:$0xff]  ;;  %v1107_v8 = vld [vmem:[#allocation7 + $0x218] sm:$0xff] }
  0xaa   : > { %5700 = vmatpush1.bf16.msra.mxu1 %v5699_v17  ;;  %v1098_v3 = vld [vmem:[#allocation7 + $0x1d0] sm:$0xff]  ;;  %v5597_v9 = vpack.c.bf16 %v1109_v7, %v1105_v6  ;;  %v1104_v11 = vld [vmem:[#allocation7 + $0x200] sm:$0xff]  ;;  %v1117_v19 = vld [vmem:[#allocation7 + $0x268] sm:$0xff] }
  0xab   : > { %5702 = vmatprep.subr.bf16.mxu1 %v5701_v18  ;;  %v1102_v4 = vld [vmem:[#allocation7 + $0x1f0] sm:$0xff]  ;;  %v1113_v18 = vld [vmem:[#allocation7 + $0x248] sm:$0xff]  ;;  %v1115_v20 = vld [vmem:[#allocation7 + $0x258] sm:$0xff] }
  0xac   : > { %5576 = vmatpush1.bf16.msra.mxu0 %v5575_v61  ;;  %v1094_v61 = vld [vmem:[#allocation7 + $0x1b0] sm:$0xff]  ;;  %v5723_v5 = vpack.c.bf16 %v1102_v4, %v1098_v3  ;;  %v5601_v21 = vpack.c.bf16 %v1117_v19, %v1113_v18  ;;  %v1112_v23 = vld [vmem:[#allocation7 + $0x240] sm:$0xff]  ;;  %v1125_v31 = vld [vmem:[#allocation7 + $0x2a8] sm:$0xff] }
  0xad   : > { %5578 = vmatprep.subr.bf16.mxu0 %v5577_v63  ;;  %v1103_v63 = vld [vmem:[#allocation7 + $0x1f8] sm:$0xff]  ;;  %v5719_v0 = vpack.c.bf16 %v1094_v61, %v1090_v60  ;;  %v1106_v15 = vld [vmem:[#allocation7 + $0x210] sm:$0xff]  ;;  %v1120_v35 = vld [vmem:[#allocation7 + $0x280] sm:$0xff] }
  0xae   : > { %5704 = vmatpush1.bf16.msra.mxu1 %v5703_v29  ;;  %v5721_v2 = vpack.c.bf16 %v1103_v63, %v1099_v62  ;;  %v1110_v16 = vld [vmem:[#allocation7 + $0x230] sm:$0xff]  ;;  %v1123_v32 = vld [vmem:[#allocation7 + $0x298] sm:$0xff]  ;;  %v1133_v43 = vld [vmem:[#allocation7 + $0x2e8] sm:$0xff] }
  0xaf   : > { %5706 = vmatprep.subr.bf16.mxu1 %v5705_v30  ;;  %v5727_v17 = vpack.c.bf16 %v1110_v16, %v1106_v15  ;;  %v1114_v27 = vld [vmem:[#allocation7 + $0x250] sm:$0xff]  ;;  %v1121_v30 = vld [vmem:[#allocation7 + $0x288] sm:$0xff]  ;;  %v1131_v44 = vld [vmem:[#allocation7 + $0x2d8] sm:$0xff] }
  0xb0   : > { %5580 = vmatpush1.bf16.msra.mxu0 %v5579_v10  ;;  %v1111_v10 = vld [vmem:[#allocation7 + $0x238] sm:$0xff]  ;;  %v1118_v28 = vld [vmem:[#allocation7 + $0x270] sm:$0xff]  ;;  %v5605_v33 = vpack.c.bf16 %v1125_v31, %v1121_v30  ;;  %v1128_v47 = vld [vmem:[#allocation7 + $0x2c0] sm:$0xff] }
  0xb1   : > { %5582 = vmatprep.subr.bf16.mxu0 %v5581_v12  ;;  %v1108_v12 = vld [vmem:[#allocation7 + $0x220] sm:$0xff]  ;;  %v5725_v13 = vpack.c.bf16 %v1111_v10, %v1107_v8  ;;  %v5731_v29 = vpack.c.bf16 %v1118_v28, %v1114_v27  ;;  %v1122_v39 = vld [vmem:[#allocation7 + $0x290] sm:$0xff]  ;;  %v1137_v54 = vld [vmem:[#allocation7 + $0x308] sm:$0xff] }
  0xb2   : > { %5708 = vmatpush1.bf16.msra.mxu1 %v5707_v41  ;;  %v5599_v14 = vpack.c.bf16 %v1108_v12, %v1104_v11  ;;  %v1126_v40 = vld [vmem:[#allocation7 + $0x2b0] sm:$0xff]  ;;  %v1139_v56 = vld [vmem:[#allocation7 + $0x318] sm:$0xff]  ;;  %v1140_v60 = vld [vmem:[#allocation7 + $0x320] sm:$0xff] }
  0xb3   : > { %5710 = vmatprep.subr.bf16.mxu1 %v5709_v42  ;;  %v5735_v41 = vpack.c.bf16 %v1126_v40, %v1122_v39  ;;  %v1129_v42 = vld [vmem:[#allocation7 + $0x2c8] sm:$0xff]  ;;  %v1138_v63 = vld [vmem:[#allocation7 + $0x310] sm:$0xff]  ;;  %v1151_v7 = vld [vmem:[#allocation7 + $0x378] sm:$0xff] }
  0xb4   : > { %5584 = vmatpush1.bf16.msra.mxu0 %v5583_v22  ;;  %v1119_v22 = vld [vmem:[#allocation7 + $0x278] sm:$0xff]  ;;  %v5609_v45 = vpack.c.bf16 %v1133_v43, %v1129_v42  ;;  %v1145_v3 = vld [vmem:[#allocation7 + $0x348] sm:$0xff]  ;;  %v1144_v8 = vld [vmem:[#allocation7 + $0x340] sm:$0xff] }
  0xb5   : > { %5586 = vmatprep.subr.bf16.mxu0 %v5585_v24  ;;  %v1116_v24 = vld [vmem:[#allocation7 + $0x260] sm:$0xff]  ;;  %v5729_v25 = vpack.c.bf16 %v1119_v22, %v1115_v20  ;;  %v1149_v4 = vld [vmem:[#allocation7 + $0x368] sm:$0xff]  ;;  %v1146_v12 = vld [vmem:[#allocation7 + $0x350] sm:$0xff] }
  0xb6   : > { %5712 = vmatpush1.bf16.msra.mxu1 %v5711_v51  ;;  %v5603_v26 = vpack.c.bf16 %v1116_v24, %v1112_v23  ;;  %v1130_v51 = vld [vmem:[#allocation7 + $0x2d0] sm:$0xff]  ;;  %v5617_v6 = vpack.c.bf16 %v1149_v4, %v1145_v3  ;;  %v1153_v15 = vld [vmem:[#allocation7 + $0x388] sm:$0xff]  ;;  %v1159_v19 = vld [vmem:[#allocation7 + $0x3b8] sm:$0xff] }
  0xb7   : > { %5714 = vmatprep.subr.bf16.mxu1 %v5713_v52  ;;  %v1134_v52 = vld [vmem:[#allocation7 + $0x2f0] sm:$0xff]  ;;  %v1157_v16 = vld [vmem:[#allocation7 + $0x3a8] sm:$0xff]  ;;  %v1152_v20 = vld [vmem:[#allocation7 + $0x380] sm:$0xff] }
  0xb8   : > { %5588 = vmatpush1.bf16.msra.mxu0 %v5587_v34  ;;  %v1127_v34 = vld [vmem:[#allocation7 + $0x2b8] sm:$0xff]  ;;  %v5739_v53 = vpack.c.bf16 %v1134_v52, %v1130_v51  ;;  %v5621_v18 = vpack.c.bf16 %v1157_v16, %v1153_v15  ;;  %v1154_v24 = vld [vmem:[#allocation7 + $0x390] sm:$0xff]  ;;  %v1161_v27 = vld [vmem:[#allocation7 + $0x3c8] sm:$0xff] }
  0xb9   : > { %5590 = vmatprep.subr.bf16.mxu0 %v5589_v36  ;;  %v1124_v36 = vld [vmem:[#allocation7 + $0x2a0] sm:$0xff]  ;;  %v5733_v37 = vpack.c.bf16 %v1127_v34, %v1123_v32  ;;  %v1165_v28 = vld [vmem:[#allocation7 + $0x3e8] sm:$0xff]  ;;  %v1167_v31 = vld [vmem:[#allocation7 + $0x3f8] sm:$0xff] }
  0xba   : > { %5716 = vmatpush1.bf16.msra.mxu1 %v5715_v58  ;;  %v5607_v38 = vpack.c.bf16 %v1124_v36, %v1120_v35  ;;  %v1143_v58 = vld [vmem:[#allocation7 + $0x338] sm:$0xff]  ;;  %v5625_v30 = vpack.c.bf16 %v1165_v28, %v1161_v27  ;;  %v1160_v32 = vld [vmem:[#allocation7 + $0x3c0] sm:$0xff]  ;;  %v1162_v36 = vld [vmem:[#allocation7 + $0x3d0] sm:$0xff] }
  0xbb   : > { %5718 = vmatprep.subr.bf16.mxu1 %v5717_v59  ;;  %v1136_v59 = vld [vmem:[#allocation7 + $0x300] sm:$0xff]  ;;  %v5741_v61 = vpack.c.bf16 %v1143_v58, %v1139_v56  ;;  %v1169_v39 = vld [vmem:[#allocation7 + $0x408] sm:$0xff]  ;;  %v1175_v43 = vld [vmem:[#allocation7 + $0x438] sm:$0xff] }
  0xbc   : > { %5592 = vmatpush1.bf16.msra.mxu0 %v5591_v46  ;;  %v1135_v46 = vld [vmem:[#allocation7 + $0x2f8] sm:$0xff]  ;;  %v5615_v62 = vpack.c.bf16 %v1140_v60, %v1136_v59  ;;  %v1173_v40 = vld [vmem:[#allocation7 + $0x428] sm:$0xff] }
  0xbd   : > { %5594 = vmatprep.subr.bf16.mxu0 %v5593_v48  ;;  %v1132_v48 = vld [vmem:[#allocation7 + $0x2e0] sm:$0xff]  ;;  %v5737_v49 = vpack.c.bf16 %v1135_v46, %v1131_v44  ;;  %v5629_v42 = vpack.c.bf16 %v1173_v40, %v1169_v39  ;;  %v1185_v27 = vld [vmem:[#allocation7 + $0x488] sm:$0xff] }
  0xbe   : > { %5720 = vmatpush1.bf16.msra.mxu1 %v5719_v0  ;;  %v5611_v50 = vpack.c.bf16 %v1132_v48, %v1128_v47  ;;  %v1142_v0 = vld [vmem:[#allocation7 + $0x330] sm:$0xff]  ;;  %v6746_v48 = vld [vmem:[%s7437_s21] sm:$0xf]  ;;  %v1189_v28 = vld [vmem:[#allocation7 + $0x4a8] sm:$0xff]  ;;  %s7446_s21 = sld [smem:[#allocation20_spill]] }
  0xbf   : > { %5722 = vmatprep.subr.bf16.mxu1 %v5721_v2  ;;  %v5743_v2 = vpack.c.bf16 %v1142_v0, %v1138_v63  ;;  %v1193_v39 = vld [vmem:[#allocation7 + $0x4c8] sm:$0xff] }
  0xc0   : > { %5596 = vmatpush1.bf16.msra.mxu0 %v5595_v55  ;;  %v1141_v55 = vld [vmem:[#allocation7 + $0x328] sm:$0xff] }
  0xc1   : > { %5598 = vmatprep.subr.bf16.mxu0 %v5597_v9  ;;  %v5613_v57 = vpack.c.bf16 %v1141_v55, %v1137_v54  ;;  %v1148_v9 = vld [vmem:[#allocation7 + $0x360] sm:$0xff]  ;;  %v1197_v40 = vld [vmem:[#allocation7 + $0x4e8] sm:$0xff] }
  0xc2   : > { %5724 = vmatpush1.bf16.msra.mxu1 %v5723_v5  ;;  %v1147_v5 = vld [vmem:[#allocation7 + $0x358] sm:$0xff]  ;;  %v5619_v11 = vpack.c.bf16 %v1148_v9, %v1144_v8  ;;  %v1170_v8 = vld [vmem:[#allocation7 + $0x410] sm:$0xff] }
  0xc3   : > { %5726 = vmatprep.subr.bf16.mxu1 %v5725_v13  ;;  %v5745_v10 = vpack.c.bf16 %v1151_v7, %v1147_v5  ;;  %v1150_v13 = vld [vmem:[#allocation7 + $0x370] sm:$0xff]  ;;  %v1168_v5 = vld [vmem:[#allocation7 + $0x400] sm:$0xff] }
  0xc4   : > { %5600 = vmatpush1.bf16.msra.mxu0 %v5599_v14  ;;  %v5747_v14 = vpack.c.bf16 %v1150_v13, %v1146_v12  ;;  %v1174_v9 = vld [vmem:[#allocation7 + $0x430] sm:$0xff]  ;;  %v1181_v12 = vld [vmem:[#allocation7 + $0x468] sm:$0xff]  ;;  %v1179_v13 = vld [vmem:[#allocation7 + $0x458] sm:$0xff]  ;;  %p7448_p7 = scmp.ne.s32.totalorder %s7446_s21, 0 }
  0xc5   : > { %5602 = vmatprep.subr.bf16.mxu0 %v5601_v21  ;;  %v1156_v21 = vld [vmem:[#allocation7 + $0x3a0] sm:$0xff] }
  0xc6   : > { %5728 = vmatpush1.bf16.msra.mxu1 %v5727_v17  ;;  %v1155_v17 = vld [vmem:[#allocation7 + $0x398] sm:$0xff]  ;;  %v5623_v23 = vpack.c.bf16 %v1156_v21, %v1152_v20  ;;  %v1176_v20 = vld [vmem:[#allocation7 + $0x440] sm:$0xff] }
  0xc7   : > { %5730 = vmatprep.subr.bf16.mxu1 %v5729_v25  ;;  %v5749_v22 = vpack.c.bf16 %v1159_v19, %v1155_v17  ;;  %v1158_v25 = vld [vmem:[#allocation7 + $0x3b0] sm:$0xff]  ;;  %v5759_v19 = vpack.c.bf16 %v1174_v9, %v1170_v8  ;;  %v1180_v21 = vld [vmem:[#allocation7 + $0x460] sm:$0xff] }
  0xc8   : > { %5604 = vmatpush1.bf16.msra.mxu0 %v5603_v26  ;;  %v5751_v26 = vpack.c.bf16 %v1158_v25, %v1154_v24  ;;  %v1178_v25 = vld [vmem:[#allocation7 + $0x450] sm:$0xff] }
  0xc9   : > { %5606 = vmatprep.subr.bf16.mxu0 %v5605_v33  ;;  %v1164_v33 = vld [vmem:[#allocation7 + $0x3e0] sm:$0xff]  ;;  %v1202_v8 = vld [vmem:[#allocation7 + $0x510] sm:$0xff] }
  0xca   : > { %5732 = vmatpush1.bf16.msra.mxu1 %v5731_v29  ;;  %v1163_v29 = vld [vmem:[#allocation7 + $0x3d8] sm:$0xff]  ;;  %v5627_v35 = vpack.c.bf16 %v1164_v33, %v1160_v32  ;;  %v1184_v33 = vld [vmem:[#allocation7 + $0x480] sm:$0xff]  ;;  %v1206_v9 = vld [vmem:[#allocation7 + $0x530] sm:$0xff] }
  0xcb   : > { %5734 = vmatprep.subr.bf16.mxu1 %v5733_v37  ;;  %v5753_v34 = vpack.c.bf16 %v1167_v31, %v1163_v29  ;;  %v1166_v37 = vld [vmem:[#allocation7 + $0x3f0] sm:$0xff]  ;;  %v1187_v29 = vld [vmem:[#allocation7 + $0x498] sm:$0xff]  ;;  %v5635_v31 = vpack.c.bf16 %v1180_v21, %v1176_v20  ;;  %v1217_v21 = vld [vmem:[#allocation7 + $0x588] sm:$0xff] }
  0xcc   : > { %5608 = vmatpush1.bf16.msra.mxu0 %v5607_v38  ;;  %v5755_v38 = vpack.c.bf16 %v1166_v37, %v1162_v36  ;;  %v1186_v37 = vld [vmem:[#allocation7 + $0x490] sm:$0xff] }
  0xcd   : > { %5610 = vmatprep.subr.bf16.mxu0 %v5609_v45  ;;  %v850_v45 = vlaneseq  ;;  %v1214_v20 = vld [vmem:[#allocation7 + $0x570] sm:$0xff] }
  0xce   : > { %5736 = vmatpush1.bf16.msra.mxu1 %v5735_v41  ;;  %v1171_v41 = vld [vmem:[#allocation7 + $0x418] sm:$0xff] }
  0xcf   : > { %5738 = vmatprep.subr.bf16.mxu1 %v5737_v49  ;;  %v5757_v44 = vpack.c.bf16 %v1175_v43, %v1171_v41  ;;  %v6738_v46 = vshrl.u32 %v850_v45, 7  ;;  %v1195_v41 = vld [vmem:[#allocation7 + $0x4d8] sm:$0xff]  ;;  %vm5215_vm7 = vcmp.lt.s32.totalorder %v850_v45, 512 }
  0xd0   : > { %5612 = vmatpush1.bf16.msra.mxu0 %v5611_v50 }
  0xd1   : > { %5614 = vmatprep.subr.bf16.mxu0 %v5613_v57  ;;  %v6741_v47 = vsub.s32 0, %v6738_v46  ;;  %v6749_v49 = vsub.s32 1, %v6738_v46  ;;  %v6756_v58 = vsub.s32 3, %v6738_v46 }
  0xd2   : > { %5740 = vmatpush1.bf16.msra.mxu1 %v5739_v53 }
  0xd3   : > { %5742 = vmatprep.subr.bf16.mxu1 %v5741_v61  ;;  %v853_v50 = vrot.slane %v6746_v48, %v6741_v47  ;;  %v857_v51 = vrot.slane %v6746_v48, %v6749_v49  ;;  %v865_v59 = vrot.slane %v6746_v48, %v6756_v58 }
  0xd4   : > { %5616 = vmatpush1.bf16.msra.mxu0 %v5615_v62 }
  0xd5   : > { %5618 = vmatprep.subr.bf16.mxu0 %v5617_v6  ;;  %v1172_v6 = vld [vmem:[#allocation7 + $0x420] sm:$0xff] }
  0xd6   : > { %5744 = vmatpush1.bf16.msra.mxu1 %v5743_v2 }
  0xd7   : > { %5746 = vmatprep.subr.bf16.mxu1 %v5745_v10  ;;  %v1177_v10 = vld [vmem:[#allocation7 + $0x448] sm:$0xff] }
  0xd8   : > { %5620 = vmatpush1.bf16.msra.mxu0 %v5619_v11 }
  0xd9   : > { %5622 = vmatprep.subr.bf16.mxu0 %v5621_v18  ;;  %v5631_v18 = vpack.c.bf16 %v1172_v6, %v1168_v5  ;;  %v1204_v5 = vld [vmem:[#allocation7 + $0x520] sm:$0xff] }
  0xda   : > { %5748 = vmatpush1.bf16.msra.mxu1 %v5747_v14  ;;  %v1183_v14 = vld [vmem:[#allocation7 + $0x478] sm:$0xff] }
  0xdb   : > { %5750 = vmatprep.subr.bf16.mxu1 %v5749_v22  ;;  %v5761_v24 = vpack.c.bf16 %v1183_v14, %v1179_v13  ;;  %v1215_v13 = vld [vmem:[#allocation7 + $0x578] sm:$0xff]  ;;  %v5775_v14 = vpack.c.bf16 %v1206_v9, %v1202_v8 }
  0xdc   : > { %5624 = vmatpush1.bf16.msra.mxu0 %v5623_v23  ;;  %v5633_v23 = vpack.c.bf16 %v1181_v12, %v1177_v10  ;;  %v1209_v10 = vld [vmem:[#allocation7 + $0x548] sm:$0xff]  ;;  %v1211_v12 = vld [vmem:[#allocation7 + $0x558] sm:$0xff] }
  0xdd   : > { %5626 = vmatprep.subr.bf16.mxu0 %v5625_v30  ;;  %v1191_v30 = vld [vmem:[#allocation7 + $0x4b8] sm:$0xff] }
  0xde   : > { %5752 = vmatpush1.bf16.msra.mxu1 %v5751_v26  ;;  %v1182_v26 = vld [vmem:[#allocation7 + $0x470] sm:$0xff]  ;;  %v5765_v36 = vpack.c.bf16 %v1191_v30, %v1187_v29  ;;  %v1220_v29 = vld [vmem:[#allocation7 + $0x5a0] sm:$0xff] }
  0xdf   : > { %5754 = vmatprep.subr.bf16.mxu1 %v5753_v34  ;;  %v5763_v32 = vpack.c.bf16 %v1182_v26, %v1178_v25  ;;  %v1188_v34 = vld [vmem:[#allocation7 + $0x4a0] sm:$0xff]  ;;  %v6767_v25 = vsub.s32 2, %v6738_v46 }
  0xe0   : > { %5628 = vmatpush1.bf16.msra.mxu0 %v5627_v35  ;;  %v5637_v35 = vpack.c.bf16 %v1189_v28, %v1185_v27  ;;  %v5639_v43 = vpack.c.bf16 %v1188_v34, %v1184_v33  ;;  %v1216_v28 = vld [vmem:[#allocation7 + $0x580] sm:$0xff]  ;;  %v1222_v33 = vld [vmem:[#allocation7 + $0x5b0] sm:$0xff]  ;;  %v1225_v34 = vld [vmem:[#allocation7 + $0x5c8] sm:$0xff] }
  0xe1   : > { %5630 = vmatprep.subr.bf16.mxu0 %v5629_v42  ;;  %v1199_v42 = vld [vmem:[#allocation7 + $0x4f8] sm:$0xff] }
  0xe2   : > { %5756 = vmatpush1.bf16.msra.mxu1 %v5755_v38  ;;  %v1190_v38 = vld [vmem:[#allocation7 + $0x4b0] sm:$0xff] }
  0xe3   : > { %5758 = vmatprep.subr.bf16.mxu1 %v5757_v44  ;;  %v5767_v44 = vpack.c.bf16 %v1190_v38, %v1186_v37  ;;  %v1231_v37 = vld [vmem:[#allocation7 + $0x5f8] sm:$0xff]  ;;  %v861_v38 = vrot.slane %v6746_v48, %v6767_v25 }
 0x176   : > { %v936_v52 = vpop.f32.mrb[0].mxu0 }
 0x177   : > { %v937_v53 = vadd.f32 %v936_v52, %v853_v50  ;;  %v938_v54 = vpop.f32.mrb[1].mxu0  ;;  %v1192_v50 = vld [vmem:[#allocation7 + $0x4c0] sm:$0xff]  ;;  %v5641_v52 = vpack.c.bf16 %v1197_v40, %v1193_v39  ;;  %v5655_v39 = vpack.c.bf16 %v1220_v29, %v1216_v28  ;;  %v1257_v28 = vld [vmem:[#allocation7 + $0x6c8] sm:$0xff] }
 0x178   : > { %v939_v55 = vadd.f32 %v938_v54, %v857_v51  ;;  %v6760_v60 = vpop.f32.mrb[0].mxu1  ;;  %v1196_v51 = vld [vmem:[#allocation7 + $0x4e0] sm:$0xff]  ;;  %v1194_v54 = vld [vmem:[#allocation7 + $0x4d0] sm:$0xff]  ;;  %v1261_v29 = vld [vmem:[#allocation7 + $0x6e8] sm:$0xff] }
 0x179   : > { %v5357_v56 = vmul.f32 -1.442695, %v937_v53  ;;  %v1009_v61 = vpop.f32.mrb[1].mxu1 }
 0x17a   : > { %v5358_v57 = vmul.f32 -1.442695, %v939_v55  ;;  %v6762_v62 = vadd.f32 %v1009_v61, %v865_v59  ;;  %v1205_v59 = vld [vmem:[#allocation7 + $0x528] sm:$0xff]  ;;  %v1203_v61 = vld [vmem:[#allocation7 + $0x518] sm:$0xff] }
 0x17b   : > { %6142 = vpow2.f32 %v5357_v56  ;;  %v1201_v56 = vld [vmem:[#allocation7 + $0x508] sm:$0xff] }
 0x17c   : > { %6144 = vpow2.f32 %v5358_v57  ;;  %v5360_v0 = vmul.f32 -1.442695, %v6762_v62  ;;  %v5645_v6 = vpack.c.bf16 %v1205_v59, %v1201_v56  ;;  %v6772_v56 = vadd.f32 %v6760_v60, %v861_v38  ;;  %v1232_v59 = vld [vmem:[#allocation7 + $0x600] sm:$0xff]  ;;  %v1258_v38 = vld [vmem:[#allocation7 + $0x6d0] sm:$0xff] }
 0x17e   : > { %6146 = vpow2.f32 %v5360_v0  ;;  %v5359_v8 = vmul.f32 -1.442695, %v6772_v56 }
 0x185   : > { %v6143_v63 = vpop.eup %6142 }
 0x186   : > { %v6145_v2 = vpop.eup %6144  ;;  %v1024_v3 = vadd.f32 1.0, %v6143_v63  ;;  %v1207_v63 = vld [vmem:[#allocation7 + $0x538] sm:$0xff] }
 0x187   : > { %v1025_v4 = vadd.f32 1.0, %v6145_v2  ;;  %v5643_v2 = vpack.c.bf16 %v1196_v51, %v1192_v50  ;;  %v1226_v50 = vld [vmem:[#allocation7 + $0x5d0] sm:$0xff] }
 0x188   : > { %6148 = vrcp.f32 %v1024_v3  ;;  %v6147_v7 = vpop.eup %6146  ;;  %v1230_v51 = vld [vmem:[#allocation7 + $0x5f0] sm:$0xff] }
 0x189   : > { %6150 = vrcp.f32 %v1025_v4  ;;  %v1027_v15 = vadd.f32 1.0, %v6147_v7  ;;  %v1200_v4 = vld [vmem:[#allocation7 + $0x500] sm:$0xff]  ;;  %v5773_v7 = vpack.c.bf16 %v1207_v63, %v1203_v61 }
 0x18a   : > { %v1236_v61 = vld [vmem:[#allocation7 + $0x620] sm:$0xff] }
 0x18b   : > { %6152 = vrcp.f32 %v1027_v15  ;;  %v1208_v15 = vld [vmem:[#allocation7 + $0x540] sm:$0xff]  ;;  %v5663_v60 = vpack.c.bf16 %v1236_v61, %v1232_v59  ;;  %v1273_v59 = vld [vmem:[#allocation7 + $0x748] sm:$0xff] }
 0x18c   : > { %6154 = vpow2.f32 %v5359_v8  ;;  %v1277_v61 = vld [vmem:[#allocation7 + $0x768] sm:$0xff] }
 0x192   : > { %v6149_v11 = vpop.eup %6148 }
 0x193   : > { %v6151_v16 = vpop.eup %6150  ;;  %v1036_v22 = vmul.f32 %v6149_v11, %v937_v53  ;;  %v5769_v53 = vpack.c.bf16 %v1199_v42, %v1195_v41  ;;  %v1213_v11 = vld [vmem:[#allocation7 + $0x568] sm:$0xff]  ;;  %v1224_v41 = vld [vmem:[#allocation7 + $0x5c0] sm:$0xff] }
 0x194   : > { %v1037_v17 = vmul.f32 %v6151_v16, %v939_v55  ;;  %v1198_v55 = vld [vmem:[#allocation7 + $0x4f0] sm:$0xff]  ;;  %v1212_v16 = vld [vmem:[#allocation7 + $0x560] sm:$0xff] }
 0x195   : > { %v6153_v57 = vpop.eup %6152  ;;  %v5771_v3 = vpack.c.bf16 %v1198_v55, %v1194_v54  ;;  %v5651_v26 = vpack.c.bf16 %v1212_v16, %v1208_v15  ;;  %v1228_v42 = vld [vmem:[#allocation7 + $0x5e0] sm:$0xff]  ;;  %v1235_v54 = vld [vmem:[#allocation7 + $0x618] sm:$0xff]  ;;  %v1249_v15 = vld [vmem:[#allocation7 + $0x688] sm:$0xff] }
 0x196   : > { %1382 = vmatprep.mubr.f32.mxu0 %v1037_v17  ;;  %1524 = vmatprep.mubr.f32.mxu1 %v1037_v17  ;;  %v1039_v0 = vmul.f32 %v6153_v57, %v6762_v62  ;;  %v5647_v62 = vpack.c.bf16 %v1204_v5, %v1200_v4  ;;  %v5649_v17 = vpack.c.bf16 %v1213_v11, %v1209_v10  ;;  %v1239_v55 = vld [vmem:[#allocation7 + $0x638] sm:$0xff]  ;;  %v1241_v4 = vld [vmem:[#allocation7 + $0x648] sm:$0xff]  ;;  %v1240_v10 = vld [vmem:[#allocation7 + $0x640] sm:$0xff] }
 0x197   : > { %1383 = vmatmul.mubr.f32.vlgmr.msra.gmra.mrb[2].mxu0 %v1036_v22  ;;  %1525 = vmatmul.mubr.f32.vlgmr.msra.gmra.mrb[2].mxu1 %v1036_v22  ;;  %v1221_v22 = vld [vmem:[#allocation7 + $0x5a8] sm:$0xff]  ;;  %v5659_v48 = vpack.c.bf16 %v1228_v42, %v1224_v41  ;;  %v5787_v57 = vpack.c.bf16 %v1230_v51, %v1226_v50  ;;  %v1244_v11 = vld [vmem:[#allocation7 + $0x660] sm:$0xff]  ;;  %v1267_v42 = vld [vmem:[#allocation7 + $0x718] sm:$0xff] }
 0x198   : > { %5632 = vmatpush1.bf16.msra.mxu0 %v5631_v18  ;;  %5760 = vmatpush1.bf16.msra.mxu1 %v5759_v19  ;;  %v5777_v18 = vpack.c.bf16 %v1215_v13, %v1211_v12  ;;  %v1210_v19 = vld [vmem:[#allocation7 + $0x550] sm:$0xff]  ;;  %v5653_v30 = vpack.c.bf16 %v1221_v22, %v1217_v21  ;;  %v1245_v5 = vld [vmem:[#allocation7 + $0x668] sm:$0xff]  ;;  %v1248_v21 = vld [vmem:[#allocation7 + $0x680] sm:$0xff] }
 0x199   : > { %5634 = vmatprep.subr.bf16.mxu0 %v5633_v23  ;;  %5762 = vmatprep.subr.bf16.mxu1 %v5761_v24  ;;  %v1219_v23 = vld [vmem:[#allocation7 + $0x598] sm:$0xff]  ;;  %v5779_v27 = vpack.c.bf16 %v1214_v20, %v1210_v19  ;;  %v5665_v12 = vpack.c.bf16 %v1245_v5, %v1241_v4  ;;  %v1253_v16 = vld [vmem:[#allocation7 + $0x6a8] sm:$0xff]  ;;  %v5667_v19 = vpack.c.bf16 %v1244_v11, %v1240_v10  ;;  %v1252_v22 = vld [vmem:[#allocation7 + $0x6a0] sm:$0xff] }
 0x19a   : > { %1453 = vmatprep.mubr.f32.mxu0 %v1039_v0  ;;  %1595 = vmatprep.mubr.f32.mxu1 %v1039_v0  ;;  %v1223_v24 = vld [vmem:[#allocation7 + $0x5b8] sm:$0xff]  ;;  %v5789_v0 = vpack.c.bf16 %v1239_v55, %v1235_v54  ;;  %v1269_v41 = vld [vmem:[#allocation7 + $0x728] sm:$0xff]  ;;  %v1264_v51 = vld [vmem:[#allocation7 + $0x700] sm:$0xff] }
 0x19b   : > { %v1272_v5 = vld [vmem:[#allocation7 + $0x740] sm:$0xff]  ;;  %v1281_v10 = vld [vmem:[#allocation7 + $0x788] sm:$0xff] }
 0x19c   : > { %5636 = vmatpush1.bf16.msra.mxu0 %v5635_v31  ;;  %5764 = vmatpush1.bf16.msra.mxu1 %v5763_v32  ;;  %v5781_v31 = vpack.c.bf16 %v1223_v24, %v1219_v23  ;;  %v1218_v32 = vld [vmem:[#allocation7 + $0x590] sm:$0xff]  ;;  %v5669_v23 = vpack.c.bf16 %v1253_v16, %v1249_v15  ;;  %v1285_v11 = vld [vmem:[#allocation7 + $0x7a8] sm:$0xff]  ;;  %v1280_v15 = vld [vmem:[#allocation7 + $0x780] sm:$0xff] }
 0x19d   : > { %5638 = vmatprep.subr.bf16.mxu0 %v5637_v35  ;;  %5766 = vmatprep.subr.bf16.mxu1 %v5765_v36  ;;  %v1229_v35 = vld [vmem:[#allocation7 + $0x5e8] sm:$0xff]  ;;  %v1227_v36 = vld [vmem:[#allocation7 + $0x5d8] sm:$0xff]  ;;  %v5783_v40 = vpack.c.bf16 %v1222_v33, %v1218_v32  ;;  %v5671_v32 = vpack.c.bf16 %v1252_v22, %v1248_v21  ;;  %v1284_v16 = vld [vmem:[#allocation7 + $0x7a0] sm:$0xff] }
 0x19e   : > { %v1289_v21 = vld [vmem:[#allocation7 + $0x7c8] sm:$0xff] }
 0x19f   : > { %v1293_v22 = vld [vmem:[#allocation7 + $0x7e8] sm:$0xff] }
 0x1a0   : > { %5640 = vmatpush1.bf16.msra.mxu0 %v5639_v43  ;;  %5768 = vmatpush1.bf16.msra.mxu1 %v5767_v44  ;;  %v5657_v43 = vpack.c.bf16 %v1229_v35, %v1225_v34  ;;  %v5785_v44 = vpack.c.bf16 %v1231_v37, %v1227_v36  ;;  %v1256_v34 = vld [vmem:[#allocation7 + $0x6c0] sm:$0xff]  ;;  %v5673_v36 = vpack.c.bf16 %v1261_v29, %v1257_v28 }
 0x1a1   : > { %5642 = vmatprep.subr.bf16.mxu0 %v5641_v52  ;;  %5770 = vmatprep.subr.bf16.mxu1 %v5769_v53  ;;  %v1233_v52 = vld [vmem:[#allocation7 + $0x608] sm:$0xff]  ;;  %v1260_v35 = vld [vmem:[#allocation7 + $0x6e0] sm:$0xff]  ;;  %v5689_v29 = vpack.c.bf16 %v1293_v22, %v1289_v21 }
 0x1a2   : > { %v1237_v53 = vld [vmem:[#allocation7 + $0x628] sm:$0xff]  ;;  %v1288_v28 = vld [vmem:[#allocation7 + $0x7c0] sm:$0xff] }
 0x1a3   : > { %v5661_v63 = vpack.c.bf16 %v1237_v53, %v1233_v52  ;;  %v1268_v52 = vld [vmem:[#allocation7 + $0x720] sm:$0xff]  ;;  %v6155_v53 = vpop.eup %6154 }
 0x1a4   : > { %5644 = vmatpush1.bf16.msra.mxu0 %v5643_v2  ;;  %5772 = vmatpush1.bf16.msra.mxu1 %v5771_v3  ;;  %v1234_v2 = vld [vmem:[#allocation7 + $0x610] sm:$0xff] }
 0x1a5   : > { %5646 = vmatprep.subr.bf16.mxu0 %v5645_v6  ;;  %5774 = vmatprep.subr.bf16.mxu1 %v5773_v7  ;;  %v1238_v3 = vld [vmem:[#allocation7 + $0x630] sm:$0xff]  ;;  %v1243_v6 = vld [vmem:[#allocation7 + $0x658] sm:$0xff] }
 0x1a6   : > { %v1247_v7 = vld [vmem:[#allocation7 + $0x678] sm:$0xff]  ;;  %v5791_v9 = vpack.c.bf16 %v1238_v3, %v1234_v2  ;;  %v1026_v2 = vadd.f32 1.0, %v6155_v53  ;;  %v5679_v3 = vpack.c.bf16 %v1268_v52, %v1264_v51 }
 0x1a7   : > { %v5793_v13 = vpack.c.bf16 %v1247_v7, %v1243_v6  ;;  %v1276_v6 = vld [vmem:[#allocation7 + $0x760] sm:$0xff]  ;;  %v5681_v7 = vpack.c.bf16 %v1277_v61, %v1273_v59 }
 0x1a8   : > { %5648 = vmatpush1.bf16.msra.mxu0 %v5647_v62  ;;  %5776 = vmatpush1.bf16.msra.mxu1 %v5775_v14  ;;  %v1242_v62 = vld [vmem:[#allocation7 + $0x650] sm:$0xff]  ;;  %6156 = vrcp.f32 %v1026_v2 }
 0x1a9   : > { %5650 = vmatprep.subr.bf16.mxu0 %v5649_v17  ;;  %5778 = vmatprep.subr.bf16.mxu1 %v5777_v18  ;;  %v1246_v14 = vld [vmem:[#allocation7 + $0x670] sm:$0xff]  ;;  %v1251_v17 = vld [vmem:[#allocation7 + $0x698] sm:$0xff] }
 0x1aa   : > { %v1255_v18 = vld [vmem:[#allocation7 + $0x6b8] sm:$0xff]  ;;  %v5795_v20 = vpack.c.bf16 %v1246_v14, %v1242_v62  ;;  %v5683_v62 = vpack.c.bf16 %v1276_v6, %v1272_v5 }
 0x1ab   : > { %v5797_v24 = vpack.c.bf16 %v1255_v18, %v1251_v17  ;;  %v5685_v17 = vpack.c.bf16 %v1285_v11, %v1281_v10  ;;  %v6831_v5 = vld [vmem:[%s7376_s12] sm:$0xff] }
 0x1ac   : > { %5652 = vmatpush1.bf16.msra.mxu0 %v5651_v26  ;;  %5780 = vmatpush1.bf16.msra.mxu1 %v5779_v27  ;;  %v1250_v26 = vld [vmem:[#allocation7 + $0x690] sm:$0xff] }
 0x1ad   : > { %5654 = vmatprep.subr.bf16.mxu0 %v5653_v30  ;;  %5782 = vmatprep.subr.bf16.mxu1 %v5781_v31  ;;  %v1254_v27 = vld [vmem:[#allocation7 + $0x6b0] sm:$0xff]  ;;  %v1259_v30 = vld [vmem:[#allocation7 + $0x6d8] sm:$0xff] }
 0x1ae   : > { %v1263_v31 = vld [vmem:[#allocation7 + $0x6f8] sm:$0xff]  ;;  %v5799_v33 = vpack.c.bf16 %v1254_v27, %v1250_v26  ;;  %v5687_v26 = vpack.c.bf16 %v1284_v16, %v1280_v15 }
 0x1af   : > { %v5801_v37 = vpack.c.bf16 %v1263_v31, %v1259_v30  ;;  %v1292_v31 = vld [vmem:[#allocation7 + $0x7e0] sm:$0xff] }
 0x1b0   : > { %5656 = vmatpush1.bf16.msra.mxu0 %v5655_v39  ;;  %5784 = vmatpush1.bf16.msra.mxu1 %v5783_v40  ;;  %v1262_v39 = vld [vmem:[#allocation7 + $0x6f0] sm:$0xff]  ;;  %v1265_v40 = vld [vmem:[#allocation7 + $0x708] sm:$0xff] }
 0x1b1   : > { %5658 = vmatprep.subr.bf16.mxu0 %v5657_v43  ;;  %5786 = vmatprep.subr.bf16.mxu1 %v5785_v44  ;;  %v1271_v43 = vld [vmem:[#allocation7 + $0x738] sm:$0xff]  ;;  %v5675_v44 = vpack.c.bf16 %v1260_v35, %v1256_v34  ;;  %v5803_v50 = vpack.c.bf16 %v1262_v39, %v1258_v38  ;;  %v5677_v54 = vpack.c.bf16 %v1269_v41, %v1265_v40  ;;  %v5369_v39 = vld [vmem:[%s7373_s9 + $0x10] sm:$0xff]  ;;  %v5367_v40 = vld [vmem:[%s7373_s9 + $0x8] sm:$0xff]  ;;  %v6433_v41 = vmov 0  }
 0x1b2   : > { %v5805_v55 = vpack.c.bf16 %v1271_v43, %v1267_v42  ;;  %v5691_v34 = vpack.c.bf16 %v1292_v31, %v1288_v28  ;;  %v1711_v38 = vld [vmem:[%s7373_s9] sm:$0xff]  ;;  %6058 = vset.pattern.permute.xlu0 %v6433_v41  ;;  %6059 = vset.pattern.permute.xlu1 %v6433_v41  ;;  %v1631_v31 = vld [vmem:[%s7440_s3 + $0x8] sm:$0xff] }
 0x1b3   : > { %v6811_v42 = vld [vmem:[%s7375_s11] ss:$0 sm:$0xff] }
 0x1b4   : > { %5660 = vmatpush1.bf16.msra.mxu0 %v5659_v48  ;;  %5788 = vmatpush1.bf16.msra.mxu1 %v5787_v57  ;;  %v1266_v48 = vld [vmem:[#allocation7 + $0x710] sm:$0xff]  ;;  %v2879_v43 = vld [vmem:[%s7377_s13] sm:$0xff] }
 0x1b5   : > { %5662 = vmatprep.subr.bf16.mxu0 %v5661_v63  ;;  %5790 = vmatprep.subr.bf16.mxu1 %v5789_v0  ;;  %v1270_v57 = vld [vmem:[#allocation7 + $0x730] sm:$0xff]  ;;  %v1275_v63 = vld [vmem:[#allocation7 + $0x758] sm:$0xff] }
 0x1b6   : > { %v1279_v0 = vld [vmem:[#allocation7 + $0x778] sm:$0xff]  ;;  %v5807_v4 = vpack.c.bf16 %v1270_v57, %v1266_v48  ;;  %2083 = vperm.xlu0 %6058, %v6811_v42   ;;  %2883 = vperm.xlu1 %6059, %v2879_v43  }
 0x1b7   : > { %v5809_v8 = vpack.c.bf16 %v1279_v0, %v1275_v63 }
 0x1b8   : > { %5664 = vmatpush1.bf16.msra.mxu0 %v5663_v60  ;;  %5792 = vmatpush1.bf16.msra.mxu1 %v5791_v9  ;;  %v1274_v60 = vld [vmem:[#allocation7 + $0x750] sm:$0xff] }
 0x1b9   : > { %5666 = vmatprep.subr.bf16.mxu0 %v5665_v12  ;;  %5794 = vmatprep.subr.bf16.mxu1 %v5793_v13  ;;  %v1278_v9 = vld [vmem:[#allocation7 + $0x770] sm:$0xff]  ;;  %v1283_v12 = vld [vmem:[#allocation7 + $0x798] sm:$0xff] }
 0x1ba   : > { %v1287_v13 = vld [vmem:[#allocation7 + $0x7b8] sm:$0xff]  ;;  %v5811_v14 = vpack.c.bf16 %v1278_v9, %v1274_v60  ;;  %v6838_v9 = vld [vmem:[%s7376_s12 + $0x8] sm:$0xff] }
 0x1bb   : > { %v5813_v18 = vpack.c.bf16 %v1287_v13, %v1283_v12 }
 0x1bc   : > { %5668 = vmatpush1.bf16.msra.mxu0 %v5667_v19  ;;  %5796 = vmatpush1.bf16.msra.mxu1 %v5795_v20  ;;  %v1282_v19 = vld [vmem:[#allocation7 + $0x790] sm:$0xff] }
 0x1bd   : > { %5670 = vmatprep.subr.bf16.mxu0 %v5669_v23  ;;  %5798 = vmatprep.subr.bf16.mxu1 %v5797_v24  ;;  %v1286_v20 = vld [vmem:[#allocation7 + $0x7b0] sm:$0xff]  ;;  %v1291_v23 = vld [vmem:[#allocation7 + $0x7d8] sm:$0xff] }
 0x1be   : > { %v1295_v24 = vld [vmem:[#allocation7 + $0x7f8] sm:$0xff]  ;;  %v5815_v27 = vpack.c.bf16 %v1286_v20, %v1282_v19 }
 0x1bf   : > { %v5817_v30 = vpack.c.bf16 %v1295_v24, %v1291_v23  ;;  %v1630_v24 = vld [vmem:[%s7440_s3] sm:$0xff] }
 0x1c0   : > { %5672 = vmatpush1.bf16.msra.mxu0 %v5671_v32  ;;  %5800 = vmatpush1.bf16.msra.mxu1 %v5799_v33  ;;  %v1290_v32 = vld [vmem:[#allocation7 + $0x7d0] sm:$0xff] }
 0x1c1   : > { %5674 = vmatprep.subr.bf16.mxu0 %v5673_v36  ;;  %5802 = vmatprep.subr.bf16.mxu1 %v5801_v37  ;;  %v1294_v33 = vld [vmem:[#allocation7 + $0x7f0] sm:$0xff]  ;;  %v6157_v36 = vpop.eup %6156 }
 0x1c2   : > { %v5819_v35 = vpack.c.bf16 %v1294_v33, %v1290_v32  ;;  %v1038_v37 = vmul.f32 %v6157_v36, %v6772_v56  ;;  %v1709_v56 = vld [vmem:[%s782_s4] sm:$0xff]  ;;  %s6438_s4 = smov 126  }
 0x1c3   : > { %v1642_v36 = vld [vmem:[%s7440_s3 + $0x60] sm:$0xff] }
 0x1c4   : > { %5676 = vmatpush1.bf16.msra.mxu0 %v5675_v44  ;;  %5804 = vmatpush1.bf16.msra.mxu1 %v5803_v50  ;;  %v2911_v44 = vld [vmem:[%s7378_s14] sm:$0xff] }
 0x1c5   : > { %5678 = vmatprep.subr.bf16.mxu0 %v5677_v54  ;;  %5806 = vmatprep.subr.bf16.mxu1 %v5805_v55  ;;  %v1296_v50 = vld [vmem:[%s7439_s26] sm:$0xf]  ;;  %s6437_s26 = smov 2  }
 0x1c6   : > { %2914 = vperm.xlu1 %6059, %v2911_v44   ;;  %v1301_v51 = vrot.slane %v1296_v50, %v6741_v47  ;;  %v1309_v52 = vrot.slane %v1296_v50, %v6767_v25  ;;  %v1305_v53 = vrot.slane %v1296_v50, %v6749_v49  ;;  %v1313_v54 = vrot.slane %v1296_v50, %v6756_v58  ;;  %v1643_v44 = vld [vmem:[%s7440_s3 + $0x68] sm:$0xff] }
 0x1c8   : > { %5680 = vmatpush1.bf16.msra.mxu0 %v5679_v3  ;;  %5808 = vmatpush1.bf16.msra.mxu1 %v5807_v4 }
 0x1c9   : > { %5682 = vmatprep.subr.bf16.mxu0 %v5681_v7  ;;  %5810 = vmatprep.subr.bf16.mxu1 %v5809_v8 }
 0x1cc   : > { %5684 = vmatpush1.bf16.msra.mxu0 %v5683_v62  ;;  %5812 = vmatpush1.bf16.msra.mxu1 %v5811_v14 }
 0x1cd   : > { %5686 = vmatprep.subr.bf16.mxu0 %v5685_v17  ;;  %5814 = vmatprep.subr.bf16.mxu1 %v5813_v18 }
 0x1d0   : > { %5688 = vmatpush1.bf16.msra.mxu0 %v5687_v26  ;;  %5816 = vmatpush1.bf16.msra.mxu1 %v5815_v27  ;;  %v1634_v26 = vld [vmem:[%s7440_s3 + $0x20] sm:$0xff] }
 0x1d1   : > { %5690 = vmatprep.subr.bf16.mxu0 %v5689_v29  ;;  %5818 = vmatprep.subr.bf16.mxu1 %v5817_v30  ;;  %v1638_v27 = vld [vmem:[%s7440_s3 + $0x40] sm:$0xff] }
 0x1d4   : > { %5692 = vmatpush1.bf16.msra.mxu0 %v5691_v34  ;;  %5820 = vmatpush1.bf16.msra.mxu1 %v5819_v35  ;;  %v1635_v34 = vld [vmem:[%s7440_s3 + $0x28] sm:$0xff] }
 0x1d5   : > { %5476 = vmatprep.subr.mxu0 %v6431_v1  ;;  %5481 = vmatprep.subr.mxu1 %v6431_v1  ;;  %v1639_v35 = vld [vmem:[%s7440_s3 + $0x48] sm:$0xff] }
 0x1d7   : > { %1454 = vmatmul.mubr.f32.vlgmr.msra.gmra.mrb[2].mxu0 %v1038_v37  ;;  %1596 = vmatmul.mubr.f32.vlgmr.msra.gmra.mrb[2].mxu1 %v1038_v37 }
 0x1d8   : > { %5477 = vmatpush3.msra.mxu0 %v1711_v38  ;;  %5478 = vmatprep.mubr.msk.f32.mxu0 %vm6432_vm0, %v6431_v1  ;;  %v1632_v38 = vld [vmem:[%s7440_s3 + $0x10] sm:$0xff] }
 0x1d9   : > { %5486 = vmatprep.subr.mxu0 %v6431_v1  ;;  %5483 = vmatprep.mubr.msk.f32.mxu1 %vm6432_vm0, %v6431_v1 }
 0x1da   : > { %5482 = vmatpush3.msra.mxu1 %v5367_v40 }
 0x1db   : > { %5479 = vmatmul.mubr.msk.f32.vlgmr.msra.gmra.mrb[4].mxu0 %vm1712_vm1, %v1709_v56  ;;  %5484 = vmatmul.mubr.msk.f32.vlgmr.msra.gmra.mrb[4].mxu1 %vm1712_vm1, %v1709_v56 }
 0x1dc   : > { %5487 = vmatpush3.msra.mxu0 %v5369_v39  ;;  %5488 = vmatprep.mubr.msk.f32.mxu0 %vm6432_vm0, %v6431_v1  ;;  %v1636_v39 = vld [vmem:[%s7440_s3 + $0x30] sm:$0xff] }
 0x1dd   : > { %5496 = vmatprep.subr.mxu0 %v6431_v1  ;;  %5491 = vmatprep.subr.mxu1 %v6431_v1 }
 0x1de   : > { %5493 = vmatprep.mubr.msk.f32.mxu1 %vm6432_vm0, %v6431_v1 }
 0x1df   : > { %5489 = vmatmul.mubr.msk.f32.vlgmr.msra.gmra.mrb[6].mxu0 %vm1712_vm1, %v1709_v56 }
 0x1e0   : > { %5498 = vmatprep.mubr.msk.f32.mxu0 %vm6432_vm0, %v6431_v1 }
 0x2aa   : > { %v1455_v55 = vpop.f32.mrb[2].mxu0  ;;  %v1597_v48 = vpop.f32.mrb[2].mxu1 }
 0x2ab   : > { %v5933_v57 = vadd.f32 %v1455_v55, %v1301_v51  ;;  %v5935_v59 = vadd.f32 %v1597_v48, %v1309_v52  ;;  %v1457_v61 = vpop.f32.mrb[3].mxu0  ;;  %v1599_v63 = vpop.f32.mrb[3].mxu1  ;;  %v1640_v51 = vld [vmem:[%s7440_s3 + $0x50] sm:$0xff]  ;;  %v1633_v52 = vld [vmem:[%s7440_s3 + $0x18] sm:$0xff] }
 0x2ac   : > { %v5934_v0 = vadd.f32 %v1457_v61, %v1305_v53  ;;  %v5936_v2 = vadd.f32 %v1599_v63, %v1313_v54  ;;  %v1637_v54 = vld [vmem:[%s7440_s3 + $0x38] sm:$0xff] }
 0x2ad   : > { %v5361_v3 = vmul.f32 -1.442695, %v5933_v57  ;;  %v5363_v4 = vmul.f32 -1.442695, %v5935_v59 }
 0x2ae   : > { %v5362_v6 = vmul.f32 -1.442695, %v5934_v0  ;;  %v5364_v7 = vmul.f32 -1.442695, %v5936_v2  ;;  %v1782_v8 = vpop.f32.mrb[4].mxu0 }
 0x2af   : > { %6158 = vpow2.f32 %v5361_v3  ;;  %v5480_v60 = vpop.f32.mrb[5].mxu0  ;;  %5492 = vmatpush3.msra.mxu1 %v1782_v8  ;;  %v1645_v8 = vld [vmem:[%s7440_s3 + $0x78] sm:$0xff] }
 0x2b0   : > { %6160 = vpow2.f32 %v5363_v4  ;;  %5494 = vmatmul.mubr.msk.f32.vlgmr.msra.gmra.mrb[6].mxu1 %vm1712_vm1, %v6831_v5 }
 0x2b1   : > { %6162 = vpow2.f32 %v5362_v6  ;;  %2173 = vmatprep.mubr.f32.mxu1 %v6431_v1 }
 0x2b2   : > { %6164 = vpow2.f32 %v5364_v7  ;;  %v1926_v10 = vpop.f32.mrb[6].mxu0 }
 0x2b3   : > { %v5490_v11 = vpop.f32.mrb[7].mxu0  ;;  %5497 = vmatpush3.msra.mxu0 %v1926_v10 }
 0x2b4   : > { %5499 = vmatmul.mubr.msk.f32.vlgmr.msra.gmra.mrb[8].mxu0 %vm1712_vm1, %v6838_v9 }
 0x2b5   : > { %2244 = vmatprep.mubr.f32.mxu0 %v6431_v1 }
 0x2b9   : > { %v6159_v12 = vpop.eup %6158 }
 0x2ba   : > { %v6161_v13 = vpop.eup %6160  ;;  %v1614_v62 = vadd.f32 1.0, %v6159_v12 }
 0x2bb   : > { %v6163_v14 = vpop.eup %6162  ;;  %v1616_v15 = vadd.f32 1.0, %v6161_v13 }
 0x2bc   : > { %v6165_v16 = vpop.eup %6164  ;;  %6166 = vrcp.f32 %v1614_v62  ;;  %v1615_v17 = vadd.f32 1.0, %v6163_v14 }
 0x2bd   : > { %6168 = vrcp.f32 %v1616_v15  ;;  %v1617_v18 = vadd.f32 1.0, %v6165_v16 }
 0x2be   : > { %6170 = vrcp.f32 %v1615_v17 }
 0x2bf   : > { %6172 = vrcp.f32 %v1617_v18 }
 0x2c6   : > { %v6167_v19 = vpop.eup %6166 }
 0x2c7   : > { %v6169_v20 = vpop.eup %6168  ;;  %v1626_v21 = vmul.f32 %v6167_v19, %v5933_v57  ;;  %v1644_v57 = vld [vmem:[%s7440_s3 + $0x70] sm:$0xff] }
 0x2c8   : > { %v6171_v22 = vpop.eup %6170  ;;  %v1628_v23 = vmul.f32 %v6169_v20, %v5935_v59 }
 0x2c9   : > { %v6173_v28 = vpop.eup %6172  ;;  %v1649_v29 = vrot.slane %v1626_v21, %v6741_v47  ;;  %v1627_v30 = vmul.f32 %v6171_v22, %v5934_v0  ;;  %v1641_v0 = vld [vmem:[%s7440_s3 + $0x58] sm:$0xff]  ;;  %v1854_v22 = vpop.f32.mrb[4].mxu1 }
 0x2ca   : > { %v1657_v32 = vrot.slane %v1628_v23, %v6741_v47  ;;  %v1629_v33 = vmul.f32 %v6173_v28, %v5936_v2  ;;  %v5485_v23 = vpop.f32.mrb[5].mxu1 }
 0x2cb   : > { %v1653_v37 = vrot.slane %v1627_v30, %v6741_v47  ;;  %v1662_v56 = vmul.f32 %v1649_v29, %v1630_v24  ;;  %v1666_v40 = vmul.f32 %v1649_v29, %v1634_v26  ;;  %v1670_v43 = vmul.f32 %v1649_v29, %v1638_v27  ;;  %v2090_v24 = vld [vmem:[#allocation9 + $0x8] sm:$0xff]  ;;  %v2092_v27 = vld [vmem:[#allocation9 + $0x18] sm:$0xff]  ;;  %v2089_v30 = vld [vmem:[#allocation9] sm:$0xff] }
 0x2cc   : > { %v1661_v50 = vrot.slane %v1629_v33, %v6741_v47  ;;  %v1674_v59 = vmul.f32 %v1649_v29, %v1642_v36  ;;  %v1664_v61 = vmul.f32 %v1657_v32, %v1632_v38  ;;  %v1668_v63 = vmul.f32 %v1657_v32, %v1636_v39  ;;  %v2094_v26 = vld [vmem:[#allocation9 + $0x28] sm:$0xff]  ;;  %v2096_v29 = vld [vmem:[#allocation9 + $0x38] sm:$0xff] }
 0x2cd   : > { %v1663_v53 = vmul.f32 %v1653_v37, %v1631_v31  ;;  %v1667_v55 = vmul.f32 %v1653_v37, %v1635_v34  ;;  %v1671_v48 = vmul.f32 %v1653_v37, %v1639_v35  ;;  %v1675_v2 = vmul.f32 %v1653_v37, %v1643_v44  ;;  %v2093_v31 = vld [vmem:[#allocation9 + $0x20] sm:$0xff]  ;;  %v2091_v34 = vld [vmem:[#allocation9 + $0x10] sm:$0xff]  ;;  %v2098_v37 = vld [vmem:[#allocation9 + $0x48] sm:$0xff] }
 0x2ce   : > { %v1672_v6 = vmul.f32 %v1657_v32, %v1640_v51  ;;  %v1665_v60 = vmul.f32 %v1661_v50, %v1633_v52  ;;  %v1669_v10 = vmul.f32 %v1661_v50, %v1637_v54  ;;  %v1676_v11 = vmul.f32 %v1657_v32, %v1644_v57  ;;  %v2095_v35 = vld [vmem:[#allocation9 + $0x30] sm:$0xff]  ;;  %v2102_v38 = vld [vmem:[#allocation9 + $0x68] sm:$0xff]  ;;  %v2101_v44 = vld [vmem:[#allocation9 + $0x60] sm:$0xff] }
 0x2cf   : > { %v1678_v3 = vadd.f32 %v1663_v53, %v1662_v56  ;;  %v1683_v4 = vadd.f32 %v1667_v55, %v1666_v40  ;;  %v1688_v7 = vadd.f32 %v1671_v48, %v1670_v43  ;;  %v1693_v12 = vadd.f32 %v1675_v2, %v1674_v59  ;;  %v2100_v56 = vld [vmem:[#allocation9 + $0x58] sm:$0xff]  ;;  %v2097_v43 = vld [vmem:[#allocation9 + $0x40] sm:$0xff]  ;;  %v2099_v52 = vld [vmem:[#allocation9 + $0x50] sm:$0xff] }
 0x2d0   : > { %v1673_v14 = vmul.f32 %v1661_v50, %v1641_v0  ;;  %v1677_v16 = vmul.f32 %v1661_v50, %v1645_v8  ;;  %v5821_v28 = vpack.c.bf16 %v2094_v26, %v2090_v24  ;;  %v5829_v32 = vpack.c.bf16 %v2096_v29, %v2092_v27  ;;  %v2104_v40 = vld [vmem:[#allocation9 + $0x78] sm:$0xff]  ;;  %v2103_v53 = vld [vmem:[#allocation9 + $0x70] sm:$0xff]  ;;  %v2253_v55 = vld [vmem:[#allocation9 + $0x88] sm:$0xff]  ;;  %v2084_v0 = vpop.permute.xlu0 %2083 }
 0x2d1   : > { %v1679_v13 = vadd.f32 %v1678_v3, %v1664_v61  ;;  %v1684_v62 = vadd.f32 %v1683_v4, %v1668_v63  ;;  %v1689_v15 = vadd.f32 %v1688_v7, %v1672_v6  ;;  %v1694_v17 = vadd.f32 %v1693_v12, %v1676_v11  ;;  %v2257_v48 = vld [vmem:[#allocation9 + $0xa8] sm:$0xff]  ;;  %v2255_v57 = vld [vmem:[#allocation9 + $0x98] sm:$0xff] }
 0x2d2   : > { %v5823_v33 = vpack.c.bf16 %v2093_v31, %v2089_v30  ;;  %5822 = vmatprep.subr.bf16.mxu1 %v5821_v28  ;;  %v5831_v36 = vpack.c.bf16 %v2095_v35, %v2091_v34  ;;  %5830 = vmatprep.subr.bf16.mxu0 %v5829_v32  ;;  %v5825_v39 = vpack.c.bf16 %v2102_v38, %v2098_v37  ;;  %v2259_v61 = vld [vmem:[#allocation9 + $0xb8] sm:$0xff]  ;;  %v6434_v6 = vmov 1   ;;  %v2264_v28 = vld [vmem:[#allocation9 + $0xe0] sm:$0xff]  ;;  %v2262_v31 = vld [vmem:[#allocation9 + $0xd0] sm:$0xff] }
 0x2d3   : > { %v1680_v18 = vadd.f32 %v1679_v13, %v1665_v60  ;;  %v6896_v19 = vadd.f32 %v1684_v62, %v1669_v10  ;;  %v6898_v20 = vadd.f32 %v1689_v15, %v1673_v14  ;;  %v6900_v21 = vadd.f32 %v1694_v17, %v1677_v16  ;;  %v1698_v2 = vld [vmem:[%s7372_s8] sm:$0xff]  ;;  %v2254_v15 = vld [vmem:[#allocation9 + $0x90] sm:$0xff]  ;;  %v2261_v17 = vld [vmem:[#allocation9 + $0xc8] sm:$0xff] }
 0x2d4   : > { %5824 = vmatpush1.bf16.msra.mxu1 %v5823_v33  ;;  %5832 = vmatpush1.bf16.msra.mxu0 %v5831_v36  ;;  %v5833_v50 = vpack.c.bf16 %v2104_v40, %v2100_v56  ;;  %v5827_v51 = vpack.c.bf16 %v2101_v44, %v2097_v43  ;;  %v5835_v54 = vpack.c.bf16 %v2103_v53, %v2099_v52  ;;  %v2252_v13 = vld [vmem:[#allocation9 + $0x80] sm:$0xff]  ;;  %v2258_v16 = vld [vmem:[#allocation9 + $0xb0] sm:$0xff]  ;;  %v2267_v23 = vld [vmem:[#allocation9 + $0xf8] sm:$0xff] }
 0x2d5   : > { %1681 = vadd.xlane.f32.xlu0 %v1680_v18  ;;  %5826 = vmatprep.subr.bf16.mxu1 %v5825_v39  ;;  %v5837_v59 = vpack.c.bf16 %v2257_v48, %v2253_v55  ;;  %v5845_v63 = vpack.c.bf16 %v2259_v61, %v2255_v57  ;;  %v2256_v62 = vld [vmem:[#allocation9 + $0xa0] sm:$0xff]  ;;  %v2265_v18 = vld [vmem:[#allocation9 + $0xe8] sm:$0xff]  ;;  %v5847_v27 = vpack.c.bf16 %v2258_v16, %v2254_v15  ;;  %v2266_v32 = vld [vmem:[#allocation9 + $0xf0] sm:$0xff] }
 0x2d6   : > { %5834 = vmatprep.subr.bf16.mxu0 %v5833_v50  ;;  %v5839_v26 = vpack.c.bf16 %v2256_v62, %v2252_v13  ;;  %v5841_v29 = vpack.c.bf16 %v2265_v18, %v2261_v17  ;;  %v2412_v33 = vld [vmem:[#allocation9 + $0x108] sm:$0xff]  ;;  %v2414_v35 = vld [vmem:[#allocation9 + $0x118] sm:$0xff]  ;;  %v5851_v38 = vpack.c.bf16 %v2266_v32, %v2262_v31  ;;  %v2411_v56 = vld [vmem:[#allocation9 + $0x100] sm:$0xff] }
 0x2d7   : > { %v2416_v34 = vld [vmem:[#allocation9 + $0x128] sm:$0xff]  ;;  %v2418_v36 = vld [vmem:[#allocation9 + $0x138] sm:$0xff]  ;;  %v2415_v39 = vld [vmem:[#allocation9 + $0x120] sm:$0xff] }
 0x2d8   : > { %5828 = vmatpush1.bf16.msra.mxu1 %v5827_v51  ;;  %5836 = vmatpush1.bf16.msra.mxu0 %v5835_v54  ;;  %v5853_v40 = vpack.c.bf16 %v2416_v34, %v2412_v33  ;;  %v5861_v43 = vpack.c.bf16 %v2418_v36, %v2414_v35  ;;  %v2413_v44 = vld [vmem:[#allocation9 + $0x110] sm:$0xff]  ;;  %v2420_v51 = vld [vmem:[#allocation9 + $0x148] sm:$0xff]  ;;  %v2422_v53 = vld [vmem:[#allocation9 + $0x158] sm:$0xff]  ;;  %v5855_v55 = vpack.c.bf16 %v2415_v39, %v2411_v56 }
 0x2d9   : > { %5838 = vmatprep.subr.bf16.mxu1 %v5837_v59  ;;  %5846 = vmatprep.subr.bf16.mxu0 %v5845_v63  ;;  %v2417_v50 = vld [vmem:[#allocation9 + $0x130] sm:$0xff]  ;;  %v2424_v52 = vld [vmem:[#allocation9 + $0x168] sm:$0xff]  ;;  %v2426_v54 = vld [vmem:[#allocation9 + $0x178] sm:$0xff] }
 0x2da   : > { %v5863_v48 = vpack.c.bf16 %v2417_v50, %v2413_v44  ;;  %v2419_v57 = vld [vmem:[#allocation9 + $0x140] sm:$0xff]  ;;  %v5857_v59 = vpack.c.bf16 %v2424_v52, %v2420_v51  ;;  %v5865_v61 = vpack.c.bf16 %v2426_v54, %v2422_v53 }
 0x2db   : > { %v2423_v63 = vld [vmem:[#allocation9 + $0x160] sm:$0xff] }
 0x2dc   : > { %v3022_v33 = vld [vmem:[%s7380_s16] sm:$0xff]  ;;  %v3023_v34 = vld [vmem:[%s7380_s16 + $0x8] sm:$0xff] }
 0x362   : > { %v1682_v3 = vpop.xlane.xlu0 %1681 }
 0x363   : > { %v1702_v4 = vadd.f32 %v1698_v2, %v1682_v3  ;;  %v2425_v2 = vld [vmem:[#allocation9 + $0x170] sm:$0xff]  ;;  %v5859_v3 = vpack.c.bf16 %v2423_v63, %v2419_v57 }
 0x365   : > { %2927 = vperm.xlu1 %6059, %v1702_v4  }
 0x369   : > { %6060 = vset.pattern.permute.xlu1 %v6434_v6  ;;  %v2880_v6 = vld [vmem:[%s775_s0] sm:$0xf]  ;;  %s5233_s0 = sshll.u32 %s771_s2, 4  ;;  %s7324_s0 = int_to_ptr.vmem [resolvable:$true] %s5233_s0 }
 0x36a   : > { %2858 = vperm.xlu1 %6060, %v6811_v42   ;;  %v2263_v42 = vld [vmem:[#allocation9 + $0xd8] sm:$0xff]  ;;  %p6361_p13 = scmp.lt.s32.totalorder %s7324_s0, %s6359_s19 }
 0x36b   : > { %v5849_v30 = vpack.c.bf16 %v2267_v23, %v2263_v42 }
 0x36e   : > { %2948 = vrot.lane.b32.xlu1 %v6431_v1, %s6435_s24 }
 0x36f   : > { %6081 = vset.pattern.permute.xlu1 %v6433_v41  ;;  %v2260_v41 = vld [vmem:[#allocation9 + $0xc0] sm:$0xff] }
 0x370   : > { %v5843_v37 = vpack.c.bf16 %v2264_v28, %v2260_v41 }
 0x383   : > { %v1999_v7 = vpop.f32.mrb[6].mxu1 }
 0x384   : > { %v2000_v8 = vadd.f32 %v1999_v7, %v1854_v22  ;;  %v5495_v60 = vpop.f32.mrb[7].mxu1  ;;  %v2884_v7 = vpop.permute.xlu1 %2883 }
 0x385   : > { %v2894_v60 = vrot.slane %v2880_v6, %v6749_v49 }
 0x387   : > { %v2072_v10 = vpop.f32.mrb[8].mxu0  ;;  %v2908_v13 = vmul.f32 %v2894_v60, %v2884_v7 }
 0x388   : > { %v2076_v11 = vadd.f32 %v2072_v10, %v2000_v8  ;;  %v5500_v12 = vpop.f32.mrb[9].mxu0  ;;  %v2890_v8 = vrot.slane %v2880_v6, %v6741_v47  ;;  %v2898_v10 = vrot.slane %v2880_v6, %v6767_v25  ;;  %v2915_v62 = vpop.permute.xlu1 %2914 }
 0x389   : > { %v6931_v17 = vadd.f32 %v2915_v62, %v2908_v13 }
 0x38a   : > { %v2086_v14 = vadd.f32 %v2084_v0, %v2076_v11  ;;  %v2421_v0 = vld [vmem:[#allocation9 + $0x150] sm:$0xff]  ;;  %v2902_v11 = vrot.slane %v2880_v6, %v6756_v58  ;;  %v2907_v12 = vmul.f32 %v2890_v8, %v2884_v7 }
 0x38b   : > { %v5867_v4 = vpack.c.bf16 %v2425_v2, %v2421_v0  ;;  %v2922_v23 = vmax.f32 %v6931_v17, 0.0 }
 0x38c   : > { %v2087_v24 = vmul.f32 0.4, %v2086_v14  ;;  %v2910_v15 = vmul.f32 %v2902_v11, %v2884_v7  ;;  %v6929_v16 = vadd.f32 %v2915_v62, %v2907_v12  ;;  %v1699_v11 = vld [vmem:[%s7372_s8 + $0x8] sm:$0xff] }
 0x38e   : > { %v2088_v22 = vmax.f32 %v2086_v14, %v2087_v24  ;;  %v2909_v14 = vmul.f32 %v2898_v10, %v2884_v7  ;;  %v6935_v42 = vadd.f32 %v2915_v62, %v2910_v15  ;;  %v2921_v49 = vmax.f32 %v6929_v16, 0.0 }
 0x390   : > { %5374 = vmatmul.mubr.msk.f32.vlgmr.msra.gmra.mrb[8].mxu1 %vm2105_vm2, %v2088_v22  ;;  %5375 = vmatmul.mubr.msk.f32.vlgmr.msra.gmra.mrb[10].mxu0 %vm2105_vm2, %v2088_v22  ;;  %v6933_v18 = vadd.f32 %v2915_v62, %v2909_v14  ;;  %v2924_v58 = vmax.f32 %v6935_v42, 0.0  ;;  %v3227_v42 = vld [vmem:[%s7381_s17 + $0x8] sm:$0xff] }
 0x391   : > { %5840 = vmatpush1.bf16.msra.mxu1 %v5839_v26  ;;  %5848 = vmatpush1.bf16.msra.mxu0 %v5847_v27 }
 0x392   : > { %5842 = vmatprep.subr.bf16.mxu1 %v5841_v29  ;;  %5850 = vmatprep.subr.bf16.mxu0 %v5849_v30  ;;  %v2923_v25 = vmax.f32 %v6933_v18, 0.0  ;;  %v3228_v29 = vld [vmem:[%s7382_s18] sm:$0xff] }
 0x393   : > { %2332 = vmatprep.mubr.f32.mxu1 %v6431_v1  ;;  %2403 = vmatprep.mubr.f32.mxu0 %v6431_v1 }
 0x395   : > { %5844 = vmatpush1.bf16.msra.mxu1 %v5843_v37  ;;  %5852 = vmatpush1.bf16.msra.mxu0 %v5851_v38 }
 0x396   : > { %5854 = vmatprep.subr.bf16.mxu1 %v5853_v40  ;;  %5862 = vmatprep.subr.bf16.mxu0 %v5861_v43 }
 0x398   : > { %5376 = vmatmul.mubr.msk.f32.vlgmr.msra.gmra.mrb[10].mxu1 %vm2105_vm2, %v2088_v22  ;;  %5377 = vmatmul.mubr.msk.f32.vlgmr.msra.gmra.mrb[12].mxu0 %vm2105_vm2, %v2088_v22 }
 0x399   : > { %5856 = vmatpush1.bf16.msra.mxu1 %v5855_v55  ;;  %5864 = vmatpush1.bf16.msra.mxu0 %v5863_v48 }
 0x39a   : > { %5858 = vmatprep.subr.bf16.mxu1 %v5857_v59  ;;  %5866 = vmatprep.subr.bf16.mxu0 %v5865_v61 }
 0x39b   : > { %2491 = vmatprep.mubr.f32.mxu1 %v6431_v1  ;;  %2562 = vmatprep.mubr.f32.mxu0 %v6431_v1 }
 0x39d   : > { %5860 = vmatpush1.bf16.msra.mxu1 %v5859_v3  ;;  %5868 = vmatpush1.bf16.msra.mxu0 %v5867_v4 }
 0x3a0   : > { %5378 = vmatmul.mubr.msk.f32.vlgmr.msra.gmra.mrb[12].mxu1 %vm2105_vm2, %v2088_v22  ;;  %5379 = vmatmul.mubr.msk.f32.vlgmr.msra.gmra.mrb[14].mxu0 %vm2105_vm2, %v2088_v22 }
 0x3a1   : > { %2633 = vmatprep.mubr.f32.mxu1 %v6431_v1  ;;  %2704 = vmatprep.mubr.f32.mxu0 %v6431_v1 }
 0x3e4   : > { %v2928_v24 = vpop.permute.xlu1 %2927 }
 0x3e5   : > { %v6943_v26 = vadd.f32 %v2928_v24, %v2922_v23  ;;  %v6947_v27 = vadd.f32 %v2928_v24, %v2921_v49  ;;  %v6951_v41 = vadd.f32 %v2928_v24, %v2923_v25  ;;  %v6955_v28 = vadd.f32 %v2928_v24, %v2924_v58 }
 0x3e7   : > { %2981 = vrot.lane.b32.xlu0 %v6947_v27, %s6436_s23  ;;  %v6061_v22 = vpack.i.bf16 %v6943_v26, %v6947_v27  ;;  %v6066_v30 = vpack.i.bf16 %v6955_v28, %v6951_v41  ;;  %v6071_v31 = vpack.i.bf16 %v6951_v41, %v6943_v26  ;;  %v6076_v32 = vpack.i.bf16 %v6431_v1, %v6955_v28 }
 0x3e9   : > { %6062 = vrot.lane.b32.xlu1 %v6061_v22, %s6435_s24  ;;  %v6981_v35 = vpop.permute.xlu1 %2858 }
 0x3eb   : > { %3232 = vperm.xlu0 %6058, %v3228_v29  }
 0x3ed   : > { %6067 = vrot.lane.b32.xlu1 %v6066_v30, %s6435_s24  ;;  %v2949_v36 = vpop.permute.xlu1 %2948 }
 0x3f1   : > { %6072 = vrot.lane.b32.xlu1 %v6071_v31, %s6436_s23 }
 0x3f5   : > { %6077 = vrot.lane.b32.xlu1 %v6076_v32, %s6436_s23 }
 0x3f9   : > { %3026 = vperm.xlu1 %6081, %v3022_v33  }
 0x3fd   : > { %3031 = vperm.xlu1 %6081, %v3023_v34  }
 0x421   : > { %1686 = vadd.xlane.f32.xlu1 %v6896_v19 }
 0x45b   : > { %v6063_v37 = vpop.permute.xlu1 %6062 }
 0x45c   : > { %v6065_v53 = vunpack.i.h.bf16 %v6063_v37  ;;  %v6064_v54 = vunpack.i.l.bf16 %v6063_v37 }
 0x45e   : > { %v2960_v61 = vsel %vm2958_vm4, %v6064_v54, %v6065_v53 }
 0x45f   : > { %v6068_v38 = vpop.permute.xlu1 %6067  ;;  %v5869_v4 = vpack.c.bf16 %v6943_v26, %v2960_v61 }
 0x460   : > { %v6070_v55 = vunpack.i.h.bf16 %v6068_v38  ;;  %v6069_v48 = vunpack.i.l.bf16 %v6068_v38  ;;  %v2982_v38 = vpop.permute.xlu0 %2981 }
 0x462   : > { %v2962_v63 = vsel %vm2958_vm4, %v6069_v48, %v6070_v55  ;;  %v2961_v0 = vsel %vm2958_vm4, %v6065_v53, %v6069_v48 }
 0x463   : > { %v6983_v56 = vpop.permute.xlu1 %6072  ;;  %v2175_v39 = vpop.f32.mrb[8].mxu1  ;;  %v5877_v6 = vpack.c.bf16 %v6955_v28, %v2962_v63  ;;  %v5879_v8 = vpack.c.bf16 %v6951_v41, %v2961_v0 }
 0x464   : > { %v2246_v40 = vpop.f32.mrb[10].mxu0  ;;  %v2177_v43 = vpop.f32.mrb[9].mxu1  ;;  %v6075_v19 = vunpack.i.h.bf16 %v6983_v56  ;;  %v6074_v28 = vunpack.i.l.bf16 %v6983_v56 }
 0x465   : > { %v2248_v44 = vpop.f32.mrb[11].mxu0  ;;  %2569 = vmatprep.subr.mxu1 %v2177_v43 }
 0x466   : > { %2640 = vmatprep.subr.mxu0 %v2248_v44  ;;  %2570 = vmatpush1.msra.mxu1 %v2175_v39  ;;  %v2993_v39 = vsel %vm2991_vm3, %v6074_v28, %v6075_v19  ;;  %v2992_v56 = vsel %vm2991_vm3, %v2982_v38, %v6074_v28 }
 0x467   : > { %2641 = vmatpush1.msra.mxu0 %v2246_v40  ;;  %v6985_v50 = vpop.permute.xlu1 %6077  ;;  %5380 = vmatmul.mubr.msk.f32.vlgmr.msra.gmra.mrb[10].mxu1 %vm1712_vm1, %v6831_v5 }
 0x468   : > { %v6079_v51 = vunpack.i.l.bf16 %v6985_v50  ;;  %5381 = vmatmul.mubr.msk.f32.vlgmr.msra.gmra.mrb[12].mxu0 %vm1712_vm1, %v6831_v5  ;;  %2775 = vmatprep.mubr.f32.mxu1 %v6431_v1  ;;  %v2959_v5 = vsel %vm2958_vm4, %v2949_v36, %v6064_v54  ;;  %v6080_v22 = vunpack.i.h.bf16 %v6985_v50 }
 0x469   : > { %2846 = vmatprep.mubr.f32.mxu0 %v6431_v1  ;;  %v5871_v7 = vpack.c.bf16 %v6947_v27, %v2959_v5 }
 0x46a   : > { %v6996_v52 = vsel %vm2991_vm3, %v6075_v19, %v6079_v51  ;;  %v3004_v19 = vld [vmem:[%s7379_s15] sm:$0xff] }
 0x473   : > { %v2493_v57 = vpop.f32.mrb[12].mxu1  ;;  %v2564_v59 = vpop.f32.mrb[14].mxu0 }
 0x474   : > { %v2495_v2 = vpop.f32.mrb[13].mxu1  ;;  %v2566_v3 = vpop.f32.mrb[15].mxu0 }
 0x475   : > { %2711 = vmatprep.subr.mxu1 %v2495_v2  ;;  %2782 = vmatprep.subr.mxu0 %v2566_v3 }
 0x476   : > { %2712 = vmatpush1.msra.mxu1 %v2493_v57  ;;  %2783 = vmatpush1.msra.mxu0 %v2564_v59 }
 0x477   : > { %5382 = vmatmul.mubr.msk.f32.vlgmr.msra.gmra.mrb[10].mxu1 %vm1712_vm1, %v6838_v9  ;;  %5383 = vmatmul.mubr.msk.f32.vlgmr.msra.gmra.mrb[12].mxu0 %vm1712_vm1, %v6838_v9 }
 0x478   : > { %5870 = vmatprep.subr.bf16.mxu1 %v5869_v4  ;;  %5878 = vmatprep.subr.bf16.mxu0 %v5877_v6  ;;  %v3027_v60 = vpop.permute.xlu1 %3026 }
 0x479   : > { %5872 = vmatpush1.bf16.msra.mxu1 %v5871_v7  ;;  %5880 = vmatpush1.bf16.msra.mxu0 %v5879_v8 }
 0x47a   : > { %3104 = vmatprep.mubr.f32.mxu1 %v6431_v1  ;;  %3181 = vmatprep.mubr.f32.mxu0 %v6431_v1 }
 0x47c   : > { %v7012_v10 = vpop.permute.xlu1 %3031 }
 0x4ae   : > { %v1687_v12 = vpop.xlane.xlu1 %1686 }
 0x4af   : > { %v1703_v13 = vadd.f32 %v1699_v11, %v1687_v12 }
 0x4b1   : > { %3414 = vperm.xlu0 %6058, %v1703_v13  }
 0x4b5   : > { %3435 = vrot.lane.b32.xlu0 %v6431_v1, %s6437_s26 }
 0x54a   : > { %v2777_v62 = vpop.f32.mrb[10].mxu1  ;;  %v2848_v9 = vpop.f32.mrb[12].mxu0 }
 0x54b   : > { %v2861_v14 = vadd.f32 %v6981_v35, %v2777_v62  ;;  %v2863_v15 = vadd.f32 %v6981_v35, %v2848_v9  ;;  %v2779_v24 = vpop.f32.mrb[11].mxu1  ;;  %v2850_v26 = vpop.f32.mrb[13].mxu0 }
 0x54c   : > { %v2862_v27 = vadd.f32 %v6981_v35, %v2779_v24  ;;  %v2864_v41 = vadd.f32 %v6981_v35, %v2850_v26  ;;  %v2995_v35 = vsel %vm2991_vm3, %v6079_v51, %v6080_v22  ;;  %v3005_v51 = vld [vmem:[%s7379_s15 + $0x8] sm:$0xff] }
 0x54d   : > { %v2865_v29 = vmul.f32 0.4, %v2861_v14  ;;  %v2867_v30 = vmul.f32 0.4, %v2863_v15 }
 0x54e   : > { %v2866_v31 = vmul.f32 0.4, %v2862_v27  ;;  %v2868_v32 = vmul.f32 0.4, %v2864_v41 }
 0x54f   : > { %v7023_v33 = vmax.f32 %v2861_v14, %v2865_v29  ;;  %v7025_v34 = vmax.f32 %v2863_v15, %v2867_v30 }
 0x550   : > { %v7027_v36 = vmax.f32 %v2862_v27, %v2866_v31  ;;  %v7029_v37 = vmax.f32 %v2864_v41, %v2868_v32 }
 0x551   : > { %v5875_v44 = vpack.c.bf16 %v7023_v33, %v2992_v56  ;;  %v5883_v50 = vpack.c.bf16 %v7025_v34, %v6996_v52 }
 0x552   : > { %v5873_v40 = vpack.c.bf16 %v7027_v36, %v2993_v39  ;;  %v5881_v43 = vpack.c.bf16 %v7029_v37, %v2995_v35 }
 0x554   : > { %5874 = vmatprep.subr.bf16.mxu1 %v5873_v40  ;;  %5882 = vmatprep.subr.bf16.mxu0 %v5881_v43  ;;  %v3226_v40 = vld [vmem:[%s7381_s17] sm:$0xff]  ;;  %v3233_v43 = vpop.permute.xlu0 %3232 }
 0x555   : > { %5876 = vmatpush1.bf16.msra.mxu1 %v5875_v44  ;;  %5884 = vmatpush1.bf16.msra.mxu0 %v5883_v50 }
 0x558   : > { %5384 = vmatmul.mubr.msk.f32.vlgmr.msra.gmra.mrb[14].mxu1 %vm2105_vm2, %v3004_v19  ;;  %5386 = vmatmul.mubr.msk.f32.vlgmr.msra.gmra.mrb[16].mxu0 %vm2105_vm2, %v3004_v19 }
 0x559   : > { %3110 = vmatprep.mubr.f32.mxu1 %v6431_v1  ;;  %3187 = vmatprep.mubr.f32.mxu0 %v6431_v1 }
 0x55c   : > { %5385 = vmatmul.mubr.msk.f32.gmra.mrb[16].mxu1 %vm2105_vm2, %v3005_v51  ;;  %5387 = vmatmul.mubr.msk.f32.gmra.mrb[18].mxu0 %vm2105_vm2, %v3005_v51 }
 0x55d   : > { %3310 = vmatprep.mubr.f32.mxu1 %v6431_v1  ;;  %3387 = vmatprep.mubr.f32.mxu0 %v6431_v1 }
 0x62b   : > { %v3106_v52 = vpop.f32.mrb[14].mxu1  ;;  %v3183_v53 = vpop.f32.mrb[16].mxu0 }
 0x62c   : > { %v3107_v54 = vadd.f32 %v3106_v52, %v3027_v60  ;;  %v3184_v55 = vadd.f32 %v3183_v53, %v3027_v60  ;;  %v3108_v48 = vpop.f32.mrb[15].mxu1  ;;  %v3185_v57 = vpop.f32.mrb[17].mxu0 }
 0x62d   : > { %v3109_v59 = vadd.f32 %v3108_v48, %v3027_v60  ;;  %v3186_v61 = vadd.f32 %v3185_v57, %v3027_v60 }
 0x62e   : > { %v5388_v63 = vmul.f32 -1.442695, %v3107_v54  ;;  %v5390_v5 = vmul.f32 -1.442695, %v3184_v55 }
 0x62f   : > { %v5389_v0 = vmul.f32 -1.442695, %v3109_v59  ;;  %v5391_v2 = vmul.f32 -1.442695, %v3186_v61  ;;  %v3112_v3 = vpop.f32.mrb[16].mxu1  ;;  %v3189_v4 = vpop.f32.mrb[18].mxu0 }
 0x630   : > { %6174 = vpow2.f32 %v5388_v63  ;;  %v3114_v6 = vpop.f32.mrb[17].mxu1  ;;  %v3191_v7 = vpop.f32.mrb[19].mxu0  ;;  %v3113_v8 = vadd.f32 %v3112_v3, %v7012_v10  ;;  %v3190_v11 = vadd.f32 %v3189_v4, %v7012_v10 }
 0x631   : > { %6176 = vpow2.f32 %v5390_v5  ;;  %v3115_v12 = vadd.f32 %v3114_v6, %v7012_v10  ;;  %v3192_v60 = vadd.f32 %v3191_v7, %v7012_v10  ;;  %v3415_v5 = vpop.permute.xlu0 %3414  ;;  %v5398_v7 = vld [vmem:[%s7380_s16 + $0x10] sm:$0xff] }
 0x632   : > { %6178 = vpow2.f32 %v5389_v0 }
 0x633   : > { %6180 = vpow2.f32 %v5391_v2 }
 0x634   : > { %6182 = vtanh.f32 %v3113_v8  ;;  %v5399_v8 = vld [vmem:[%s7380_s16 + $0x18] sm:$0xff] }
 0x635   : > { %6184 = vtanh.f32 %v3190_v11  ;;  %v3436_v11 = vpop.permute.xlu0 %3435 }
 0x636   : > { %6186 = vtanh.f32 %v3115_v12 }
 0x637   : > { %6188 = vtanh.f32 %v3192_v60 }
 0x63a   : > { %v6175_v13 = vpop.eup %6174 }
 0x63b   : > { %v6177_v62 = vpop.eup %6176  ;;  %v3206_v9 = vadd.f32 1.0, %v6175_v13 }
 0x63c   : > { %v6179_v14 = vpop.eup %6178  ;;  %v3208_v15 = vadd.f32 1.0, %v6177_v62 }
 0x63d   : > { %v6181_v24 = vpop.eup %6180  ;;  %6190 = vrcp.f32 %v3206_v9  ;;  %v3207_v26 = vadd.f32 1.0, %v6179_v14 }
 0x63e   : > { %6192 = vrcp.f32 %v3208_v15  ;;  %v3209_v27 = vadd.f32 1.0, %v6181_v24  ;;  %v6183_v41 = vpop.eup %6182 }
 0x63f   : > { %6194 = vrcp.f32 %v3207_v26  ;;  %v6185_v28 = vpop.eup %6184 }
 0x640   : > { %6196 = vrcp.f32 %v3209_v27  ;;  %v6187_v22 = vpop.eup %6186 }
 0x641   : > { %v6189_v10 = vpop.eup %6188 }
 0x647   : > { %v6191_v29 = vpop.eup %6190 }
 0x648   : > { %v6193_v30 = vpop.eup %6192  ;;  %v3222_v31 = vmul.f32 %v6191_v29, %v6183_v41 }
 0x649   : > { %v6195_v32 = vpop.eup %6194  ;;  %v3224_v38 = vmul.f32 %v6193_v30, %v6185_v28 }
 0x64a   : > { %v6197_v39 = vpop.eup %6196  ;;  %v3223_v35 = vmul.f32 %v6195_v32, %v6187_v22 }
 0x64b   : > { %v3225_v56 = vmul.f32 %v6197_v39, %v6189_v10 }
 0x64c   : > { %3246 = vmatprep.subr.mxu1 %v3223_v35 }
 0x64d   : > { %3323 = vmatprep.subr.mxu0 %v3225_v56  ;;  %3247 = vmatpush1.msra.mxu1 %v3222_v31 }
 0x64e   : > { %3324 = vmatpush1.msra.mxu0 %v3224_v38  ;;  %5392 = vmatmul.mubr.msk.f32.vlgmr.msra.gmra.mrb[18].mxu1 %vm1712_vm1, %v3226_v40 }
 0x64f   : > { %5394 = vmatmul.mubr.msk.f32.vlgmr.msra.gmra.mrb[20].mxu0 %vm1712_vm1, %v3226_v40  ;;  %3316 = vmatprep.mubr.f32.mxu1 %v6431_v1 }
 0x650   : > { %3393 = vmatprep.mubr.f32.mxu0 %v6431_v1 }
 0x652   : > { %5393 = vmatmul.mubr.msk.f32.gmra.mrb[20].mxu1 %vm1712_vm1, %v3227_v42 }
 0x653   : > { %5395 = vmatmul.mubr.msk.f32.gmra.mrb[22].mxu0 %vm1712_vm1, %v3227_v42  ;;  %3593 = vmatprep.mubr.f32.mxu1 %v6431_v1 }
 0x654   : > { %3670 = vmatprep.mubr.f32.mxu0 %v6431_v1 }
 0x721   : > { %v3312_v44 = vpop.f32.mrb[18].mxu1 }
 0x722   : > { %v3313_v50 = vadd.f32 %v3312_v44, %v3233_v43  ;;  %v3389_v19 = vpop.f32.mrb[20].mxu0  ;;  %v3314_v51 = vpop.f32.mrb[19].mxu1 }
 0x723   : > { %v3390_v52 = vadd.f32 %v3389_v19, %v3233_v43  ;;  %v3315_v53 = vadd.f32 %v3314_v51, %v3233_v43  ;;  %v3391_v54 = vpop.f32.mrb[21].mxu0 }
 0x724   : > { %v3400_v55 = vadd.f32 %v3313_v50, %v2921_v49  ;;  %v3392_v48 = vadd.f32 %v3391_v54, %v3233_v43 }
 0x725   : > { %v3402_v57 = vadd.f32 %v3390_v52, %v2923_v25  ;;  %v3401_v59 = vadd.f32 %v3315_v53, %v2922_v23  ;;  %v5396_v52 = vld [vmem:[%s7379_s15 + $0x10] sm:$0xff]  ;;  %v5397_v53 = vld [vmem:[%s7379_s15 + $0x18] sm:$0xff] }
 0x726   : > { %v7072_v61 = vmul.f32 0.70710677, %v3400_v55  ;;  %v3403_v63 = vadd.f32 %v3392_v48, %v2924_v58  ;;  %v5410_v58 = vld [vmem:[%s7382_s18 + $0x10] sm:$0xff] }
 0x727   : > { %v7076_v0 = vmul.f32 0.70710677, %v3402_v57  ;;  %v7078_v2 = vmul.f32 0.70710677, %v3401_v59  ;;  %v1700_v48 = vld [vmem:[%s7372_s8 + $0x10] sm:$0xff] }
 0x728   : > { %v3417_v16 = vadd.f32 %v3415_v5, %v7072_v61  ;;  %v7081_v49 = vmul.f32 0.70710677, %v3403_v63 }
 0x729   : > { %v3418_v18 = vadd.f32 %v3415_v5, %v7078_v2  ;;  %v3419_v17 = vadd.f32 %v3415_v5, %v7076_v0 }
 0x72a   : > { %v3420_v25 = vadd.f32 %v3415_v5, %v7081_v49 }
 0x72b   : > { %v6082_v23 = vpack.i.bf16 %v3418_v18, %v3417_v16  ;;  %v6092_v6 = vpack.i.bf16 %v3419_v17, %v3418_v18 }
 0x72c   : > { %v6097_v3 = vpack.i.bf16 %v6431_v1, %v3420_v25  ;;  %v6087_v4 = vpack.i.bf16 %v3420_v25, %v3419_v17 }
 0x72d   : > { %6083 = vrot.lane.b32.xlu0 %v6082_v23, %s6437_s26 }
 0x72e   : > { %6098 = vrot.lane.b32.xlu1 %v6097_v3, %s6438_s4 }
 0x731   : > { %6088 = vrot.lane.b32.xlu0 %v6087_v4, %s6437_s26 }
 0x732   : > { %3723 = vperm.xlu1 %6081, %v5410_v58  }
 0x735   : > { %6093 = vrot.lane.b32.xlu0 %v6092_v6, %s6438_s4 }
 0x739   : > { %3468 = vrot.lane.b32.xlu0 %v3417_v16, %s6438_s4 }
 0x73d   : > { %3515 = vperm.xlu0 %6058, %v5398_v7  }
 0x741   : > { %3520 = vperm.xlu0 %6058, %v5399_v8  }
 0x760   : > { %1691 = vadd.xlane.f32.xlu0 %v6898_v20 }
 0x79f   : > { %v6084_v12 = vpop.permute.xlu0 %6083 }
 0x7a0   : > { %v6099_v60 = vpop.permute.xlu1 %6098  ;;  %v6086_v13 = vunpack.i.h.bf16 %v6084_v12  ;;  %v6085_v62 = vunpack.i.l.bf16 %v6084_v12 }
 0x7a1   : > { %v6101_v9 = vunpack.i.h.bf16 %v6099_v60  ;;  %v6100_v14 = vunpack.i.l.bf16 %v6099_v60 }
 0x7a2   : > { %v3446_v15 = vsel %vm3445_vm5, %v3436_v11, %v6085_v62  ;;  %v3447_v24 = vsel %vm3445_vm5, %v6085_v62, %v6086_v13 }
 0x7a3   : > { %v5887_v26 = vpack.c.bf16 %v3417_v16, %v3446_v15  ;;  %v6089_v27 = vpop.permute.xlu0 %6088  ;;  %v5885_v41 = vpack.c.bf16 %v3418_v18, %v3447_v24  ;;  %v3482_v29 = vsel %vm3478_vm6, %v6100_v14, %v6101_v9 }
 0x7a4   : > { %v6091_v28 = vunpack.i.h.bf16 %v6089_v27  ;;  %v6090_v22 = vunpack.i.l.bf16 %v6089_v27  ;;  %v5897_v35 = vpack.c.bf16 %v7029_v37, %v3482_v29 }
 0x7a5   : > { %5886 = vmatprep.subr.bf16.mxu1 %v5885_v41 }
 0x7a6   : > { %v3448_v20 = vsel %vm3445_vm5, %v6086_v13, %v6090_v22  ;;  %5888 = vmatpush1.bf16.msra.mxu1 %v5887_v26  ;;  %v3449_v10 = vsel %vm3445_vm5, %v6090_v22, %v6091_v28 }
 0x7a7   : > { %v5895_v30 = vpack.c.bf16 %v3419_v17, %v3448_v20  ;;  %v6094_v31 = vpop.permute.xlu0 %6093  ;;  %v5893_v32 = vpack.c.bf16 %v3420_v25, %v3449_v10 }
 0x7a8   : > { %v6096_v38 = vunpack.i.h.bf16 %v6094_v31  ;;  %v6095_v39 = vunpack.i.l.bf16 %v6094_v31 }
 0x7a9   : > { %5894 = vmatprep.subr.bf16.mxu0 %v5893_v32 }
 0x7aa   : > { %v3481_v56 = vsel %vm3478_vm6, %v6096_v38, %v6100_v14  ;;  %5896 = vmatpush1.bf16.msra.mxu0 %v5895_v30  ;;  %v3480_v40 = vsel %vm3478_vm6, %v6095_v39, %v6096_v38 }
 0x7ab   : > { %v5899_v43 = vpack.c.bf16 %v7025_v34, %v3481_v56  ;;  %v3469_v44 = vpop.permute.xlu0 %3468  ;;  %5898 = vmatprep.subr.bf16.mxu0 %v5897_v35  ;;  %v5889_v50 = vpack.c.bf16 %v7027_v36, %v3480_v40 }
 0x7ac   : > { %v3479_v19 = vsel %vm3478_vm6, %v3469_v44, %v6095_v39  ;;  %v5408_v44 = vld [vmem:[%s7381_s17 + $0x10] sm:$0xff] }
 0x7ad   : > { %v5891_v51 = vpack.c.bf16 %v7023_v33, %v3479_v19  ;;  %5890 = vmatprep.subr.bf16.mxu1 %v5889_v50 }
 0x7ae   : > { %5900 = vmatpush1.bf16.msra.mxu0 %v5899_v43 }
 0x7af   : > { %5892 = vmatpush1.bf16.msra.mxu1 %v5891_v51 }
 0x7b1   : > { %5402 = vmatmul.mubr.msk.f32.vlgmr.msra.gmra.mrb[24].mxu0 %vm2105_vm2, %v5396_v52  ;;  %v3724_v50 = vpop.permute.xlu1 %3723 }
 0x7b2   : > { %5400 = vmatmul.mubr.msk.f32.vlgmr.msra.gmra.mrb[22].mxu1 %vm2105_vm2, %v5396_v52  ;;  %3676 = vmatprep.mubr.f32.mxu0 %v6431_v1 }
 0x7b3   : > { %3599 = vmatprep.mubr.f32.mxu1 %v6431_v1 }
 0x7b5   : > { %5403 = vmatmul.mubr.msk.f32.gmra.mrb[26].mxu0 %vm2105_vm2, %v5397_v53 }
 0x7b6   : > { %5401 = vmatmul.mubr.msk.f32.gmra.mrb[24].mxu1 %vm2105_vm2, %v5397_v53  ;;  %3878 = vmatprep.mubr.f32.mxu0 %v6431_v1 }
 0x7b7   : > { %3801 = vmatprep.mubr.f32.mxu1 %v6431_v1 }
 0x7bc   : > { %v3516_v54 = vpop.permute.xlu0 %3515 }
 0x7c0   : > { %v3521_v55 = vpop.permute.xlu0 %3520 }
 0x7ed   : > { %v1692_v57 = vpop.xlane.xlu0 %1691 }
 0x7ee   : > { %v1704_v59 = vadd.f32 %v1700_v48, %v1692_v57 }
 0x7f0   : > { %3905 = vperm.xlu1 %6081, %v1704_v59  }
 0x7f4   : > { %3926 = vrot.lane.b32.xlu1 %v6431_v1, %s6435_s24 }
 0x884   : > { %v3672_v63 = vpop.f32.mrb[24].mxu0 }
 0x885   : > { %v3673_v5 = vadd.f32 %v3672_v63, %v3516_v54  ;;  %v3595_v16 = vpop.f32.mrb[22].mxu1  ;;  %v3674_v18 = vpop.f32.mrb[25].mxu0 }
 0x886   : > { %v3596_v25 = vadd.f32 %v3595_v16, %v3516_v54  ;;  %v3675_v17 = vadd.f32 %v3674_v18, %v3516_v54  ;;  %v3597_v23 = vpop.f32.mrb[23].mxu1 }
 0x887   : > { %v5406_v3 = vmul.f32 -1.442695, %v3673_v5  ;;  %v3598_v42 = vadd.f32 %v3597_v23, %v3516_v54 }
 0x888   : > { %v5404_v58 = vmul.f32 -1.442695, %v3596_v25  ;;  %v5407_v4 = vmul.f32 -1.442695, %v3675_v17  ;;  %v3678_v6 = vpop.f32.mrb[26].mxu0  ;;  %v3906_v25 = vpop.permute.xlu1 %3905 }
 0x889   : > { %6198 = vpow2.f32 %v5406_v3  ;;  %v5405_v7 = vmul.f32 -1.442695, %v3598_v42  ;;  %v3601_v8 = vpop.f32.mrb[24].mxu1  ;;  %v3680_v11 = vpop.f32.mrb[27].mxu0  ;;  %v3679_v60 = vadd.f32 %v3678_v6, %v3521_v55 }
 0x88a   : > { %6200 = vpow2.f32 %v5404_v58  ;;  %v3603_v12 = vpop.f32.mrb[25].mxu1  ;;  %v3602_v13 = vadd.f32 %v3601_v8, %v3521_v55  ;;  %v3681_v62 = vadd.f32 %v3680_v11, %v3521_v55  ;;  %v5430_v58 = vld [vmem:[%s7382_s18 + $0x20] sm:$0xff] }
 0x88b   : > { %6202 = vpow2.f32 %v5407_v4  ;;  %v3604_v9 = vadd.f32 %v3603_v12, %v3521_v55  ;;  %v5409_v4 = vld [vmem:[%s7381_s17 + $0x18] sm:$0xff]  ;;  %v5418_v11 = vld [vmem:[%s7380_s16 + $0x20] sm:$0xff]  ;;  %v5419_v12 = vld [vmem:[%s7380_s16 + $0x28] sm:$0xff] }
 0x88c   : > { %6204 = vpow2.f32 %v5405_v7 }
 0x88d   : > { %6206 = vtanh.f32 %v3679_v60  ;;  %v3927_v60 = vpop.permute.xlu1 %3926 }
 0x88e   : > { %6208 = vtanh.f32 %v3602_v13 }
 0x88f   : > { %6210 = vtanh.f32 %v3681_v62 }
 0x890   : > { %6212 = vtanh.f32 %v3604_v9 }
 0x893   : > { %v6199_v14 = vpop.eup %6198 }
 0x894   : > { %v6201_v15 = vpop.eup %6200  ;;  %v3697_v24 = vadd.f32 1.0, %v6199_v14 }
 0x895   : > { %v6203_v26 = vpop.eup %6202  ;;  %v3695_v27 = vadd.f32 1.0, %v6201_v15 }
 0x896   : > { %v6205_v41 = vpop.eup %6204  ;;  %6214 = vrcp.f32 %v3697_v24  ;;  %v3698_v28 = vadd.f32 1.0, %v6203_v26 }
 0x897   : > { %6216 = vrcp.f32 %v3695_v27  ;;  %v3696_v22 = vadd.f32 1.0, %v6205_v41  ;;  %v6207_v20 = vpop.eup %6206 }
 0x898   : > { %6218 = vrcp.f32 %v3698_v28  ;;  %v6209_v10 = vpop.eup %6208 }
 0x899   : > { %6220 = vrcp.f32 %v3696_v22  ;;  %v6211_v29 = vpop.eup %6210 }
 0x89a   : > { %v6213_v30 = vpop.eup %6212 }
 0x8a0   : > { %v6215_v31 = vpop.eup %6214 }
 0x8a1   : > { %v6217_v32 = vpop.eup %6216  ;;  %v3713_v38 = vmul.f32 %v6215_v31, %v6207_v20 }
 0x8a2   : > { %v6219_v39 = vpop.eup %6218  ;;  %v3711_v35 = vmul.f32 %v6217_v32, %v6209_v10 }
 0x8a3   : > { %v6221_v56 = vpop.eup %6220  ;;  %v3714_v40 = vmul.f32 %v6219_v39, %v6211_v29 }
 0x8a4   : > { %v3712_v43 = vmul.f32 %v6221_v56, %v6213_v30 }
 0x8a5   : > { %3814 = vmatprep.subr.mxu0 %v3714_v40 }
 0x8a6   : > { %3737 = vmatprep.subr.mxu1 %v3712_v43  ;;  %3815 = vmatpush1.msra.mxu0 %v3713_v38 }
 0x8a7   : > { %3738 = vmatpush1.msra.mxu1 %v3711_v35  ;;  %5414 = vmatmul.mubr.msk.f32.vlgmr.msra.gmra.mrb[28].mxu0 %vm1712_vm1, %v5408_v44 }
 0x8a8   : > { %5412 = vmatmul.mubr.msk.f32.vlgmr.msra.gmra.mrb[26].mxu1 %vm1712_vm1, %v5408_v44  ;;  %3884 = vmatprep.mubr.f32.mxu0 %v6431_v1 }
 0x8a9   : > { %3807 = vmatprep.mubr.f32.mxu1 %v6431_v1 }
 0x8ab   : > { %5415 = vmatmul.mubr.msk.f32.gmra.mrb[22].mxu0 %vm1712_vm1, %v5409_v4 }
 0x8ac   : > { %5413 = vmatmul.mubr.msk.f32.gmra.mrb[20].mxu1 %vm1712_vm1, %v5409_v4  ;;  %4159 = vmatprep.mubr.f32.mxu0 %v6431_v1 }
 0x8ad   : > { %4082 = vmatprep.mubr.f32.mxu1 %v6431_v1 }
 0x97a   : > { %v3880_v19 = vpop.f32.mrb[28].mxu0 }
 0x97b   : > { %v3881_v51 = vadd.f32 %v3880_v19, %v3724_v50  ;;  %v3803_v52 = vpop.f32.mrb[26].mxu1  ;;  %v3882_v53 = vpop.f32.mrb[29].mxu0  ;;  %v5416_v19 = vld [vmem:[%s7379_s15 + $0x20] sm:$0xff] }
 0x97c   : > { %v3804_v54 = vadd.f32 %v3803_v52, %v3724_v50  ;;  %v3883_v55 = vadd.f32 %v3882_v53, %v3724_v50  ;;  %v3805_v48 = vpop.f32.mrb[27].mxu1 }
 0x97d   : > { %v3893_v57 = vadd.f32 %v3881_v51, %v7076_v0  ;;  %v3806_v59 = vadd.f32 %v3805_v48, %v3724_v50 }
 0x97e   : > { %v3891_v63 = vadd.f32 %v3804_v54, %v7072_v61  ;;  %v3894_v5 = vadd.f32 %v3883_v55, %v7081_v49  ;;  %v5417_v54 = vld [vmem:[%s7379_s15 + $0x28] sm:$0xff] }
 0x97f   : > { %v3892_v16 = vadd.f32 %v3806_v59, %v7078_v2  ;;  %v7153_v17 = vmul.f32 0.70710677, %v3893_v57  ;;  %v1701_v57 = vld [vmem:[%s7372_s8 + $0x18] sm:$0xff] }
 0x980   : > { %v7151_v18 = vmul.f32 0.70710677, %v3891_v63  ;;  %v7155_v23 = vmul.f32 0.70710677, %v3894_v5 }
 0x981   : > { %v7157_v3 = vmul.f32 0.70710677, %v3892_v16  ;;  %v3910_v61 = vadd.f32 %v3906_v25, %v7153_v17 }
 0x982   : > { %v3908_v42 = vadd.f32 %v3906_v25, %v7151_v18  ;;  %v3911_v49 = vadd.f32 %v3906_v25, %v7155_v23 }
 0x983   : > { %v3909_v0 = vadd.f32 %v3906_v25, %v7157_v3 }
 0x984   : > { %3958 = vrot.lane.b32.xlu0 %v3908_v42, %s6436_s23  ;;  %v6107_v6 = vpack.i.bf16 %v3911_v49, %v3910_v61  ;;  %v6117_v8 = vpack.i.bf16 %v6431_v1, %v3911_v49 }
 0x985   : > { %v6102_v2 = vpack.i.bf16 %v3909_v0, %v3908_v42  ;;  %v6112_v7 = vpack.i.bf16 %v3910_v61, %v3909_v0 }
 0x987   : > { %6103 = vrot.lane.b32.xlu1 %v6102_v2, %s6435_s24 }
 0x988   : > { %4212 = vperm.xlu0 %6058, %v5430_v58  }
 0x98b   : > { %6108 = vrot.lane.b32.xlu1 %v6107_v6, %s6435_s24  ;;  %s7442_s24 = sld [smem:[#allocation31_spill]] }
 0x98f   : > { %6113 = vrot.lane.b32.xlu1 %v6112_v7, %s6436_s23 }
 0x993   : > { %6118 = vrot.lane.b32.xlu1 %v6117_v8, %s6436_s23 }
 0x997   : > { %4004 = vperm.xlu1 %6081, %v5418_v11  }
 0x99b   : > { %4009 = vperm.xlu1 %6081, %v5419_v12  }
 0x9bf   : > { %1696 = vadd.xlane.f32.xlu1 %v6900_v21 }
 0x9f6   : > { %v3959_v32 = vpop.permute.xlu0 %3958 }
 0x9f9   : > { %v6104_v13 = vpop.permute.xlu1 %6103 }
 0x9fa   : > { %v6106_v62 = vunpack.i.h.bf16 %v6104_v13  ;;  %v6105_v9 = vunpack.i.l.bf16 %v6104_v13 }
 0x9fc   : > { %v3936_v14 = vsel %vm2958_vm4, %v3927_v60, %v6105_v9  ;;  %v3937_v15 = vsel %vm2958_vm4, %v6105_v9, %v6106_v62 }
 0x9fd   : > { %v5903_v24 = vpack.c.bf16 %v3908_v42, %v3936_v14  ;;  %v6109_v26 = vpop.permute.xlu1 %6108  ;;  %v5901_v27 = vpack.c.bf16 %v3909_v0, %v3937_v15 }
 0x9fe   : > { %v6111_v41 = vunpack.i.h.bf16 %v6109_v26  ;;  %v6110_v28 = vunpack.i.l.bf16 %v6109_v26 }
 0x9ff   : > { %5902 = vmatprep.subr.bf16.mxu1 %v5901_v27 }
 0xa00   : > { %v3938_v22 = vsel %vm2958_vm4, %v6106_v62, %v6110_v28  ;;  %5904 = vmatpush1.bf16.msra.mxu1 %v5903_v24  ;;  %v3939_v20 = vsel %vm2958_vm4, %v6110_v28, %v6111_v41 }
 0xa01   : > { %v5911_v21 = vpack.c.bf16 %v3910_v61, %v3938_v22  ;;  %v6114_v10 = vpop.permute.xlu1 %6113  ;;  %v5909_v29 = vpack.c.bf16 %v3911_v49, %v3939_v20 }
 0xa02   : > { %v6116_v30 = vunpack.i.h.bf16 %v6114_v10  ;;  %v6115_v31 = vunpack.i.l.bf16 %v6114_v10 }
 0xa03   : > { %5910 = vmatprep.subr.bf16.mxu0 %v5909_v29 }
 0xa04   : > { %v3968_v38 = vsel %vm2991_vm3, %v3959_v32, %v6115_v31  ;;  %5912 = vmatpush1.bf16.msra.mxu0 %v5911_v21  ;;  %v3969_v39 = vsel %vm2991_vm3, %v6115_v31, %v6116_v30 }
 0xa05   : > { %v5907_v35 = vpack.c.bf16 %v7023_v33, %v3968_v38  ;;  %v6119_v56 = vpop.permute.xlu1 %6118  ;;  %v5905_v40 = vpack.c.bf16 %v7027_v36, %v3969_v39 }
 0xa06   : > { %v6121_v43 = vunpack.i.h.bf16 %v6119_v56  ;;  %v6120_v44 = vunpack.i.l.bf16 %v6119_v56 }
 0xa07   : > { %5906 = vmatprep.subr.bf16.mxu1 %v5905_v40 }
 0xa08   : > { %v3970_v50 = vsel %vm2991_vm3, %v6116_v30, %v6120_v44  ;;  %5908 = vmatpush1.bf16.msra.mxu1 %v5907_v35  ;;  %v3971_v51 = vsel %vm2991_vm3, %v6120_v44, %v6121_v43  ;;  %v5428_v35 = vld [vmem:[%s7381_s17 + $0x20] sm:$0xff] }
 0xa09   : > { %v5915_v52 = vpack.c.bf16 %v7025_v34, %v3970_v50  ;;  %v5913_v53 = vpack.c.bf16 %v7029_v37, %v3971_v51  ;;  %v4213_v50 = vpop.permute.xlu0 %4212 }
 0xa0b   : > { %5420 = vmatmul.mubr.msk.f32.vlgmr.msra.gmra.mrb[28].mxu1 %vm2105_vm2, %v5416_v19  ;;  %5914 = vmatprep.subr.bf16.mxu0 %v5913_v53 }
 0xa0c   : > { %5916 = vmatpush1.bf16.msra.mxu0 %v5915_v52  ;;  %4088 = vmatprep.mubr.f32.mxu1 %v6431_v1 }
 0xa0f   : > { %5421 = vmatmul.mubr.msk.f32.gmra.mrb[30].mxu1 %vm2105_vm2, %v5417_v54  ;;  %5422 = vmatmul.mubr.msk.f32.vlgmr.msra.gmra.mrb[30].mxu0 %vm2105_vm2, %v5416_v19 }
 0xa10   : > { %4165 = vmatprep.mubr.f32.mxu0 %v6431_v1  ;;  %4290 = vmatprep.mubr.f32.mxu1 %v6431_v1 }
 0xa13   : > { %5423 = vmatmul.mubr.msk.f32.gmra.mrb[32].mxu0 %vm2105_vm2, %v5417_v54 }
 0xa14   : > { %4367 = vmatprep.mubr.f32.mxu0 %v6431_v1 }
 0xa16   : > { %v4005_v55 = vpop.permute.xlu1 %4004 }
 0xa1a   : > { %v4010_v48 = vpop.permute.xlu1 %4009 }
 0xa4c   : > { %v1697_v59 = vpop.xlane.xlu1 %1696 }
 0xa4d   : > { %v1705_v63 = vadd.f32 %v1701_v57, %v1697_v59 }
 0xa4f   : > { %4394 = vperm.xlu0 %6058, %v1705_v63  }
 0xa53   : > { %4415 = vrot.lane.b32.xlu0 %v6431_v1, %s6437_s26 }
 0xade   : > { %v4084_v5 = vpop.f32.mrb[28].mxu1 }
 0xadf   : > { %v4085_v16 = vadd.f32 %v4084_v5, %v4005_v55  ;;  %v4086_v25 = vpop.f32.mrb[29].mxu1  ;;  %v4395_v5 = vpop.permute.xlu0 %4394 }
 0xae0   : > { %v4087_v42 = vadd.f32 %v4086_v25, %v4005_v55 }
 0xae1   : > { %v5424_v0 = vmul.f32 -1.442695, %v4085_v16 }
 0xae2   : > { %v5425_v61 = vmul.f32 -1.442695, %v4087_v42  ;;  %v4090_v49 = vpop.f32.mrb[30].mxu1  ;;  %v4161_v2 = vpop.f32.mrb[30].mxu0 }
 0xae3   : > { %6222 = vpow2.f32 %v5424_v0  ;;  %v4162_v58 = vadd.f32 %v4161_v2, %v4005_v55  ;;  %v4092_v4 = vpop.f32.mrb[31].mxu1  ;;  %v4163_v6 = vpop.f32.mrb[31].mxu0  ;;  %v4091_v13 = vadd.f32 %v4090_v49, %v4010_v48 }
 0xae4   : > { %6224 = vpow2.f32 %v5425_v61  ;;  %v4164_v7 = vadd.f32 %v4163_v6, %v4005_v55  ;;  %v4093_v62 = vadd.f32 %v4092_v4, %v4010_v48 }
 0xae5   : > { %v5426_v8 = vmul.f32 -1.442695, %v4162_v58 }
 0xae6   : > { %v5427_v11 = vmul.f32 -1.442695, %v4164_v7  ;;  %v4167_v12 = vpop.f32.mrb[32].mxu0 }
 0xae7   : > { %6226 = vpow2.f32 %v5426_v8  ;;  %v4169_v60 = vpop.f32.mrb[33].mxu0  ;;  %v4168_v24 = vadd.f32 %v4167_v12, %v4010_v48  ;;  %v5438_v12 = vld [vmem:[%s7380_s16 + $0x30] sm:$0xff] }
 0xae8   : > { %6228 = vpow2.f32 %v5427_v11  ;;  %v4170_v27 = vadd.f32 %v4169_v60, %v4010_v48  ;;  %v4873_v11 = vld [vmem:[%s7442_s24] sm:$0xff]  ;;  %v5439_v60 = vld [vmem:[%s7380_s16 + $0x38] sm:$0xff] }
 0xae9   : > { %6230 = vtanh.f32 %v4091_v13  ;;  %v3229_v13 = vld [vmem:[%s7382_s18 + $0x8] sm:$0xff] }
 0xaea   : > { %6232 = vtanh.f32 %v4093_v62  ;;  %v5411_v62 = vld [vmem:[%s7382_s18 + $0x18] sm:$0xff] }
 0xaed   : > { %v6223_v9 = vpop.eup %6222 }
 0xaee   : > { %v6225_v14 = vpop.eup %6224  ;;  %v4184_v15 = vadd.f32 1.0, %v6223_v9  ;;  %v5451_v9 = vld [vmem:[%s7382_s18 + $0x38] sm:$0xff] }
 0xaef   : > { %v4185_v26 = vadd.f32 1.0, %v6225_v14  ;;  %v5029_v14 = vld [vmem:[#allocation3] sm:$0x1] }
 0xaf0   : > { %6234 = vrcp.f32 %v4184_v15  ;;  %v4416_v15 = vpop.permute.xlu0 %4415 }
 0xaf1   : > { %v6227_v41 = vpop.eup %6226  ;;  %6236 = vrcp.f32 %v4185_v26 }
 0xaf2   : > { %v6229_v28 = vpop.eup %6228  ;;  %v4186_v22 = vadd.f32 1.0, %v6227_v41  ;;  %6238 = vtanh.f32 %v4168_v24 }
 0xaf3   : > { %v4187_v20 = vadd.f32 1.0, %v6229_v28  ;;  %6240 = vtanh.f32 %v4170_v27  ;;  %v6231_v21 = vpop.eup %6230 }
 0xaf4   : > { %6242 = vrcp.f32 %v4186_v22  ;;  %v6233_v10 = vpop.eup %6232 }
 0xaf5   : > { %6244 = vrcp.f32 %v4187_v20 }
 0xafa   : > { %v6235_v29 = vpop.eup %6234 }
 0xafb   : > { %v6237_v30 = vpop.eup %6236  ;;  %v4200_v31 = vmul.f32 %v6235_v29, %v6231_v21 }
 0xafc   : > { %v6239_v32 = vpop.eup %6238  ;;  %v4201_v38 = vmul.f32 %v6237_v30, %v6233_v10 }
 0xafd   : > { %v6241_v39 = vpop.eup %6240 }
 0xafe   : > { %v6243_v56 = vpop.eup %6242  ;;  %4226 = vmatprep.subr.mxu1 %v4201_v38 }
 0xaff   : > { %v6245_v40 = vpop.eup %6244  ;;  %4227 = vmatpush1.msra.mxu1 %v4200_v31  ;;  %v4202_v43 = vmul.f32 %v6243_v56, %v6239_v32 }
 0xb00   : > { %5432 = vmatmul.mubr.msk.f32.vlgmr.msra.gmra.mrb[32].mxu1 %vm1712_vm1, %v5428_v35  ;;  %v4203_v44 = vmul.f32 %v6245_v40, %v6241_v39 }
 0xb01   : > { %4296 = vmatprep.mubr.f32.mxu1 %v6431_v1 }
 0xb02   : > { %4303 = vmatprep.subr.mxu0 %v4203_v44 }
 0xb03   : > { %4304 = vmatpush1.msra.mxu0 %v4202_v43 }
 0xb04   : > { %5434 = vmatmul.mubr.msk.f32.vlgmr.msra.gmra.mrb[34].mxu0 %vm1712_vm1, %v5428_v35 }
 0xb05   : > { %4373 = vmatprep.mubr.f32.mxu0 %v6431_v1 }
 0xbd3   : > { %v4292_v19 = vpop.f32.mrb[32].mxu1 }
 0xbd4   : > { %v4293_v51 = vadd.f32 %v4292_v19, %v4213_v50  ;;  %v4294_v52 = vpop.f32.mrb[33].mxu1 }
 0xbd5   : > { %v4295_v53 = vadd.f32 %v4294_v52, %v4213_v50 }
 0xbd6   : > { %v4380_v54 = vadd.f32 %v4293_v51, %v7151_v18 }
 0xbd7   : > { %v4381_v55 = vadd.f32 %v4295_v53, %v7157_v3  ;;  %v4369_v48 = vpop.f32.mrb[34].mxu0  ;;  %v5429_v3 = vld [vmem:[%s7381_s17 + $0x28] sm:$0xff] }
 0xbd8   : > { %v4384_v57 = vmul.f32 0.70710677, %v4380_v54  ;;  %v4370_v59 = vadd.f32 %v4369_v48, %v4213_v50  ;;  %v4371_v63 = vpop.f32.mrb[35].mxu0  ;;  %5435 = vmatmul.mubr.msk.f32.gmra.mrb[22].mxu0 %vm1712_vm1, %v5429_v3  ;;  %5433 = vmatmul.mubr.msk.f32.gmra.mrb[20].mxu1 %vm1712_vm1, %v5429_v3 }
 0xbd9   : > { %v4385_v16 = vmul.f32 0.70710677, %v4381_v55  ;;  %v4372_v25 = vadd.f32 %v4371_v63, %v4213_v50  ;;  %4648 = vmatprep.mubr.f32.mxu0 %v6431_v1  ;;  %4571 = vmatprep.mubr.f32.mxu1 %v6431_v1 }
 0xbda   : > { %v4397_v42 = vadd.f32 %v4395_v5, %v4384_v57  ;;  %v4382_v0 = vadd.f32 %v4370_v59, %v7153_v17 }
 0xbdb   : > { %v4398_v61 = vadd.f32 %v4395_v5, %v4385_v16  ;;  %v4383_v49 = vadd.f32 %v4372_v25, %v7155_v23  ;;  %v5431_v23 = vld [vmem:[%s7382_s18 + $0x28] sm:$0xff] }
 0xbdc   : > { %v4386_v2 = vmul.f32 0.70710677, %v4382_v0 }
 0xbdd   : > { %v4387_v58 = vmul.f32 0.70710677, %v4383_v49  ;;  %v6122_v4 = vpack.i.bf16 %v4398_v61, %v4397_v42 }
 0xbde   : > { %v4399_v6 = vadd.f32 %v4395_v5, %v4386_v2 }
 0xbdf   : > { %v4400_v18 = vadd.f32 %v4395_v5, %v4387_v58  ;;  %6123 = vrot.lane.b32.xlu0 %v6122_v4, %s6437_s26 }
 0xbe0   : > { %v6132_v8 = vpack.i.bf16 %v4399_v6, %v4398_v61 }
 0xbe1   : > { %v6137_v17 = vpack.i.bf16 %v6431_v1, %v4400_v18  ;;  %v6127_v7 = vpack.i.bf16 %v4400_v18, %v4399_v6 }
 0xbe3   : > { %6138 = vrot.lane.b32.xlu1 %v6137_v17, %s6438_s4  ;;  %6128 = vrot.lane.b32.xlu0 %v6127_v7, %s6437_s26  ;;  %s7322_s26 = scalar_lea.hbm %s7447_s27, %s5465_s25 }
 0xbe7   : > { %4217 = vperm.xlu1 %6081, %v5431_v23   ;;  %6133 = vrot.lane.b32.xlu0 %v6132_v8, %s6438_s4 }
 0xbeb   : > { %4876 = vperm.xlu1 %6081, %v4873_v11   ;;  %4447 = vrot.lane.b32.xlu0 %v4397_v42, %s6438_s4  ;;  %s7445_s4 = sld [smem:[#allocation32_spill]] }
 0xbef   : > { %4493 = vperm.xlu0 %6058, %v5438_v12  }
 0xbf3   : > { %4498 = vperm.xlu0 %6058, %v5439_v60  }
 0xbf7   : > { %3237 = vperm.xlu0 %6058, %v3229_v13  }
 0xbfb   : > { %3728 = vperm.xlu0 %6058, %v5411_v62  }
 0xbff   : > { %4705 = vperm.xlu0 %6058, %v5451_v9  }
 0xc03   : > { %5032 = vperm.xlu0 %6058, %v5029_v14  }
 0xc51   : > { %v6124_v24 = vpop.permute.xlu0 %6123 }
 0xc52   : > { %v6126_v26 = vunpack.i.h.bf16 %v6124_v24  ;;  %v6125_v27 = vunpack.i.l.bf16 %v6124_v24 }
 0xc54   : > { %v4425_v41 = vsel %vm3445_vm5, %v4416_v15, %v6125_v27  ;;  %v4426_v28 = vsel %vm3445_vm5, %v6125_v27, %v6126_v26 }
 0xc55   : > { %v5919_v22 = vpack.c.bf16 %v4397_v42, %v4425_v41  ;;  %v6139_v20 = vpop.permute.xlu1 %6138  ;;  %v6129_v21 = vpop.permute.xlu0 %6128  ;;  %v5917_v10 = vpack.c.bf16 %v4398_v61, %v4426_v28 }
 0xc56   : > { %v6141_v29 = vunpack.i.h.bf16 %v6139_v20  ;;  %v6140_v30 = vunpack.i.l.bf16 %v6139_v20  ;;  %v6131_v31 = vunpack.i.h.bf16 %v6129_v21  ;;  %v6130_v32 = vunpack.i.l.bf16 %v6129_v21 }
 0xc57   : > { %5918 = vmatprep.subr.bf16.mxu1 %v5917_v10 }
 0xc58   : > { %v4427_v38 = vsel %vm3445_vm5, %v6126_v26, %v6130_v32  ;;  %5920 = vmatpush1.bf16.msra.mxu1 %v5919_v22  ;;  %v4428_v39 = vsel %vm3445_vm5, %v6130_v32, %v6131_v31  ;;  %v4460_v35 = vsel %vm3478_vm6, %v6140_v30, %v6141_v29 }
 0xc59   : > { %v5927_v56 = vpack.c.bf16 %v4399_v6, %v4427_v38  ;;  %v6134_v40 = vpop.permute.xlu0 %6133  ;;  %v5925_v43 = vpack.c.bf16 %v4400_v18, %v4428_v39  ;;  %v5929_v19 = vpack.c.bf16 %v7029_v37, %v4460_v35  ;;  %v5436_v37 = vld [vmem:[%s7379_s15 + $0x30] sm:$0xff]  ;;  %v5449_v39 = vld [vmem:[%s7381_s17 + $0x38] sm:$0xff] }
 0xc5a   : > { %v6136_v44 = vunpack.i.h.bf16 %v6134_v40  ;;  %v6135_v50 = vunpack.i.l.bf16 %v6134_v40  ;;  %v5448_v38 = vld [vmem:[%s7381_s17 + $0x30] sm:$0xff] }
 0xc5b   : > { %5926 = vmatprep.subr.bf16.mxu0 %v5925_v43 }
 0xc5c   : > { %v4459_v51 = vsel %vm3478_vm6, %v6136_v44, %v6140_v30  ;;  %5928 = vmatpush1.bf16.msra.mxu0 %v5927_v56  ;;  %v4458_v52 = vsel %vm3478_vm6, %v6135_v50, %v6136_v44 }
 0xc5d   : > { %v5931_v53 = vpack.c.bf16 %v7025_v34, %v4459_v51  ;;  %v4448_v54 = vpop.permute.xlu0 %4447  ;;  %5930 = vmatprep.subr.bf16.mxu0 %v5929_v19  ;;  %v5921_v55 = vpack.c.bf16 %v7027_v36, %v4458_v52  ;;  %v5437_v34 = vld [vmem:[%s7379_s15 + $0x38] sm:$0xff] }
 0xc5e   : > { %v4457_v48 = vsel %vm3478_vm6, %v4448_v54, %v6135_v50 }
 0xc5f   : > { %v5923_v57 = vpack.c.bf16 %v7023_v33, %v4457_v48  ;;  %5922 = vmatprep.subr.bf16.mxu1 %v5921_v55 }
 0xc60   : > { %5932 = vmatpush1.bf16.msra.mxu0 %v5931_v53 }
 0xc61   : > { %5924 = vmatpush1.bf16.msra.mxu1 %v5923_v57 }
 0xc63   : > { %5442 = vmatmul.mubr.msk.f32.vlgmr.msra.gmra.mrb[36].mxu0 %vm2105_vm2, %v5436_v37 }
 0xc64   : > { %5440 = vmatmul.mubr.msk.f32.vlgmr.msra.gmra.mrb[34].mxu1 %vm2105_vm2, %v5436_v37  ;;  %4654 = vmatprep.mubr.f32.mxu0 %v6431_v1 }
 0xc65   : > { %4577 = vmatprep.mubr.f32.mxu1 %v6431_v1 }
 0xc66   : > { %v4218_v43 = vpop.permute.xlu1 %4217 }
 0xc67   : > { %5443 = vmatmul.mubr.msk.f32.gmra.mrb[38].mxu0 %vm2105_vm2, %v5437_v34 }
 0xc68   : > { %5441 = vmatmul.mubr.msk.f32.gmra.mrb[36].mxu1 %vm2105_vm2, %v5437_v34  ;;  %4853 = vmatprep.mubr.f32.mxu0 %v6431_v1 }
 0xc69   : > { %4778 = vmatprep.mubr.f32.mxu1 %v6431_v1 }
 0xc6e   : > { %v4494_v33 = vpop.permute.xlu0 %4493 }
 0xc72   : > { %v4499_v17 = vpop.permute.xlu0 %4498 }
 0xc76   : > { %v3238_v35 = vpop.permute.xlu0 %3237 }
 0xc7a   : > { %v3729_v56 = vpop.permute.xlu0 %3728 }
 0xc7b   : > { %v5937_v40 = vadd.f32 %v3729_v56, %v3238_v35 }
 0xc7d   : > { %v5938_v44 = vadd.f32 %v5937_v40, %v4218_v43 }
 0xc7e   : > { %v4706_v50 = vpop.permute.xlu0 %4705 }
 0xc7f   : > { %v5939_v54 = vadd.f32 %v5938_v44, %v4706_v50 }
 0xd36   : > { %v4650_v36 = vpop.f32.mrb[36].mxu0 }
 0xd37   : > { %v4651_v59 = vadd.f32 %v4650_v36, %v4494_v33  ;;  %v4573_v63 = vpop.f32.mrb[34].mxu1  ;;  %v4652_v5 = vpop.f32.mrb[37].mxu0 }
 0xd38   : > { %v4574_v16 = vadd.f32 %v4573_v63, %v4494_v33  ;;  %v4653_v25 = vadd.f32 %v4652_v5, %v4494_v33  ;;  %v4575_v42 = vpop.f32.mrb[35].mxu1 }
 0xd39   : > { %v5446_v0 = vmul.f32 -1.442695, %v4651_v59  ;;  %v4576_v61 = vadd.f32 %v4575_v42, %v4494_v33 }
 0xd3a   : > { %v5444_v49 = vmul.f32 -1.442695, %v4574_v16  ;;  %v5447_v2 = vmul.f32 -1.442695, %v4653_v25  ;;  %v4656_v58 = vpop.f32.mrb[38].mxu0  ;;  %v4872_v25 = vld [vmem:[%s7443_s6] sm:$0xff] }
 0xd3b   : > { %6246 = vpow2.f32 %v5446_v0  ;;  %v5445_v4 = vmul.f32 -1.442695, %v4576_v61  ;;  %v4579_v6 = vpop.f32.mrb[36].mxu1  ;;  %v4658_v18 = vpop.f32.mrb[39].mxu0  ;;  %v4657_v7 = vadd.f32 %v4656_v58, %v4499_v17  ;;  %s6354_s6 = scalar_lea.vmem %s7324_s0, 64 }
 0xd3c   : > { %6248 = vpow2.f32 %v5444_v49  ;;  %v4581_v3 = vpop.f32.mrb[37].mxu1  ;;  %v4580_v23 = vadd.f32 %v4579_v6, %v4499_v17  ;;  %v4659_v8 = vadd.f32 %v4658_v18, %v4499_v17  ;;  %v4877_v0 = vpop.permute.xlu1 %4876  ;;  %p6355_p4 = scmp.ne.s32.totalorder %s7324_s0, %s6354_s6  ;;  %p6362_p1 = scmp.lt.s32.totalorder %s6360_s7, %s6354_s6 }
 0xd3d   : > { %6250 = vpow2.f32 %v5447_v2  ;;  %v4582_v11 = vadd.f32 %v4581_v3, %v4499_v17 }
 0xd3e   : > { %6252 = vpow2.f32 %v5445_v4  ;;  %p6356_p8 = pnand %p6355_p4, %p7448_p7  ;;  %p6363_p6 = por %p6362_p1, %p6361_p13 }
 0xd3f   : > { %6254 = vtanh.f32 %v4657_v7 }
 0xd40   : > { %6256 = vtanh.f32 %v4580_v23  ;;  %p6357_p11 = pneg %p6356_p8 }
 0xd41   : > { %6258 = vtanh.f32 %v4659_v8  ;;  %v5028_v8 = vld [vmem:[%s7445_s4] sm:$0x1] }
 0xd42   : > { %6260 = vtanh.f32 %v4582_v11  ;;  %p6364_p9 = pnand %p6363_p6, %p6357_p11 }
 0xd45   : > { %v6247_v12 = vpop.eup %6246 }
 0xd46   : > { %v6249_v60 = vpop.eup %6248  ;;  %v4675_v13 = vadd.f32 1.0, %v6247_v12 }
 0xd47   : > { %v6251_v62 = vpop.eup %6250  ;;  %v4673_v9 = vadd.f32 1.0, %v6249_v60  ;;  %v5033_v60 = vpop.permute.xlu0 %5032 }
 0xd48   : > { %v6253_v14 = vpop.eup %6252  ;;  %6262 = vrcp.f32 %v4675_v13  ;;  %v4676_v15 = vadd.f32 1.0, %v6251_v62  ;;  %v5038_v62 = vrot.slane %v5033_v60, %v6741_v47 }
 0xd49   : > { %6264 = vrcp.f32 %v4673_v9  ;;  %v4674_v24 = vadd.f32 1.0, %v6253_v14  ;;  %v6255_v26 = vpop.eup %6254 }
 0xd4a   : > { %6266 = vrcp.f32 %v4676_v15  ;;  %v6257_v27 = vpop.eup %6256 }
 0xd4b   : > { %6268 = vrcp.f32 %v4674_v24  ;;  %v6259_v41 = vpop.eup %6258 }
 0xd4c   : > { %v6261_v28 = vpop.eup %6260 }
 0xd52   : > { %v6263_v22 = vpop.eup %6262 }
 0xd53   : > { %v6265_v20 = vpop.eup %6264  ;;  %v4691_v21 = vmul.f32 %v6263_v22, %v6255_v26 }
 0xd54   : > { %v6267_v10 = vpop.eup %6266  ;;  %v4689_v29 = vmul.f32 %v6265_v20, %v6257_v27 }
 0xd55   : > { %v6269_v30 = vpop.eup %6268  ;;  %v4692_v31 = vmul.f32 %v6267_v10, %v6259_v41 }
 0xd56   : > { %v4690_v32 = vmul.f32 %v6269_v30, %v6261_v28 }
 0xd57   : > { %4789 = vmatprep.subr.mxu0 %v4692_v31 }
 0xd58   : > { %4714 = vmatprep.subr.mxu1 %v4690_v32  ;;  %4790 = vmatpush1.msra.mxu0 %v4691_v21 }
 0xd59   : > { %4715 = vmatpush1.msra.mxu1 %v4689_v29  ;;  %5454 = vmatmul.mubr.msk.f32.vlgmr.msra.gmra.mrb[40].mxu0 %vm1712_vm1, %v5448_v38 }
 0xd5a   : > { %5452 = vmatmul.mubr.msk.f32.vlgmr.msra.gmra.mrb[38].mxu1 %vm1712_vm1, %v5448_v38  ;;  %4857 = vmatprep.mubr.f32.mxu0 %v6431_v1 }
 0xd5b   : > { %4782 = vmatprep.mubr.f32.mxu1 %v6431_v1 }
 0xd5d   : > { %5455 = vmatmul.mubr.msk.f32.gmra.mrb[22].mxu0 %vm1712_vm1, %v5449_v39 }
 0xd5e   : > { %5453 = vmatmul.mubr.msk.f32.gmra.mrb[20].mxu1 %vm1712_vm1, %v5449_v39  ;;  %5017 = vmatprep.mubr.f32.mxu0 %v6431_v1 }
 0xd5f   : > { %4946 = vmatprep.mubr.f32.mxu1 %v6431_v1 }
 0xe2c   : > { %v4855_v19 = vpop.f32.mrb[40].mxu0 }
 0xe2d   : > { %v4780_v51 = vpop.f32.mrb[38].mxu1  ;;  %v4856_v52 = vpop.f32.mrb[41].mxu0 }
 0xe2e   : > { %v4781_v53 = vpop.f32.mrb[39].mxu1 }
 0xe30   : > { %v4859_v55 = vpop.f32.mrb[22].mxu0 }
 0xe31   : > { %v5948_v48 = vadd.f32 %v5939_v54, %v4859_v55  ;;  %v4784_v57 = vpop.f32.mrb[20].mxu1  ;;  %v4861_v37 = vpop.f32.mrb[23].mxu0 }
 0xe32   : > { %v5940_v34 = vadd.f32 %v5939_v54, %v4784_v57  ;;  %v5952_v33 = vadd.f32 %v5939_v54, %v4861_v37  ;;  %v4786_v36 = vpop.f32.mrb[21].mxu1 }
 0xe33   : > { %v5944_v59 = vadd.f32 %v5939_v54, %v4786_v36  ;;  %v4870_v5 = vmul.f32 0.5, %v5948_v48 }
 0xe34   : > { %v4871_v63 = vmul.f32 0.5, %v5952_v33  ;;  %v4868_v42 = vmul.f32 0.5, %v5940_v34 }
 0xe35   : > { %v4869_v16 = vmul.f32 0.5, %v5944_v59 }
 0xe36   : > { %4953 = vmatprep.subr.mxu0 %v4871_v63 }
 0xe37   : > { %4882 = vmatprep.subr.mxu1 %v4869_v16  ;;  %4954 = vmatpush1.msra.mxu0 %v4870_v5 }
 0xe38   : > { %4883 = vmatpush1.msra.mxu1 %v4868_v42  ;;  %5457 = vmatmul.mubr.msk.f32.vlgmr.msra.gmra.mrb[42].mxu0 %vm1712_vm1, %v4872_v25 }
 0xe39   : > { %5456 = vmatmul.mubr.msk.f32.vlgmr.msra.gmra.mrb[40].mxu1 %vm1712_vm1, %v4872_v25  ;;  %5177 = vmatprep.mubr.f32.mxu0 %v6431_v1 }
 0xe3a   : > { %5106 = vmatprep.mubr.f32.mxu1 %v6431_v1  ;;  %v6439_v1 = vmov 1966171168  }
 0xe3b   : > { %v5191_v12 = vunpack.c.l.s4 %v6439_v1 }
 0xe3d   : > { %v5192_v13 = vunpack.c.0.s8 %v5191_v12 }
 0xe3f   : > { %v5195_v41 = vsub.s32 %v5192_v13, %v6738_v46 }
 0xf0b   : > { %v5019_v61 = vpop.f32.mrb[42].mxu0 }
 0xf0c   : > { %v5020_v49 = vadd.f32 %v5019_v61, %v4877_v0  ;;  %v4948_v2 = vpop.f32.mrb[40].mxu1  ;;  %v5021_v58 = vpop.f32.mrb[43].mxu0 }
 0xf0d   : > { %v4949_v4 = vadd.f32 %v4948_v2, %v4877_v0  ;;  %v5022_v6 = vadd.f32 %v5021_v58, %v4877_v0  ;;  %v4950_v18 = vpop.f32.mrb[41].mxu1 }
 0xf0e   : > { %v4951_v3 = vadd.f32 %v4950_v18, %v4877_v0  ;;  %v5026_v7 = vmax.f32 %v5020_v49, 0.0 }
 0xf0f   : > { %v5027_v17 = vmax.f32 %v5022_v6, 0.0  ;;  %v5024_v11 = vmax.f32 %v4949_v4, 0.0 }
 0xf10   : > { %v5025_v23 = vmax.f32 %v4951_v3, 0.0 }
 0xf11   : > { %5113 = vmatprep.subr.mxu0 %v5027_v17 }
 0xf12   : > { %5042 = vmatprep.subr.mxu1 %v5025_v23  ;;  %5114 = vmatpush1.msra.mxu0 %v5026_v7 }
 0xf13   : > { %5043 = vmatpush1.msra.mxu1 %v5024_v11  ;;  %5459 = vmatmul.mubr.msk.f32.vlgmr.msra.gmra.mrb[44].mxu0 %vm1712_vm1, %v5028_v8 }
 0xf14   : > { %5458 = vmatmul.mubr.msk.f32.vlgmr.msra.gmra.mrb[42].mxu1 %vm1712_vm1, %v5028_v8 }
 0xfe6   : > { %v5179_v9 = vpop.f32.mrb[44].mxu0 }
 0xfe7   : > { %v5180_v14 = vadd.f32 %v5179_v9, %v5038_v62  ;;  %v5108_v15 = vpop.f32.mrb[42].mxu1  ;;  %v5181_v24 = vpop.f32.mrb[45].mxu0 }
 0xfe8   : > { %v5109_v26 = vadd.f32 %v5108_v15, %v5038_v62  ;;  %v5182_v27 = vadd.f32 %v5181_v24, %v5038_v62  ;;  %v5110_v28 = vpop.f32.mrb[43].mxu1 }
 0xfe9   : > { %v5111_v22 = vadd.f32 %v5110_v28, %v5038_v62 }
 0xfea   : > { %v5189_v20 = vcombine.low %v5180_v14, %v5182_v27 }
 0xfeb   : > { %v5188_v21 = vcombine.low %v5109_v26, %v5111_v22 }
 0xfec   : > { %v5203_v10 = vrot.slane %v5189_v20, %v5195_v41 }
 0xfed   : > { %v5196_v29 = vrot.slane %v5188_v21, %v5195_v41 }
 0xfef   : > { %v5204_v47 = vcombine.low %v5196_v29, %v5203_v10 }
 0xff1   : > { %v5211_v30 = vrot.slane %v5204_v47, %v5195_v41 }
 0xff3   : > { %5217 = vst.msk [vmem:[%s771_s2] sm:$0xf] %vm5215_vm7, %v5211_v30 }
 0xff4   : > { %6367 = shalt.err (!%p6364_p9)
}
 0xff5   : > { %s6368_s30 = scalar_lea.hbm %s7322_s26, 64  ;;  %s6372_s20 = scalar_lea.hbm %s7447_s27, 128 }
 0xff6   : > { %p6369_p2 = scmp.ne.s32.totalorder %s7322_s26, %s6368_s30  ;;  %p6373_p5 = scmp.lt.u32.totalorder %s7322_s26, %s7447_s27 }
 0xff7   : > { %p6374_p10 = scmp.lt.u32.totalorder %s6372_s20, %s6368_s30  ;;  %p6376_p4 = scmp.lt.u32.totalorder %s6368_s30, %s7322_s26 }
 0xff8   : > { %p6370_p0 = pnand %p6369_p2, %p7448_p7 }
 0xff9   : > { %p6375_p12 = por %p6374_p10, %p6373_p5 }
 0xffa   : > { %p6371_p3 = pneg %p6370_p0 }
 0xffb   : > { %p6377_p8 = por %p6376_p4, %p6375_p12 }
 0xffd   : > { %p6378_p11 = pnand %p6377_p8, %p6371_p3 }
 0xfff   : > { %6381 = shalt.err (!%p6378_p11)
}
0x1000   : > { %5989 = dma.vmem_to_hbm [thread:$0]  (%p7448_p7), %s7324_s0, 64, %s7322_s26, %s5219_s5  }
0x1001 PF: > { %s7449_s24 = sld [smem:[#allocation17_spill]]  ;;  %s7450_s23 = sld [smem:[#allocation14_spill]] }
0x1002   : > { %s7451_s6 = sld [smem:[#allocation21_spill]] }
0x1007   : > { %p6011_p13 = scmp.ge.s32.totalorder %s7449_s24, 2  ;;  %s5245_s22 = sand.u32 1, %s7450_s23  }
0x1008   : > { %p7452_p1 = scmp.ne.s32.totalorder %s7451_s6, 0  ;;  %s5246_s19 = scalar_lea.sflag [#allocation6], %s5245_s22 }
0x100a   : > { %p6002_p6 = pnand %p6011_p13, %p7452_p1 }
0x100c   : > { %6407 = dma.done.wait (!%p6002_p6), %s5246_s19, 64  }
0x100d   : > { %6409 = vsyncadd (!%p6002_p6), %s5246_s19, 4294967232  ;;  %s7453_s1 = sld [smem:[#allocation18_spill]]  ;;  %s7454_s24 = sld [smem:[#allocation15_spill]] }
0x100e   : > { %s7455_s25 = sld [smem:[#allocation16_spill]]  ;;  %s7456_s5 = sld [smem:[#allocation19_spill]] }
0x1013   : > { %p37_p9 = scmp.ge.s32.totalorder %s7453_s1, 4  }
0x1015   :  { %39 = sbr.rel (!%p37_p9) target bundleno = 18 (0x12), region = 183 }
0x101c   :  { %5251 = vsyncpa [#allocation5], 1 }
0x101d   :  { %5253 = vsyncpa [#allocation5 + $0x1], 1 }
0x101e   :  { %5254 = vsyncpa [#allocation8], 1 }
0x101f   :  { %5255 = vsyncpa [#allocation6], 1 }
0x1020   :  { %5257 = vsyncpa [#allocation6 + $0x1], 1 }

</bundles_post_ra>
